<compile_context>
chip_gen: v6e
topology: v6e:2x2x1
jax: 0.10.0
libtpu: 0.0.40
codegen_flags: <defaults>
</compile_context>

<pallas_src>
import functools

import jax
import jax.numpy as jnp
from jax.experimental import pallas as pl
from jax.experimental.pallas import tpu as pltpu

LANE = 128


def _round_up(x, m):
    return (x + m - 1) // m * m


# ---------------------------------------------------------------------------
# Fused kernel: conv_0 -> (in-VMEM halo pad) -> conv_1 (im2col) -> conv_2
#               -> identity/downsample -> residual add -> ReLU
# ---------------------------------------------------------------------------
def make_fused_kernel(NB, H, W, Cp, nhp, nfp, downsample):
    rows = NB * H * W

    def kernel(*refs):
        if downsample:
            (x_ref, w0_ref, s0_ref, b0_ref,
             w1_ref, s1_ref, b1_ref,
             w2_ref, s2_ref, b2_ref,
             wd_ref, sd_ref, bd_ref,
             o_ref, pad_ref) = refs
        else:
            (x_ref, w0_ref, s0_ref, b0_ref,
             w1_ref, s1_ref, b1_ref,
             w2_ref, s2_ref, b2_ref,
             o_ref, pad_ref) = refs

        # ---- conv_0: 1x1 conv -> BN -> ReLU (bf16 MXU inputs, f32 accumulate) ----
        x2d = x_ref[...]                                            # (rows, Cp) bf16
        y0 = jnp.dot(x2d, w0_ref[...], preferred_element_type=jnp.float32)
        y0 = jnp.maximum(y0 * s0_ref[...] + b0_ref[...], 0.0)       # f32

        # ---- halo padding for the 3x3 conv, entirely in VMEM ----
        pad_ref[...] = jnp.zeros_like(pad_ref)
        pad_ref[:, 1:H + 1, 1:W + 1, :] = y0.reshape(NB, H, W, nhp)

        # ---- conv_1: 3x3 conv as a single im2col matmul (K = 9 * nhp) ----
        patches = jnp.concatenate(
            [pad_ref[:, dy:dy + H, dx:dx + W, :].reshape(rows, nhp)
             for dy in range(3) for dx in range(3)],
            axis=-1)                                                # (rows, 9*nhp) f32
        y1 = jnp.dot(patches.astype(jnp.bfloat16), w1_ref[...],
                     preferred_element_type=jnp.float32)
        y1 = jnp.maximum(y1 * s1_ref[...] + b1_ref[...], 0.0)

        # ---- conv_2: 1x1 conv -> BN (no activation) ----
        y2 = jnp.dot(y1.astype(jnp.bfloat16), w2_ref[...],
                     preferred_element_type=jnp.float32)
        y2 = y2 * s2_ref[...] + b2_ref[...]

        # ---- identity / downsample branch ----
        if downsample:
            idn = jnp.dot(x2d, wd_ref[...], preferred_element_type=jnp.float32)
            idn = idn * sd_ref[...] + bd_ref[...]
        else:
            idn = x2d.astype(jnp.float32)        # Cp == nfp in this case

        # ---- residual add + ReLU, lane-dense (128-wide) f32 store ----
        o_ref[...] = jnp.maximum(y2 + idn, 0.0)

    return kernel


# ---------------------------------------------------------------------------
# Wrapper (NHWC in / NHWC out). Channel padding / flattening / transposes are
# one-time glue; all conv compute runs inside the single pallas_call.
# ---------------------------------------------------------------------------
def bottleneck_forward_nhwc(x, params, *, downsample, images_per_block=None):
    N, H, W, Cin = x.shape
    nh = params["w0"].shape[1]
    nf = params["w2"].shape[1]
    Cp = _round_up(Cin, LANE)
    nhp = _round_up(nh, LANE)
    nfp = _round_up(nf, LANE)

    # pick images-per-block so each grid step has >= ~256 matmul rows,
    # while keeping multiple parallel grid steps when possible (megacore).
    if images_per_block is None:
        divs = [d for d in range(1, N + 1) if N % d == 0]
        images_per_block = next((d for d in divs if d * H * W >= 256), divs[-1])
    NB = images_per_block
    assert N % NB == 0
    rows_blk = NB * H * W

    # --- pad channels to 128 lanes; cast matmul operands to bf16 (glue) ---
    xp = jnp.pad(x, ((0, 0), (0, 0), (0, 0), (0, Cp - Cin))).astype(jnp.bfloat16)
    x2d = xp.reshape(N * H * W, Cp)

    def padw(w, r, c):
        return jnp.pad(w, ((0, r - w.shape[0]), (0, c - w.shape[1]))).astype(jnp.bfloat16)

    def padsb(s, b, c):
        pad = c - s.shape[1]
        return (jnp.pad(s, ((0, 0), (0, pad)), constant_values=1.0),
                jnp.pad(b, ((0, 0), (0, pad))))

    w0 = padw(params["w0"], Cp, nhp)
    s0, b0 = padsb(params["s0"], params["b0"], nhp)
    w1 = jnp.pad(params["w1"],
                 ((0, 0), (0, nhp - nh), (0, nhp - nh))
                 ).astype(jnp.bfloat16).reshape(9 * nhp, nhp)       # [tap*nhp + ci, co]
    s1, b1 = padsb(params["s1"], params["b1"], nhp)
    w2 = padw(params["w2"], nhp, nfp)
    s2, b2 = padsb(params["s2"], params["b2"], nfp)

    def const_spec(shape):
        return pl.BlockSpec(shape, lambda g: (0, 0))

    args = [x2d, w0, s0, b0, w1, s1, b1, w2, s2, b2]
    in_specs = [
        pl.BlockSpec((rows_blk, Cp), lambda g: (g, 0)),
        const_spec((Cp, nhp)), const_spec((1, nhp)), const_spec((1, nhp)),
        const_spec((9 * nhp, nhp)), const_spec((1, nhp)), const_spec((1, nhp)),
        const_spec((nhp, nfp)), const_spec((1, nfp)), const_spec((1, nfp)),
    ]
    if downsample:
        wd = padw(params["wd"], Cp, nfp)
        sd, bd = padsb(params["sd"], params["bd"], nfp)
        args += [wd, sd, bd]
        in_specs += [const_spec((Cp, nfp)), const_spec((1, nfp)), const_spec((1, nfp))]
    else:
        assert Cin == nf, "identity shortcut requires Cin == nf (ni == nh, stride == 1)"

    kernel = make_fused_kernel(NB, H, W, Cp, nhp, nfp, downsample)

    out2d = pl.pallas_call(
        kernel,
        out_shape=jax.ShapeDtypeStruct((N * H * W, nfp), jnp.float32),
        grid=(N // NB,),
        in_specs=in_specs,
        out_specs=pl.BlockSpec((rows_blk, nfp), lambda g: (g, 0)),
        scratch_shapes=[pltpu.VMEM((NB, H + 2, W + 2, nhp), jnp.float32)],
        compiler_params=pltpu.CompilerParams(dimension_semantics=("parallel",)),
    )(*args)

    return out2d.reshape(N, H, W, nfp)[..., :nf]


@functools.partial(jax.jit, static_argnames=("downsample", "images_per_block"))
def bottleneck_forward_nchw(x_nchw, params, *, downsample, images_per_block=None):
    x = jnp.transpose(x_nchw, (0, 2, 3, 1))             # NCHW -> NHWC
    out = bottleneck_forward_nhwc(x, params, downsample=downsample,
                                  images_per_block=images_per_block)
    return jnp.transpose(out, (0, 3, 1, 2))             # NHWC -> NCHW


# ---------------------------------------------------------------------------
# Deterministic parameter construction (synthetic, shapes from the module init)
# ---------------------------------------------------------------------------
def fold_bn(gamma, beta, mean, var, eps=1e-5):
    scale = gamma / jnp.sqrt(var + eps)
    bias = beta - mean * scale
    return scale[None, :], bias[None, :]


def make_params(key, ni, nh, expansion):
    Cin = ni * expansion
    nf = nh * expansion
    ks = jax.random.split(key, 16)

    def bn(k, c):
        k1, k2, k3, k4 = jax.random.split(k, 4)
        gamma = jax.random.uniform(k1, (c,), jnp.float32, 0.5, 1.5)
        beta = 0.1 * jax.random.normal(k2, (c,), jnp.float32)
        mean = 0.1 * jax.random.normal(k3, (c,), jnp.float32)
        var = jax.random.uniform(k4, (c,), jnp.float32, 0.5, 1.5)
        return fold_bn(gamma, beta, mean, var)

    p = {}
    p["w0"] = 0.1 * jax.random.normal(ks[0], (Cin, nh), jnp.float32)      # 1x1, (Cin, Cout)
    p["s0"], p["b0"] = bn(ks[1], nh)
    p["w1"] = 0.1 * jax.random.normal(ks[2], (9, nh, nh), jnp.float32)    # 3x3, [dy*3+dx, ci, co]
    p["s1"], p["b1"] = bn(ks[3], nh)
    p["w2"] = 0.1 * jax.random.normal(ks[4], (nh, nf), jnp.float32)       # 1x1
    p["s2"], p["b2"] = bn(ks[5], nf)
    p["wd"] = 0.1 * jax.random.normal(ks[6], (Cin, nf), jnp.float32)      # downsample 1x1
    p["sd"], p["bd"] = bn(ks[7], nf)
    return p


# ---------------------------------------------------------------------------
# References:
#   ref_bottleneck_f32  : pure f32 / HIGHEST precision (module semantics)
#   ref_bottleneck_bf16 : mirrors the kernel's bf16-input / f32-accumulate casts
# ---------------------------------------------------------------------------
def ref_bottleneck_f32(x, p, downsample):
    dn = ("NHWC", "HWIO", "NHWC")
    hp = jax.lax.Precision.HIGHEST
    Cin = x.shape[-1]
    nh = p["w0"].shape[1]
    nf = p["w2"].shape[1]

    y = jax.lax.conv_general_dilated(x, p["w0"].reshape(1, 1, Cin, nh), (1, 1),
                                     "VALID", dimension_numbers=dn, precision=hp)
    y = jnp.maximum(y * p["s0"] + p["b0"], 0.0)
    y = jax.lax.conv_general_dilated(y, p["w1"].reshape(3, 3, nh, nh), (1, 1),
                                     "SAME", dimension_numbers=dn, precision=hp)
    y = jnp.maximum(y * p["s1"] + p["b1"], 0.0)
    y = jax.lax.conv_general_dilated(y, p["w2"].reshape(1, 1, nh, nf), (1, 1),
                                     "VALID", dimension_numbers=dn, precision=hp)
    y = y * p["s2"] + p["b2"]
    if downsample:
        idn = jax.lax.conv_general_dilated(x, p["wd"].reshape(1, 1, Cin, nf), (1, 1),
                                           "VALID", dimension_numbers=dn, precision=hp)
        idn = idn * p["sd"] + p["bd"]
    else:
        idn = x
    return jnp.maximum(y + idn, 0.0)


def ref_bottleneck_bf16(x, p, downsample):
    dn = ("NHWC", "HWIO", "NHWC")
    bf = jnp.bfloat16
    Cin = x.shape[-1]
    nh = p["w0"].shape[1]
    nf = p["w2"].shape[1]

    def conv(a, w, pad):
        return jax.lax.conv_general_dilated(
            a.astype(bf), w.astype(bf), (1, 1), pad, dimension_numbers=dn,
            preferred_element_type=jnp.float32)

    xb = x.astype(bf)
    y = conv(xb, p["w0"].reshape(1, 1, Cin, nh), "VALID")
    y = jnp.maximum(y * p["s0"] + p["b0"], 0.0)
    y = conv(y, p["w1"].reshape(3, 3, nh, nh), "SAME")
    y = jnp.maximum(y * p["s1"] + p["b1"], 0.0)
    y = conv(y, p["w2"].reshape(1, 1, nh, nf), "VALID")
    y = y * p["s2"] + p["b2"]
    if downsample:
        idn = conv(xb, p["wd"].reshape(1, 1, Cin, nf), "VALID")
        idn = idn * p["sd"] + p["bd"]
    else:
        idn = xb.astype(jnp.float32)
    return jnp.maximum(y + idn, 0.0)


if __name__ == "__main__":
    key = jax.random.PRNGKey(0)
    N, H, W = 2, 16, 16
    expansion = 4

    # Case 1: ni != nh  ->  downsample branch active (1x1 conv identity)
    # Case 2: ni == nh, stride == 1 -> plain identity shortcut
    cases = [
        dict(ni=4, nh=8),   # Cin = 16, nf = 32, downsample = True
        dict(ni=4, nh=4),   # Cin = 16, nf = 16, downsample = False
    ]

    ok = True
    for i, cfg in enumerate(cases):
        ni, nh = cfg["ni"], cfg["nh"]
        Cin = ni * expansion
        downsample = (ni != nh)  # stride fixed to 1 in this kernel

        kp, kx = jax.random.split(jax.random.fold_in(key, i))
        params = make_params(kp, ni, nh, expansion)
        x_nchw = jax.random.normal(kx, (N, Cin, H, W), jnp.float32)

        out = bottleneck_forward_nchw(x_nchw, params, downsample=downsample)
        out = jax.block_until_ready(out)

        x_nhwc = jnp.transpose(x_nchw, (0, 2, 3, 1))
        ref_b = jnp.transpose(ref_bottleneck_bf16(x_nhwc, params, downsample), (0, 3, 1, 2))
        ref_f = jnp.transpose(ref_bottleneck_f32(x_nhwc, params, downsample), (0, 3, 1, 2))

        err_b = float(jnp.max(jnp.abs(out - ref_b)))   # vs bf16-compute/f32-accum reference
        err_f = float(jnp.max(jnp.abs(out - ref_f)))   # vs full-f32 module reference
        if not (err_b < 1e-3 and err_f < 5e-2):
            ok = False
            print(f"case {i}: err_vs_bf16_ref = {err_b}, err_vs_f32_ref = {err_f}")

    if ok:
        print("KERNEL_OK")
</pallas_src>

<mosaic_0001>
module attributes {stable_mosaic.version = 11 : i64} {
  func.func @kernel(%arg0: i32, %arg1: memref<256x128xbf16, #tpu.memory_space<vmem>>, %arg2: memref<128x128xbf16, #tpu.memory_space<vmem>>, %arg3: memref<1x128xf32, #tpu.memory_space<vmem>>, %arg4: memref<1x128xf32, #tpu.memory_space<vmem>>, %arg5: memref<1152x128xbf16, #tpu.memory_space<vmem>>, %arg6: memref<1x128xf32, #tpu.memory_space<vmem>>, %arg7: memref<1x128xf32, #tpu.memory_space<vmem>>, %arg8: memref<128x128xbf16, #tpu.memory_space<vmem>>, %arg9: memref<1x128xf32, #tpu.memory_space<vmem>>, %arg10: memref<1x128xf32, #tpu.memory_space<vmem>>, %arg11: memref<128x128xbf16, #tpu.memory_space<vmem>>, %arg12: memref<1x128xf32, #tpu.memory_space<vmem>>, %arg13: memref<1x128xf32, #tpu.memory_space<vmem>>, %arg14: memref<256x128xf32, #tpu.memory_space<vmem>>, %arg15: memref<1x18x18x128xf32, #tpu.memory_space<vmem>>) attributes {dimension_semantics = [#tpu.dimension_semantics<parallel>], iteration_bounds = array<i64: 2>, scalar_prefetch = 0 : i64, scratch_operands = 1 : i64, tpu.core_type = #tpu.core_type<tc>, window_params = [{transform_indices = @transform_0, window_bounds = array<i64: 256, 128>}, {pipeline_mode = #tpu.pipeline_mode<synchronous>, transform_indices = @transform_1, window_bounds = array<i64: 128, 128>}, {pipeline_mode = #tpu.pipeline_mode<synchronous>, transform_indices = @transform_2, window_bounds = array<i64: 1, 128>}, {pipeline_mode = #tpu.pipeline_mode<synchronous>, transform_indices = @transform_3, window_bounds = array<i64: 1, 128>}, {pipeline_mode = #tpu.pipeline_mode<synchronous>, transform_indices = @transform_4, window_bounds = array<i64: 1152, 128>}, {pipeline_mode = #tpu.pipeline_mode<synchronous>, transform_indices = @transform_5, window_bounds = array<i64: 1, 128>}, {pipeline_mode = #tpu.pipeline_mode<synchronous>, transform_indices = @transform_6, window_bounds = array<i64: 1, 128>}, {pipeline_mode = #tpu.pipeline_mode<synchronous>, transform_indices = @transform_7, window_bounds = array<i64: 128, 128>}, {pipeline_mode = #tpu.pipeline_mode<synchronous>, transform_indices = @transform_8, window_bounds = array<i64: 1, 128>}, {pipeline_mode = #tpu.pipeline_mode<synchronous>, transform_indices = @transform_9, window_bounds = array<i64: 1, 128>}, {pipeline_mode = #tpu.pipeline_mode<synchronous>, transform_indices = @transform_10, window_bounds = array<i64: 128, 128>}, {pipeline_mode = #tpu.pipeline_mode<synchronous>, transform_indices = @transform_11, window_bounds = array<i64: 1, 128>}, {pipeline_mode = #tpu.pipeline_mode<synchronous>, transform_indices = @transform_12, window_bounds = array<i64: 1, 128>}, {transform_indices = @transform_13, window_bounds = array<i64: 256, 128>}]} {
    %c0 = arith.constant 0 : index
    %c0_0 = arith.constant 0 : index
    %0 = vector.load %arg1[%c0, %c0_0] : memref<256x128xbf16, #tpu.memory_space<vmem>>, vector<256x128xbf16>
    %c0_1 = arith.constant 0 : index
    %c0_2 = arith.constant 0 : index
    %1 = vector.load %arg2[%c0_1, %c0_2] : memref<128x128xbf16, #tpu.memory_space<vmem>>, vector<128x128xbf16>
    %cst = arith.constant dense<0.000000e+00> : vector<256x128xf32>
    %2 = tpu.matmul %0, %1, %cst {dimension_numbers = #tpu.dot_dimension_numbers<[1], [0], [0], [1], [0, 0, 1, 1], [], []>} : vector<256x128xbf16>, vector<128x128xbf16>, vector<256x128xf32> -> vector<256x128xf32>
    %c0_3 = arith.constant 0 : index
    %c0_4 = arith.constant 0 : index
    %3 = vector.load %arg3[%c0_3, %c0_4] : memref<1x128xf32, #tpu.memory_space<vmem>>, vector<1x128xf32>
    %4 = vector.broadcast %3 : vector<1x128xf32> to vector<256x128xf32>
    %5 = arith.mulf %2, %4 : vector<256x128xf32>
    %c0_5 = arith.constant 0 : index
    %c0_6 = arith.constant 0 : index
    %6 = vector.load %arg4[%c0_5, %c0_6] : memref<1x128xf32, #tpu.memory_space<vmem>>, vector<1x128xf32>
    %7 = vector.broadcast %6 : vector<1x128xf32> to vector<256x128xf32>
    %8 = arith.addf %5, %7 : vector<256x128xf32>
    %cst_7 = arith.constant 0.000000e+00 : f32
    %9 = vector.broadcast %cst_7 : f32 to vector<256x128xf32>
    %10 = arith.maximumf %8, %9 : vector<256x128xf32>
    %cst_8 = arith.constant 0.000000e+00 : f32
    %11 = vector.broadcast %cst_8 : f32 to vector<1x18x18x128xf32>
    %c0_9 = arith.constant 0 : index
    %c0_10 = arith.constant 0 : index
    %c0_11 = arith.constant 0 : index
    %c0_12 = arith.constant 0 : index
    %12 = vector.load %arg15[%c0_9, %c0_10, %c0_11, %c0_12] : memref<1x18x18x128xf32, #tpu.memory_space<vmem>>, vector<1x18x18x128xf32>
    tpu.vector_store %arg15[%c0_9, %c0_10, %c0_11, %c0_12], %11 {strides = array<i32>} : memref<1x18x18x128xf32, #tpu.memory_space<vmem>>, vector<1x18x18x128xf32>,
    %13 = vector.shape_cast %10 : vector<256x128xf32> to vector<1x16x16x128xf32>
    %c0_13 = arith.constant 0 : index
    %c1 = arith.constant 1 : index
    %c1_14 = arith.constant 1 : index
    %c0_15 = arith.constant 0 : index
    %14 = vector.load %arg15[%c0_13, %c1, %c1_14, %c0_15] : memref<1x18x18x128xf32, #tpu.memory_space<vmem>>, vector<1x16x16x128xf32>
    tpu.vector_store %arg15[%c0_13, %c1, %c1_14, %c0_15], %13 {strides = array<i32>} : memref<1x18x18x128xf32, #tpu.memory_space<vmem>>, vector<1x16x16x128xf32>,
    %c0_16 = arith.constant 0 : index
    %c0_17 = arith.constant 0 : index
    %c0_18 = arith.constant 0 : index
    %c0_19 = arith.constant 0 : index
    %15 = vector.load %arg15[%c0_16, %c0_17, %c0_18, %c0_19] : memref<1x18x18x128xf32, #tpu.memory_space<vmem>>, vector<1x16x16x128xf32>
    %16 = vector.shape_cast %15 : vector<1x16x16x128xf32> to vector<256x128xf32>
    %c0_20 = arith.constant 0 : index
    %c0_21 = arith.constant 0 : index
    %c1_22 = arith.constant 1 : index
    %c0_23 = arith.constant 0 : index
    %17 = vector.load %arg15[%c0_20, %c0_21, %c1_22, %c0_23] : memref<1x18x18x128xf32, #tpu.memory_space<vmem>>, vector<1x16x16x128xf32>
    %18 = vector.shape_cast %17 : vector<1x16x16x128xf32> to vector<256x128xf32>
    %c0_24 = arith.constant 0 : index
    %c0_25 = arith.constant 0 : index
    %c2 = arith.constant 2 : index
    %c0_26 = arith.constant 0 : index
    %19 = vector.load %arg15[%c0_24, %c0_25, %c2, %c0_26] : memref<1x18x18x128xf32, #tpu.memory_space<vmem>>, vector<1x16x16x128xf32>
    %20 = vector.shape_cast %19 : vector<1x16x16x128xf32> to vector<256x128xf32>
    %c0_27 = arith.constant 0 : index
    %c1_28 = arith.constant 1 : index
    %c0_29 = arith.constant 0 : index
    %c0_30 = arith.constant 0 : index
    %21 = vector.load %arg15[%c0_27, %c1_28, %c0_29, %c0_30] : memref<1x18x18x128xf32, #tpu.memory_space<vmem>>, vector<1x16x16x128xf32>
    %22 = vector.shape_cast %21 : vector<1x16x16x128xf32> to vector<256x128xf32>
    %c0_31 = arith.constant 0 : index
    %c1_32 = arith.constant 1 : index
    %c1_33 = arith.constant 1 : index
    %c0_34 = arith.constant 0 : index
    %23 = vector.load %arg15[%c0_31, %c1_32, %c1_33, %c0_34] : memref<1x18x18x128xf32, #tpu.memory_space<vmem>>, vector<1x16x16x128xf32>
    %24 = vector.shape_cast %23 : vector<1x16x16x128xf32> to vector<256x128xf32>
    %c0_35 = arith.constant 0 : index
    %c1_36 = arith.constant 1 : index
    %c2_37 = arith.constant 2 : index
    %c0_38 = arith.constant 0 : index
    %25 = vector.load %arg15[%c0_35, %c1_36, %c2_37, %c0_38] : memref<1x18x18x128xf32, #tpu.memory_space<vmem>>, vector<1x16x16x128xf32>
    %26 = vector.shape_cast %25 : vector<1x16x16x128xf32> to vector<256x128xf32>
    %c0_39 = arith.constant 0 : index
    %c2_40 = arith.constant 2 : index
    %c0_41 = arith.constant 0 : index
    %c0_42 = arith.constant 0 : index
    %27 = vector.load %arg15[%c0_39, %c2_40, %c0_41, %c0_42] : memref<1x18x18x128xf32, #tpu.memory_space<vmem>>, vector<1x16x16x128xf32>
    %28 = vector.shape_cast %27 : vector<1x16x16x128xf32> to vector<256x128xf32>
    %c0_43 = arith.constant 0 : index
    %c2_44 = arith.constant 2 : index
    %c1_45 = arith.constant 1 : index
    %c0_46 = arith.constant 0 : index
    %29 = vector.load %arg15[%c0_43, %c2_44, %c1_45, %c0_46] : memref<1x18x18x128xf32, #tpu.memory_space<vmem>>, vector<1x16x16x128xf32>
    %30 = vector.shape_cast %29 : vector<1x16x16x128xf32> to vector<256x128xf32>
    %c0_47 = arith.constant 0 : index
    %c2_48 = arith.constant 2 : index
    %c2_49 = arith.constant 2 : index
    %c0_50 = arith.constant 0 : index
    %31 = vector.load %arg15[%c0_47, %c2_48, %c2_49, %c0_50] : memref<1x18x18x128xf32, #tpu.memory_space<vmem>>, vector<1x16x16x128xf32>
    %32 = vector.shape_cast %31 : vector<1x16x16x128xf32> to vector<256x128xf32>
    %33 = tpu.concatenate %16, %18, %20, %22, %24, %26, %28, %30, %32 in 1 : vector<256x128xf32>, vector<256x128xf32>, vector<256x128xf32>, vector<256x128xf32>, vector<256x128xf32>, vector<256x128xf32>, vector<256x128xf32>, vector<256x128xf32>, vector<256x128xf32> -> vector<256x1152xf32>
    %34 = arith.truncf %33 : vector<256x1152xf32> to vector<256x1152xbf16>
    %c0_51 = arith.constant 0 : index
    %c0_52 = arith.constant 0 : index
    %35 = vector.load %arg5[%c0_51, %c0_52] : memref<1152x128xbf16, #tpu.memory_space<vmem>>, vector<1152x128xbf16>
    %cst_53 = arith.constant dense<0.000000e+00> : vector<256x128xf32>
    %36 = tpu.matmul %34, %35, %cst_53 {dimension_numbers = #tpu.dot_dimension_numbers<[1], [0], [0], [1], [0, 0, 1, 1], [], []>} : vector<256x1152xbf16>, vector<1152x128xbf16>, vector<256x128xf32> -> vector<256x128xf32>
    %c0_54 = arith.constant 0 : index
    %c0_55 = arith.constant 0 : index
    %37 = vector.load %arg6[%c0_54, %c0_55] : memref<1x128xf32, #tpu.memory_space<vmem>>, vector<1x128xf32>
    %38 = vector.broadcast %37 : vector<1x128xf32> to vector<256x128xf32>
    %39 = arith.mulf %36, %38 : vector<256x128xf32>
    %c0_56 = arith.constant 0 : index
    %c0_57 = arith.constant 0 : index
    %40 = vector.load %arg7[%c0_56, %c0_57] : memref<1x128xf32, #tpu.memory_space<vmem>>, vector<1x128xf32>
    %41 = vector.broadcast %40 : vector<1x128xf32> to vector<256x128xf32>
    %42 = arith.addf %39, %41 : vector<256x128xf32>
    %cst_58 = arith.constant 0.000000e+00 : f32
    %43 = vector.broadcast %cst_58 : f32 to vector<256x128xf32>
    %44 = arith.maximumf %42, %43 : vector<256x128xf32>
    %45 = arith.truncf %44 : vector<256x128xf32> to vector<256x128xbf16>
    %c0_59 = arith.constant 0 : index
    %c0_60 = arith.constant 0 : index
    %46 = vector.load %arg8[%c0_59, %c0_60] : memref<128x128xbf16, #tpu.memory_space<vmem>>, vector<128x128xbf16>
    %cst_61 = arith.constant dense<0.000000e+00> : vector<256x128xf32>
    %47 = tpu.matmul %45, %46, %cst_61 {dimension_numbers = #tpu.dot_dimension_numbers<[1], [0], [0], [1], [0, 0, 1, 1], [], []>} : vector<256x128xbf16>, vector<128x128xbf16>, vector<256x128xf32> -> vector<256x128xf32>
    %c0_62 = arith.constant 0 : index
    %c0_63 = arith.constant 0 : index
    %48 = vector.load %arg9[%c0_62, %c0_63] : memref<1x128xf32, #tpu.memory_space<vmem>>, vector<1x128xf32>
    %49 = vector.broadcast %48 : vector<1x128xf32> to vector<256x128xf32>
    %50 = arith.mulf %47, %49 : vector<256x128xf32>
    %c0_64 = arith.constant 0 : index
    %c0_65 = arith.constant 0 : index
    %51 = vector.load %arg10[%c0_64, %c0_65] : memref<1x128xf32, #tpu.memory_space<vmem>>, vector<1x128xf32>
    %52 = vector.broadcast %51 : vector<1x128xf32> to vector<256x128xf32>
    %53 = arith.addf %50, %52 : vector<256x128xf32>
    %c0_66 = arith.constant 0 : index
    %c0_67 = arith.constant 0 : index
    %54 = vector.load %arg11[%c0_66, %c0_67] : memref<128x128xbf16, #tpu.memory_space<vmem>>, vector<128x128xbf16>
    %cst_68 = arith.constant dense<0.000000e+00> : vector<256x128xf32>
    %55 = tpu.matmul %0, %54, %cst_68 {dimension_numbers = #tpu.dot_dimension_numbers<[1], [0], [0], [1], [0, 0, 1, 1], [], []>} : vector<256x128xbf16>, vector<128x128xbf16>, vector<256x128xf32> -> vector<256x128xf32>
    %c0_69 = arith.constant 0 : index
    %c0_70 = arith.constant 0 : index
    %56 = vector.load %arg12[%c0_69, %c0_70] : memref<1x128xf32, #tpu.memory_space<vmem>>, vector<1x128xf32>
    %57 = vector.broadcast %56 : vector<1x128xf32> to vector<256x128xf32>
    %58 = arith.mulf %55, %57 : vector<256x128xf32>
    %c0_71 = arith.constant 0 : index
    %c0_72 = arith.constant 0 : index
    %59 = vector.load %arg13[%c0_71, %c0_72] : memref<1x128xf32, #tpu.memory_space<vmem>>, vector<1x128xf32>
    %60 = vector.broadcast %59 : vector<1x128xf32> to vector<256x128xf32>
    %61 = arith.addf %58, %60 : vector<256x128xf32>
    %62 = arith.addf %53, %61 : vector<256x128xf32>
    %cst_73 = arith.constant 0.000000e+00 : f32
    %63 = vector.broadcast %cst_73 : f32 to vector<256x128xf32>
    %64 = arith.maximumf %62, %63 : vector<256x128xf32>
    %c0_74 = arith.constant 0 : index
    %c0_75 = arith.constant 0 : index
    %65 = vector.load %arg14[%c0_74, %c0_75] : memref<256x128xf32, #tpu.memory_space<vmem>>, vector<256x128xf32>
    tpu.vector_store %arg14[%c0_74, %c0_75], %64 {strides = array<i32>} : memref<256x128xf32, #tpu.memory_space<vmem>>, vector<256x128xf32>,
    return
  }
  func.func @transform_0(%arg0: i32) -> (i32, i32) {
    %c0_i32 = arith.constant 0 : i32
    %c0_i32_0 = arith.constant 0 : i32
    return %arg0, %c0_i32 : i32, i32
  }
  func.func @transform_1(%arg0: i32) -> (i32, i32) {
    %c0_i32 = arith.constant 0 : i32
    %c0_i32_0 = arith.constant 0 : i32
    %c0_i32_1 = arith.constant 0 : i32
    return %c0_i32, %c0_i32_0 : i32, i32
  }
  func.func @transform_2(%arg0: i32) -> (i32, i32) {
    %c0_i32 = arith.constant 0 : i32
    %c0_i32_0 = arith.constant 0 : i32
    %c0_i32_1 = arith.constant 0 : i32
    return %c0_i32, %c0_i32_0 : i32, i32
  }
  func.func @transform_3(%arg0: i32) -> (i32, i32) {
    %c0_i32 = arith.constant 0 : i32
    %c0_i32_0 = arith.constant 0 : i32
    %c0_i32_1 = arith.constant 0 : i32
    return %c0_i32, %c0_i32_0 : i32, i32
  }
  func.func @transform_4(%arg0: i32) -> (i32, i32) {
    %c0_i32 = arith.constant 0 : i32
    %c0_i32_0 = arith.constant 0 : i32
    %c0_i32_1 = arith.constant 0 : i32
    return %c0_i32, %c0_i32_0 : i32, i32
  }
  func.func @transform_5(%arg0: i32) -> (i32, i32) {
    %c0_i32 = arith.constant 0 : i32
    %c0_i32_0 = arith.constant 0 : i32
    %c0_i32_1 = arith.constant 0 : i32
    return %c0_i32, %c0_i32_0 : i32, i32
  }
  func.func @transform_6(%arg0: i32) -> (i32, i32) {
    %c0_i32 = arith.constant 0 : i32
    %c0_i32_0 = arith.constant 0 : i32
    %c0_i32_1 = arith.constant 0 : i32
    return %c0_i32, %c0_i32_0 : i32, i32
  }
  func.func @transform_7(%arg0: i32) -> (i32, i32) {
    %c0_i32 = arith.constant 0 : i32
    %c0_i32_0 = arith.constant 0 : i32
    %c0_i32_1 = arith.constant 0 : i32
    return %c0_i32, %c0_i32_0 : i32, i32
  }
  func.func @transform_8(%arg0: i32) -> (i32, i32) {
    %c0_i32 = arith.constant 0 : i32
    %c0_i32_0 = arith.constant 0 : i32
    %c0_i32_1 = arith.constant 0 : i32
    return %c0_i32, %c0_i32_0 : i32, i32
  }
  func.func @transform_9(%arg0: i32) -> (i32, i32) {
    %c0_i32 = arith.constant 0 : i32
    %c0_i32_0 = arith.constant 0 : i32
    %c0_i32_1 = arith.constant 0 : i32
    return %c0_i32, %c0_i32_0 : i32, i32
  }
  func.func @transform_10(%arg0: i32) -> (i32, i32) {
    %c0_i32 = arith.constant 0 : i32
    %c0_i32_0 = arith.constant 0 : i32
    %c0_i32_1 = arith.constant 0 : i32
    return %c0_i32, %c0_i32_0 : i32, i32
  }
  func.func @transform_11(%arg0: i32) -> (i32, i32) {
    %c0_i32 = arith.constant 0 : i32
    %c0_i32_0 = arith.constant 0 : i32
    %c0_i32_1 = arith.constant 0 : i32
    return %c0_i32, %c0_i32_0 : i32, i32
  }
  func.func @transform_12(%arg0: i32) -> (i32, i32) {
    %c0_i32 = arith.constant 0 : i32
    %c0_i32_0 = arith.constant 0 : i32
    %c0_i32_1 = arith.constant 0 : i32
    return %c0_i32, %c0_i32_0 : i32, i32
  }
  func.func @transform_13(%arg0: i32) -> (i32, i32) {
    %c0_i32 = arith.constant 0 : i32
    %c0_i32_0 = arith.constant 0 : i32
    return %arg0, %c0_i32 : i32, i32
  }
}

</mosaic_0001>

<bundles_post_ra>
// kernel: bottleneck_forward_nchw.1
= control target key start
LH: loop header
LB: loop body
LE: loop exit
PB: predicated region body
PF: predicated region fallthrough
CT: control target
= control target key end

     0   :  { %s4778_s25 = smov 0   ;;  %s6216_s0 = inlined_call_operand.vmem [shape: bf16[512,128], index: 0, kind: input, shape index: {}]   ;;  %s6217_s1 = inlined_call_operand.vmem [shape: bf16[128,128], index: 1, kind: input, shape index: {}]   ;;  %s6218_s2 = inlined_call_operand.vmem [shape: f32[1,128], index: 2, kind: input, shape index: {}]   ;;  %s6219_s3 = inlined_call_operand.vmem [shape: f32[1,128], index: 3, kind: input, shape index: {}]   ;;  %s6220_s4 = inlined_call_operand.vmem [shape: bf16[1152,128], index: 4, kind: input, shape index: {}]   ;;  %s6221_s5 = inlined_call_operand.vmem [shape: f32[1,128], index: 5, kind: input, shape index: {}]   ;;  %s6222_s6 = inlined_call_operand.vmem [shape: f32[1,128], index: 6, kind: input, shape index: {}]   ;;  %s6223_s7 = inlined_call_operand.vmem [shape: bf16[128,128], index: 7, kind: input, shape index: {}]   ;;  %s6224_s8 = inlined_call_operand.vmem [shape: f32[1,128], index: 8, kind: input, shape index: {}]   ;;  %s6225_s9 = inlined_call_operand.vmem [shape: f32[1,128], index: 9, kind: input, shape index: {}]   ;;  %s6226_s10 = inlined_call_operand.vmem [shape: bf16[128,128], index: 10, kind: input, shape index: {}]   ;;  %s6227_s11 = inlined_call_operand.vmem [shape: f32[1,128], index: 11, kind: input, shape index: {}]   ;;  %s6228_s12 = inlined_call_operand.vmem [shape: f32[1,128], index: 12, kind: input, shape index: {}]   ;;  %s6229_s13 = inlined_call_operand.vmem [shape: f32[512,128], index: 13, kind: output, shape index: {}]  }
   0x1 LB: > { %s3693_s26 = sadd.s32 4294967295, %s4704_s25   ;;  %p3697_p0 = scmp.ge.s32.totalorder %s4704_s25, 1  ;;  %s4704_s25 = sphi %s4778_s25, %s23_s25  }
   0x2   : > { %p388_p1 = scmp.lt.s32.totalorder %s4704_s25, 3 }
   0x4   : > { %p389_p2 = pnand %p3697_p0, %p388_p1 }
   0x6   : > { %392 = sbr.rel (%p389_p2) target bundleno = 981 (0x3d5), region = 72 }
   0xb   : > { %v4569_v0 = vld [vmem:[%s6217_s1 + $0x38] sm:$0xff]   ;;  %s3698_s29 = sshll.u32 %s3693_s26, 5  ;;  %v4570_v1 = vld [vmem:[%s6217_s1 + $0x30] sm:$0xff]   ;;  %v4571_v2 = vld [vmem:[%s6217_s1 + $0x28] sm:$0xff]   ;;  %v4706_v40 = vmov 0.0   ;;  %v4707_v54 = vmov 0.0|0.0  }
   0xc   : > { %p433_p3 = scmp.lt.s32.totalorder %s3698_s29, 63  ;;  %4368 = vmatprep.subr.bf16.mxu0 %v4569_v0  ;;  %v4572_v3 = vld [vmem:[%s6217_s1 + $0x20] sm:$0xff]   ;;  %v4573_v5 = vld [vmem:[%s6217_s1 + $0x18] sm:$0xff]   ;;  %v4574_v6 = vld [vmem:[%s6217_s1 + $0x10] sm:$0xff]   ;;  %914 = vst [vmem:[#allocation2 + $0x30] sm:$0xff] %v4706_v40 }
   0xd   : > { %4369 = vmatpush3.bf16.msra.mxu0 %v4569_v0  ;;  %v4575_v7 = vld [vmem:[%s6217_s1 + $0x8] sm:$0xff]   ;;  %v4576_v8 = vld [vmem:[%s6217_s1] sm:$0xff]   ;;  %v4593_v9 = vld [vmem:[%s6220_s4 + $0x78] sm:$0xff]   ;;  %915 = vst [vmem:[#allocation2 + $0x38] sm:$0xff] %v4706_v40 }
   0xe   : > { %s6283_s29 = smov (!%p433_p3, %s3698_s29), 63  ;;  %4370 = vmatprep.subr.bf16.mxu0 %v4570_v1  ;;  %v4594_v10 = vld [vmem:[%s6220_s4 + $0x38] sm:$0xff]   ;;  %3848 = vmatprep.subr.bf16.mxu1 %v4593_v9  ;;  %v4595_v11 = vld [vmem:[%s6220_s4 + $0x70] sm:$0xff]   ;;  %v4597_v14 = vld [vmem:[%s6220_s4 + $0x68] sm:$0xff]   ;;  %908 = vst [vmem:[#allocation2] sm:$0xff] %v4706_v40 }
   0xf   : > { %s3699_s17 = sshll.u32 %s6283_s29, 2  ;;  %3849 = vmatpush3.bf16.msra.mxu1 %v4594_v10  ;;  %v4596_v12 = vld [vmem:[%s6220_s4 + $0x30] sm:$0xff]   ;;  %v4598_v16 = vld [vmem:[%s6220_s4 + $0x28] sm:$0xff]   ;;  %v4599_v17 = vld [vmem:[%s6220_s4 + $0x60] sm:$0xff]   ;;  %909 = vst [vmem:[#allocation2 + $0x8] sm:$0xff] %v4706_v40  ;;  %s3701_s27 = sshll.u32 %s6283_s29, 3 }
  0x10   : > { %s4801_s20 = scalar_lea.vmem %s6216_s0, %s3699_s17  ;;  %3850 = vmatprep.subr.bf16.mxu1 %v4595_v11  ;;  %v4601_v18 = vld [vmem:[%s6220_s4 + $0xf8] sm:$0xff]   ;;  %v4600_v20 = vld [vmem:[%s6220_s4 + $0x20] sm:$0xff]   ;;  %v4605_v23 = vld [vmem:[%s6220_s4 + $0xf0] sm:$0xff]   ;;  %910 = vst [vmem:[#allocation2 + $0x10] sm:$0x3] %v4706_v40  ;;  %s6036_s29 = scalar_lea.vmem %s6229_s13, %s3701_s27 }
  0x11   : > { %4371 = vmatpush3.bf16.msra.mxu0 %v4570_v1  ;;  %v4577_v4 = vld [vmem:[%s4801_s20] sm:$0xff]   ;;  %v4578_v13 = vld [vmem:[%s4801_s20 + $0x8] sm:$0xff]   ;;  %v4579_v15 = vld [vmem:[%s4801_s20 + $0x10] sm:$0xff]   ;;  %911 = vst [vmem:[#allocation2 + $0x18] sm:$0xff] %v4706_v40 }
  0x12   : > { %4372 = vmatprep.subr.bf16.mxu0 %v4571_v2  ;;  %4384 = vmatprep.mubr.bf16.mxu0 %v4577_v4  ;;  %v4602_v19 = vld [vmem:[%s6220_s4 + $0xb8] sm:$0xff]   ;;  %v4581_v24 = vld [vmem:[%s4801_s20 + $0x20] sm:$0xff]   ;;  %v4606_v25 = vld [vmem:[%s6220_s4 + $0xb0] sm:$0xff]   ;;  %912 = vst [vmem:[#allocation2 + $0x20] sm:$0xff] %v4706_v40 }
  0x13   : > { %3851 = vmatpush3.bf16.msra.mxu1 %v4596_v12  ;;  %v4603_v21 = vld [vmem:[%s6220_s4 + $0x58] sm:$0xff]   ;;  %v4607_v27 = vld [vmem:[%s6220_s4 + $0x50] sm:$0xff]   ;;  %v4582_v29 = vld [vmem:[%s4801_s20 + $0x28] sm:$0xff]   ;;  %913 = vst [vmem:[#allocation2 + $0x28] sm:$0x3] %v4706_v40 }
  0x14   : > { %3852 = vmatprep.subr.bf16.mxu1 %v4597_v14  ;;  %v4580_v22 = vld [vmem:[%s4801_s20 + $0x18] sm:$0xff]   ;;  %v4608_v28 = vld [vmem:[%s6220_s4 + $0x10] sm:$0xff]   ;;  %v4585_v32 = vld [vmem:[%s4801_s20 + $0x40] sm:$0xff]   ;;  %916 = vst [vmem:[#allocation2 + $0x40] sm:$0x3] %v4706_v40 }
  0x15   : > { %4373 = vmatpush3.bf16.msra.mxu0 %v4571_v2  ;;  %v4604_v26 = vld [vmem:[%s6220_s4 + $0x18] sm:$0xff]   ;;  %v4583_v30 = vld [vmem:[%s4801_s20 + $0x30] sm:$0xff]   ;;  %v4586_v33 = vld [vmem:[%s4801_s20 + $0x48] sm:$0xff]   ;;  %917 = vst [vmem:[#allocation2 + $0x48] sm:$0xff] %v4706_v40 }
  0x16   : > { %4374 = vmatprep.subr.bf16.mxu0 %v4572_v3  ;;  %v4584_v31 = vld [vmem:[%s4801_s20 + $0x38] sm:$0xff]   ;;  %v4587_v34 = vld [vmem:[%s4801_s20 + $0x50] sm:$0xff]   ;;  %v4589_v36 = vld [vmem:[%s4801_s20 + $0x60] sm:$0xff]   ;;  %918 = vst [vmem:[#allocation2 + $0x50] sm:$0xff] %v4706_v40 }
  0x17   : > { %3853 = vmatpush3.bf16.msra.mxu1 %v4598_v16  ;;  %v4588_v35 = vld [vmem:[%s4801_s20 + $0x58] sm:$0xff]   ;;  %v4590_v37 = vld [vmem:[%s4801_s20 + $0x68] sm:$0xff]   ;;  %v4591_v38 = vld [vmem:[%s4801_s20 + $0x70] sm:$0xff]   ;;  %919 = vst [vmem:[#allocation2 + $0x58] sm:$0x3] %v4706_v40 }
  0x18   : > { %3854 = vmatprep.subr.bf16.mxu1 %v4599_v17  ;;  %v4592_v39 = vld [vmem:[%s4801_s20 + $0x78] sm:$0xff]   ;;  %920 = vst [vmem:[#allocation2 + $0x60] sm:$0xff] %v4706_v40  ;;  %921 = vst [vmem:[#allocation2 + $0x68] sm:$0xff] %v4706_v40  ;;  %v4609_v41 = vld [vmem:[%s6220_s4 + $0xe8] sm:$0xff]  }
  0x19   : > { %4375 = vmatpush3.bf16.msra.mxu0 %v4572_v3  ;;  %922 = vst [vmem:[#allocation2 + $0x70] sm:$0x3] %v4706_v40  ;;  %923 = vst [vmem:[#allocation2 + $0x78] sm:$0xff] %v4706_v40  ;;  %v4610_v42 = vld [vmem:[%s6220_s4 + $0xa8] sm:$0xff]   ;;  %v4613_v45 = vld [vmem:[%s6220_s4 + $0xe0] sm:$0xff]  }
  0x1a   : > { %4376 = vmatprep.subr.bf16.mxu0 %v4573_v5  ;;  %924 = vst [vmem:[#allocation2 + $0x80] sm:$0xff] %v4706_v40  ;;  %925 = vst [vmem:[#allocation2 + $0x88] sm:$0x3] %v4706_v40  ;;  %v4611_v43 = vld [vmem:[%s6220_s4 + $0x48] sm:$0xff]   ;;  %v4614_v46 = vld [vmem:[%s6220_s4 + $0xa0] sm:$0xff]  }
  0x1b   : > { %3855 = vmatpush3.bf16.msra.mxu1 %v4600_v20  ;;  %926 = vst [vmem:[#allocation2 + $0x90] sm:$0xff] %v4706_v40  ;;  %927 = vst [vmem:[#allocation2 + $0x98] sm:$0xff] %v4706_v40  ;;  %v4612_v44 = vld [vmem:[%s6220_s4 + $0x8] sm:$0xff]   ;;  %v4615_v47 = vld [vmem:[%s6220_s4 + $0x40] sm:$0xff]  }
  0x1c   : > { %3856 = vmatprep.subr.bf16.mxu1 %v4603_v21  ;;  %928 = vst [vmem:[#allocation2 + $0xa0] sm:$0x3] %v4706_v40  ;;  %929 = vst [vmem:[#allocation2 + $0xa8] sm:$0xff] %v4706_v40  ;;  %v4616_v48 = vld [vmem:[%s6220_s4] sm:$0xff]   ;;  %v1028_v50 = vld [vmem:[#allocation2 + $0x9] sm:$0xff] }
  0x1d   : > { %4377 = vmatpush3.bf16.msra.mxu0 %v4573_v5  ;;  %930 = vst [vmem:[#allocation2 + $0xb0] sm:$0xff] %v4706_v40  ;;  %931 = vst [vmem:[#allocation2 + $0xb8] sm:$0x3] %v4706_v40  ;;  %v1027_v49 = vld [vmem:[#allocation2 + $0x1] sm:$0xff]  ;;  %v4617_v51 = vld [vmem:[%s6220_s4 + $0xd8] sm:$0xff]  }
  0x1e   : > { %4378 = vmatprep.subr.bf16.mxu0 %v4574_v6  ;;  %932 = vst [vmem:[#allocation2 + $0xc0] sm:$0xff] %v4706_v40  ;;  %933 = vst [vmem:[#allocation2 + $0xc8] sm:$0xff] %v4706_v40  ;;  %v1285_v52 = vpack.c.bf16 %v1028_v50, %v1027_v49  ;;  %v4618_v53 = vld [vmem:[%s6220_s4 + $0x98] sm:$0xff]   ;;  %v4619_v55 = vld [vmem:[%s6220_s4 + $0xd0] sm:$0xff]  }
  0x1f   : > { %3857 = vmatpush3.bf16.msra.mxu1 %v4604_v26  ;;  %934 = vst [vmem:[#allocation2 + $0xd0] sm:$0x3] %v4706_v40  ;;  %935 = vst [vmem:[#allocation2 + $0xd8] sm:$0xff] %v4706_v40  ;;  %v4620_v56 = vld [vmem:[%s6220_s4 + $0x90] sm:$0xff]   ;;  %v4622_v57 = vld [vmem:[%s6220_s4 + $0xc8] sm:$0xff]  }
  0x20   : > { %3858 = vmatprep.subr.bf16.mxu1 %v4607_v27  ;;  %936 = vst [vmem:[#allocation2 + $0xe0] sm:$0xff] %v4706_v40  ;;  %937 = vst [vmem:[#allocation2 + $0xe8] sm:$0x3] %v4706_v40  ;;  %2036 = vmatprep.mubr.bf16.mxu1 %v1285_v52  ;;  %v4624_v58 = vld [vmem:[%s6220_s4 + $0x88] sm:$0xff]   ;;  %v4625_v59 = vld [vmem:[%s6220_s4 + $0xc0] sm:$0xff]  }
  0x21   : > { %4379 = vmatpush3.bf16.msra.mxu0 %v4574_v6  ;;  %938 = vst [vmem:[#allocation2 + $0xf0] sm:$0xff] %v4706_v40  ;;  %939 = vst [vmem:[#allocation2 + $0xf8] sm:$0xff] %v4706_v40  ;;  %v4621_v60 = vld [vmem:[%s6220_s4 + $0x178] sm:$0xff]   ;;  %v4626_v61 = vld [vmem:[%s6220_s4 + $0x80] sm:$0xff]  }
  0x22   : > { %4380 = vmatprep.subr.bf16.mxu0 %v4575_v7  ;;  %940 = vst [vmem:[#allocation2 + $0x100] sm:$0x3] %v4706_v40  ;;  %941 = vst [vmem:[#allocation2 + $0x108] sm:$0xff] %v4706_v40  ;;  %v4623_v62 = vld [vmem:[%s6220_s4 + $0x138] sm:$0xff]   ;;  %v4627_v63 = vld [vmem:[%s6220_s4 + $0x170] sm:$0xff]  }
  0x23   : > { %3859 = vmatpush3.bf16.msra.mxu1 %v4608_v28  ;;  %942 = vst [vmem:[#allocation2 + $0x110] sm:$0xff] %v4706_v40  ;;  %943 = vst [vmem:[#allocation2 + $0x118] sm:$0x3] %v4706_v40  ;;  %v4628_v0 = vld [vmem:[%s6220_s4 + $0x130] sm:$0xff]   ;;  %v4629_v1 = vld [vmem:[%s6220_s4 + $0x168] sm:$0xff]  }
  0x24   : > { %944 = vst [vmem:[#allocation2 + $0x120] sm:$0xff] %v4706_v40  ;;  %945 = vst [vmem:[#allocation2 + $0x128] sm:$0xff] %v4706_v40  ;;  %3860 = vmatprep.subr.bf16.mxu1 %v4611_v43  ;;  %v4630_v2 = vld [vmem:[%s6220_s4 + $0x128] sm:$0xff]   ;;  %v4631_v3 = vld [vmem:[%s6220_s4 + $0x160] sm:$0xff]  }
  0x25   : > { %4381 = vmatpush3.bf16.msra.mxu0 %v4575_v7  ;;  %946 = vst [vmem:[#allocation2 + $0x130] sm:$0x3] %v4706_v40  ;;  %947 = vst [vmem:[#allocation2 + $0x138] sm:$0xff] %v4706_v40  ;;  %v4632_v4 = vld [vmem:[%s6220_s4 + $0x120] sm:$0xff]   ;;  %v4633_v5 = vld [vmem:[%s6220_s4 + $0x1f8] sm:$0xff]  }
  0x26   : > { %4382 = vmatprep.subr.bf16.mxu0 %v4576_v8  ;;  %948 = vst [vmem:[#allocation2 + $0x140] sm:$0xff] %v4706_v40  ;;  %949 = vst [vmem:[#allocation2 + $0x148] sm:$0x3] %v4706_v40  ;;  %v4635_v6 = vld [vmem:[%s6220_s4 + $0x158] sm:$0xff]   ;;  %v4640_v9 = vld [vmem:[%s6220_s4 + $0x110] sm:$0xff]  }
  0x27   : > { %950 = vst [vmem:[#allocation2 + $0x150] sm:$0xff] %v4706_v40  ;;  %951 = vst [vmem:[#allocation2 + $0x158] sm:$0xff] %v4706_v40  ;;  %3861 = vmatpush3.bf16.msra.mxu1 %v4612_v44  ;;  %v4636_v7 = vld [vmem:[%s6220_s4 + $0x118] sm:$0xff]   ;;  %v4643_v10 = vld [vmem:[%s6220_s4 + $0x148] sm:$0xff]  }
  0x28   : > { %952 = vst [vmem:[#allocation2 + $0x160] sm:$0x3] %v4706_v40  ;;  %953 = vst [vmem:[#allocation2 + $0x168] sm:$0xff] %v4706_v40  ;;  %3862 = vmatprep.subr.bf16.mxu1 %v4615_v47  ;;  %v4644_v11 = vld [vmem:[%s6220_s4 + $0x108] sm:$0xff]   ;;  %v4647_v12 = vld [vmem:[%s6220_s4 + $0x140] sm:$0xff]  }
  0x29   : > { %4383 = vmatpush3.bf16.msra.mxu0 %v4576_v8  ;;  %954 = vst [vmem:[#allocation2 + $0x170] sm:$0xff] %v4706_v40  ;;  %955 = vst [vmem:[#allocation2 + $0x178] sm:$0x3] %v4706_v40  ;;  %v4639_v8 = vld [vmem:[%s6220_s4 + $0x150] sm:$0xff]   ;;  %v4648_v16 = vld [vmem:[%s6220_s4 + $0x100] sm:$0xff]  }
  0x2a   : > { %3960 = vmatprep.subr.bf16.mxu0 %v4601_v18  ;;  %956 = vst [vmem:[#allocation2 + $0x180] sm:$0xff] %v4706_v40  ;;  %957 = vst [vmem:[#allocation2 + $0x188] sm:$0xff] %v4706_v40  ;;  %v1059_v50 = vld [vmem:[#allocation2 + $0x2] sm:$0xff] }
  0x2b   : > { %958 = vst [vmem:[#allocation2 + $0x190] sm:$0x3] %v4706_v40  ;;  %959 = vst [vmem:[#allocation2 + $0x198] sm:$0xff] %v4706_v40  ;;  %3863 = vmatpush3.bf16.msra.mxu1 %v4616_v48 }
  0x2c   : > { %4385 = vmatmul.mubr.bf16.vlgmr.msra.gmra.mxu0 %v4578_v13  ;;  %960 = vst [vmem:[#allocation2 + $0x1a0] sm:$0xff] %v4706_v40  ;;  %961 = vst [vmem:[#allocation2 + $0x1a8] sm:$0x3] %v4706_v40  ;;  %4072 = vmatprep.subr.bf16.mxu1 %v4621_v60  ;;  %v4981_v13 = vld [vmem:[%s6218_s2] ss:$0 sm:$0xff] }
  0x2d   : > { %4388 = vmatprep.mubr.bf16.mxu0 %v4579_v15  ;;  %3961 = vmatpush3.bf16.msra.mxu0 %v4602_v19  ;;  %v4986_v15 = vld [vmem:[%s6219_s3] ss:$0 sm:$0xff] }
  0x2e   : > { %3962 = vmatprep.subr.bf16.mxu0 %v4605_v23  ;;  %2037 = vmatmul.mubr.bf16.vlgmr.msra.gmra.mxu1 %v4707_v54 }
  0x2f   : > { %4073 = vmatpush3.bf16.msra.mxu1 %v4623_v62 }
  0x30   : > { %4074 = vmatprep.subr.bf16.mxu1 %v4627_v63 }
  0x31   : > { %3963 = vmatpush3.bf16.msra.mxu0 %v4606_v25 }
  0x32   : > { %3964 = vmatprep.subr.bf16.mxu0 %v4609_v41 }
  0x33   : > { %4075 = vmatpush3.bf16.msra.mxu1 %v4628_v0 }
  0x34   : > { %4389 = vmatmul.mubr.bf16.gmra.mxu0 %v4580_v22  ;;  %4076 = vmatprep.subr.bf16.mxu1 %v4629_v1 }
  0x35   : > { %4392 = vmatprep.mubr.bf16.mxu0 %v4581_v24  ;;  %3965 = vmatpush3.bf16.msra.mxu0 %v4610_v42 }
  0x36   : > { %3966 = vmatprep.subr.bf16.mxu0 %v4613_v45 }
  0x37   : > { %4077 = vmatpush3.bf16.msra.mxu1 %v4630_v2  ;;  %v4634_v2 = vld [vmem:[%s6220_s4 + $0x1b8] sm:$0xff]  }
  0x38   : > { %4078 = vmatprep.subr.bf16.mxu1 %v4631_v3 }
  0x39   : > { %3967 = vmatpush3.bf16.msra.mxu0 %v4614_v46 }
  0x3a   : > { %3968 = vmatprep.subr.bf16.mxu0 %v4617_v51  ;;  %v1060_v51 = vld [vmem:[#allocation2 + $0xa] sm:$0xff] }
  0x3b   : > { %4079 = vmatpush3.bf16.msra.mxu1 %v4632_v4 }
  0x3c   : > { %4393 = vmatmul.mubr.bf16.gmra.mxu0 %v4582_v29  ;;  %4080 = vmatprep.subr.bf16.mxu1 %v4635_v6  ;;  %v4637_v6 = vld [vmem:[%s6220_s4 + $0x1f0] sm:$0xff]  }
  0x3d   : > { %4396 = vmatprep.mubr.bf16.mxu0 %v4583_v30  ;;  %3969 = vmatpush3.bf16.msra.mxu0 %v4618_v53 }
  0x3e   : > { %3970 = vmatprep.subr.bf16.mxu0 %v4619_v55 }
  0x3f   : > { %4081 = vmatpush3.bf16.msra.mxu1 %v4636_v7 }
  0x40   : > { %4082 = vmatprep.subr.bf16.mxu1 %v4639_v8 }
  0x41   : > { %3971 = vmatpush3.bf16.msra.mxu0 %v4620_v56 }
  0x42   : > { %3972 = vmatprep.subr.bf16.mxu0 %v4622_v57 }
  0x43   : > { %4083 = vmatpush3.bf16.msra.mxu1 %v4640_v9 }
  0x44   : > { %4397 = vmatmul.mubr.bf16.gmra.mxu0 %v4584_v31  ;;  %4084 = vmatprep.subr.bf16.mxu1 %v4643_v10 }
  0x45   : > { %4400 = vmatprep.mubr.bf16.mxu0 %v4585_v32  ;;  %3973 = vmatpush3.bf16.msra.mxu0 %v4624_v58 }
  0x46   : > { %3974 = vmatprep.subr.bf16.mxu0 %v4625_v59  ;;  %v1286_v59 = vpack.c.bf16 %v1060_v51, %v1059_v50  ;;  %v4649_v51 = vld [vmem:[%s6220_s4 + $0x1d8] sm:$0xff]  }
  0x47   : > { %4085 = vmatpush3.bf16.msra.mxu1 %v4644_v11 }
  0x48   : > { %4086 = vmatprep.subr.bf16.mxu1 %v4647_v12 }
  0x49   : > { %3975 = vmatpush3.bf16.msra.mxu0 %v4626_v61 }
  0x4a   : > { %4184 = vmatprep.subr.bf16.mxu0 %v4633_v5 }
  0x4b   : > { %4087 = vmatpush3.bf16.msra.mxu1 %v4648_v16 }
  0x4c   : > { %4401 = vmatmul.mubr.bf16.gmra.mxu0 %v4586_v33  ;;  %v5003_v33 = vld [vmem:[%s6220_s4 + $0x238] sm:$0xff]  }
  0x4d   : > { %4404 = vmatprep.mubr.bf16.mxu0 %v4587_v34  ;;  %4416 = vmatprep.subr.bf16.mxu1 %v5003_v33 }
  0x54   : > { %4405 = vmatmul.mubr.bf16.gmra.mxu0 %v4588_v35 }
  0x55   : > { %4408 = vmatprep.mubr.bf16.mxu0 %v4589_v36 }
  0x5c   : > { %4409 = vmatmul.mubr.bf16.gmra.mxu0 %v4590_v37 }
  0x5d   : > { %4412 = vmatprep.mubr.bf16.mxu0 %v4591_v38 }
  0x64   : > { %4413 = vmatmul.mubr.bf16.gmra.mxu0 %v4592_v39 }
  0xec   : > { %v4386_v14 = vpop.f32.mrf.mxu0 }
  0xed   : > { %v807_v17 = vmul.f32 %v4386_v14, %v4981_v13 }
  0xee   : > { %v671_v18 = vpop.f32.mrf.mxu0 }
  0xef   : > { %v846_v19 = vadd.f32 %v4986_v15, %v807_v17  ;;  %v805_v20 = vmul.f32 %v4981_v13, %v671_v18  ;;  %v4638_v17 = vld [vmem:[%s6220_s4 + $0x1b0] sm:$0xff]  }
  0xf0   : > { %v4387_v21 = vpop.f32.mrf.mxu0 }
  0xf1   : > { %v878_v22 = vmax.f32 %v846_v19, 0.0  ;;  %v844_v23 = vadd.f32 %v4986_v15, %v805_v20  ;;  %v808_v24 = vmul.f32 %v4387_v21, %v4981_v13  ;;  %v4641_v20 = vld [vmem:[%s6220_s4 + $0x1e8] sm:$0xff]  }
  0xf2   : > { %v674_v25 = vpop.f32.mrf.mxu0 }
  0xf3   : > { %965 = vst [vmem:[#allocation2 + $0x31] sm:$0xff] %v878_v22  ;;  %v876_v26 = vmax.f32 %v844_v23, 0.0  ;;  %v847_v27 = vadd.f32 %v4986_v15, %v808_v24  ;;  %v806_v28 = vmul.f32 %v4981_v13, %v674_v25 }
  0xf4   : > { %v4390_v29 = vpop.f32.mrf.mxu0 }
  0xf5   : > { %963 = vst [vmem:[#allocation2 + $0x19] sm:$0xff] %v876_v26  ;;  %v879_v30 = vmax.f32 %v847_v27, 0.0  ;;  %v845_v31 = vadd.f32 %v4986_v15, %v806_v28  ;;  %v811_v32 = vmul.f32 %v4390_v29, %v4981_v13 }
  0xf6   : > { %v687_v34 = vpop.f32.mrf.mxu0 }
  0xf7   : > { %966 = vst [vmem:[#allocation2 + $0x39] sm:$0xff] %v879_v30  ;;  %v877_v35 = vmax.f32 %v845_v31, 0.0  ;;  %v5006_v36 = vadd.f32 %v4986_v15, %v811_v32  ;;  %v809_v37 = vmul.f32 %v4981_v13, %v687_v34  ;;  %v1303_v3 = vpack.c.bf16 %v879_v30, %v878_v22  ;;  %v4642_v32 = vld [vmem:[%s6220_s4 + $0x1a8] sm:$0xff]  }
  0xf8   : > { %v4391_v38 = vpop.f32.mrf.mxu0 }
  0xf9   : > { %964 = vst [vmem:[#allocation2 + $0x21] sm:$0xff] %v877_v35  ;;  %v882_v39 = vmax.f32 %v5006_v36, 0.0  ;;  %v5012_v40 = vadd.f32 %v4986_v15, %v809_v37  ;;  %v812_v41 = vmul.f32 %v4391_v38, %v4981_v13  ;;  %v1294_v42 = vpack.c.bf16 %v877_v35, %v876_v26  ;;  %v4645_v38 = vld [vmem:[%s6220_s4 + $0x1e0] sm:$0xff]  }
  0xfa   : > { %v690_v43 = vpop.f32.mrf.mxu0  ;;  %v1093_v4 = vld [vmem:[#allocation2 + $0x30] sm:$0xff] }
  0xfb   : > { %969 = vst [vmem:[#allocation2 + $0x61] sm:$0xff] %v882_v39  ;;  %v880_v44 = vmax.f32 %v5012_v40, 0.0  ;;  %v5019_v45 = vadd.f32 %v4986_v15, %v812_v41  ;;  %v810_v46 = vmul.f32 %v4981_v13, %v690_v43  ;;  %2044 = vmatprep.mubr.bf16.mxu1 %v1294_v42 }
  0xfc   : > { %v4394_v47 = vpop.f32.mrf.mxu0  ;;  %v1091_v57 = vld [vmem:[#allocation2 + $0x18] sm:$0xff] }
  0xfd   : > { %967 = vst [vmem:[#allocation2 + $0x49] sm:$0xff] %v880_v44  ;;  %v883_v48 = vmax.f32 %v5019_v45, 0.0  ;;  %v849_v49 = vadd.f32 %v4986_v15, %v810_v46  ;;  %v815_v52 = vmul.f32 %v4394_v47, %v4981_v13 }
  0xfe   : > { %v703_v53 = vpop.f32.mrf.mxu0  ;;  %v1094_v60 = vld [vmem:[#allocation2 + $0x38] sm:$0xff] }
  0xff   : > { %970 = vst [vmem:[#allocation2 + $0x69] sm:$0xff] %v883_v48  ;;  %v881_v54 = vmax.f32 %v849_v49, 0.0  ;;  %v5030_v55 = vadd.f32 %v4986_v15, %v815_v52  ;;  %v813_v56 = vmul.f32 %v4981_v13, %v703_v53  ;;  %v5044_v7 = vpack.c.bf16 %v1094_v60, %v1093_v4  ;;  %v4646_v49 = vld [vmem:[%s6220_s4 + $0x1a0] sm:$0xff]   ;;  %v1063_v52 = vld [vmem:[#allocation2 + $0x32] sm:$0xff] }
 0x100   : > { %v1092_v58 = vld [vmem:[#allocation2 + $0x20] sm:$0xff]  ;;  %v4395_v61 = vpop.f32.mrf.mxu0  ;;  %v1321_v4 = vpack.c.bf16 %v883_v48, %v882_v39 }
 0x101   : > { %968 = vst [vmem:[#allocation2 + $0x51] sm:$0xff] %v881_v54  ;;  %v1287_v62 = vpack.c.bf16 %v1092_v58, %v1091_v57  ;;  %v886_v63 = vmax.f32 %v5030_v55, 0.0  ;;  %v5035_v0 = vadd.f32 %v4986_v15, %v813_v56  ;;  %v816_v1 = vmul.f32 %v4395_v61, %v4981_v13  ;;  %v1061_v22 = vld [vmem:[#allocation2 + $0x1a] sm:$0xff]  ;;  %v1062_v23 = vld [vmem:[#allocation2 + $0x22] sm:$0xff] }
 0x102   : > { %v706_v5 = vpop.f32.mrf.mxu0  ;;  %v5084_v34 = vpack.c.bf16 %v1062_v23, %v1061_v22  ;;  %v1312_v35 = vpack.c.bf16 %v881_v54, %v880_v44  ;;  %v1064_v53 = vld [vmem:[#allocation2 + $0x3a] sm:$0xff]  ;;  %v4654_v22 = vld [vmem:[%s6220_s4 + $0x1c8] sm:$0xff]  }
 0x103   : > { %2197 = vmatprep.mubr.bf16.mxu0 %v1287_v62  ;;  %2045 = vmatmul.mubr.bf16.gmra.mxu1 %v1287_v62  ;;  %973 = vst [vmem:[#allocation2 + $0x91] sm:$0xff] %v886_v63  ;;  %v884_v8 = vmax.f32 %v5035_v0, 0.0  ;;  %v5050_v9 = vadd.f32 %v4986_v15, %v816_v1  ;;  %v814_v10 = vmul.f32 %v4981_v13, %v706_v5  ;;  %v1097_v58 = vld [vmem:[#allocation2 + $0x60] sm:$0xff] }
 0x104   : > { %2198 = vmatmul.mubr.bf16.vlgmr.msra.gmra.mxu0 %v1286_v59  ;;  %2052 = vmatprep.mubr.bf16.mxu1 %v1303_v3  ;;  %v4398_v11 = vpop.f32.mrf.mxu0  ;;  %v1095_v18 = vld [vmem:[#allocation2 + $0x48] sm:$0xff]  ;;  %v5131_v3 = vpack.c.bf16 %v1064_v53, %v1063_v52 }
 0x105   : > { %2205 = vmatprep.mubr.bf16.mxu0 %v5044_v7  ;;  %971 = vst [vmem:[#allocation2 + $0x79] sm:$0xff] %v884_v8  ;;  %v887_v12 = vmax.f32 %v5050_v9, 0.0  ;;  %v853_v14 = vadd.f32 %v4986_v15, %v814_v10  ;;  %v819_v16 = vmul.f32 %v4398_v11, %v4981_v13  ;;  %4185 = vmatpush3.bf16.msra.mxu0 %v4634_v2  ;;  %v4650_v2 = vld [vmem:[%s6220_s4 + $0x198] sm:$0xff]  }
 0x106   : > { %v719_v19 = vpop.f32.mrf.mxu0  ;;  %4186 = vmatprep.subr.bf16.mxu0 %v4637_v6  ;;  %v1098_v59 = vld [vmem:[#allocation2 + $0x68] sm:$0xff]  ;;  %v4651_v6 = vld [vmem:[%s6220_s4 + $0x1d0] sm:$0xff]  }
 0x107   : > { %974 = vst [vmem:[#allocation2 + $0x99] sm:$0xff] %v887_v12  ;;  %v5067_v21 = vmax.f32 %v853_v14, 0.0  ;;  %v5070_v24 = vadd.f32 %v4986_v15, %v819_v16  ;;  %v817_v25 = vmul.f32 %v4981_v13, %v719_v19  ;;  %v5141_v10 = vpack.c.bf16 %v1098_v59, %v1097_v58 }
 0x108   : > { %v1096_v26 = vld [vmem:[#allocation2 + $0x50] sm:$0xff]  ;;  %v4399_v27 = vpop.f32.mrf.mxu0 }
 0x109   : > { %972 = vst [vmem:[#allocation2 + $0x81] sm:$0xff] %v5067_v21  ;;  %v5074_v28 = vpack.c.bf16 %v1096_v26, %v1095_v18  ;;  %v890_v29 = vmax.f32 %v5070_v24, 0.0  ;;  %v5078_v30 = vadd.f32 %v4986_v15, %v817_v25  ;;  %v820_v31 = vmul.f32 %v4399_v27, %v4981_v13  ;;  %4187 = vmatpush3.bf16.msra.mxu0 %v4638_v17  ;;  %v4652_v17 = vld [vmem:[%s6220_s4 + $0x190] sm:$0xff]  }
 0x10a   : > { %v722_v37 = vpop.f32.mrf.mxu0  ;;  %4188 = vmatprep.subr.bf16.mxu0 %v4641_v20  ;;  %v1065_v23 = vld [vmem:[#allocation2 + $0x4a] sm:$0xff]  ;;  %v1066_v25 = vld [vmem:[#allocation2 + $0x52] sm:$0xff] }
 0x10b   : > { %2053 = vmatmul.mubr.bf16.gmra.mxu1 %v5044_v7  ;;  %977 = vst [vmem:[#allocation2 + $0xc1] sm:$0xff] %v890_v29  ;;  %v888_v41 = vmax.f32 %v5078_v30, 0.0  ;;  %v5096_v42 = vadd.f32 %v4986_v15, %v820_v31  ;;  %v818_v43 = vmul.f32 %v4981_v13, %v722_v37 }
 0x10c   : > { %2206 = vmatmul.mubr.bf16.gmra.mxu0 %v5084_v34  ;;  %2060 = vmatprep.mubr.bf16.mxu1 %v1312_v35  ;;  %v4402_v40 = vpop.f32.mrf.mxu0  ;;  %v1099_v18 = vld [vmem:[#allocation2 + $0x78] sm:$0xff] }
 0x10d   : > { %2213 = vmatprep.mubr.bf16.mxu0 %v5074_v28  ;;  %975 = vst [vmem:[#allocation2 + $0xa9] sm:$0xff] %v888_v41  ;;  %v891_v44 = vmax.f32 %v5096_v42, 0.0  ;;  %v5105_v46 = vadd.f32 %v4986_v15, %v818_v43  ;;  %v823_v47 = vmul.f32 %v4402_v40, %v4981_v13  ;;  %4189 = vmatpush3.bf16.msra.mxu0 %v4642_v32  ;;  %v4655_v40 = vld [vmem:[%s6220_s4 + $0x188] sm:$0xff]  }
 0x10e   : > { %v735_v50 = vpop.f32.mrf.mxu0  ;;  %4190 = vmatprep.subr.bf16.mxu0 %v4645_v38 }
 0x10f   : > { %978 = vst [vmem:[#allocation2 + $0xc9] sm:$0xff] %v891_v44  ;;  %v889_v54 = vmax.f32 %v5105_v46, 0.0  ;;  %v5118_v56 = vadd.f32 %v4986_v15, %v823_v47  ;;  %v821_v57 = vmul.f32 %v4981_v13, %v735_v50  ;;  %v5182_v47 = vpack.c.bf16 %v1066_v25, %v1065_v23  ;;  %v1071_v46 = vld [vmem:[#allocation2 + $0x92] sm:$0xff] }
 0x110   : > { %v4403_v60 = vpop.f32.mrf.mxu0  ;;  %v1100_v19 = vld [vmem:[#allocation2 + $0x80] sm:$0xff] }
 0x111   : > { %976 = vst [vmem:[#allocation2 + $0xb1] sm:$0xff] %v889_v54  ;;  %v894_v61 = vmax.f32 %v5118_v56, 0.0  ;;  %v5125_v62 = vadd.f32 %v4986_v15, %v821_v57  ;;  %v824_v1 = vmul.f32 %v4403_v60, %v4981_v13  ;;  %4191 = vmatpush3.bf16.msra.mxu0 %v4646_v49  ;;  %v5170_v35 = vpack.c.bf16 %v1100_v19, %v1099_v18  ;;  %v4657_v60 = vld [vmem:[%s6220_s4 + $0x180] sm:$0xff]  }
 0x112   : > { %v738_v5 = vpop.f32.mrf.mxu0  ;;  %4192 = vmatprep.subr.bf16.mxu0 %v4649_v51  ;;  %v1330_v49 = vpack.c.bf16 %v5067_v21, %v884_v8  ;;  %v4656_v51 = vld [vmem:[%s6220_s4 + $0x1c0] sm:$0xff]  }
 0x113   : > { %2061 = vmatmul.mubr.bf16.gmra.mxu1 %v5074_v28  ;;  %981 = vst [vmem:[#allocation2 + $0xf1] sm:$0xff] %v894_v61  ;;  %v892_v11 = vmax.f32 %v5125_v62, 0.0  ;;  %v863_v36 = vadd.f32 %v4986_v15, %v824_v1  ;;  %v822_v45 = vmul.f32 %v4981_v13, %v738_v5 }
 0x114   : > { %2214 = vmatmul.mubr.bf16.gmra.mxu0 %v5131_v3  ;;  %2068 = vmatprep.mubr.bf16.mxu1 %v1321_v4  ;;  %v4406_v39 = vpop.f32.mrf.mxu0  ;;  %v1068_v4 = vld [vmem:[#allocation2 + $0x6a] sm:$0xff] }
 0x115   : > { %2221 = vmatprep.mubr.bf16.mxu0 %v5141_v10  ;;  %979 = vst [vmem:[#allocation2 + $0xd9] sm:$0xff] %v892_v11  ;;  %v5152_v48 = vmax.f32 %v863_v36, 0.0  ;;  %v5155_v14 = vadd.f32 %v4986_v15, %v822_v45  ;;  %v827_v16 = vmul.f32 %v4406_v39, %v4981_v13  ;;  %4193 = vmatpush3.bf16.msra.mxu0 %v4650_v2  ;;  %v1067_v2 = vld [vmem:[#allocation2 + $0x62] sm:$0xff]  ;;  %v1101_v45 = vld [vmem:[#allocation2 + $0x90] sm:$0xff]  ;;  %v1102_v39 = vld [vmem:[#allocation2 + $0x98] sm:$0xff] }
 0x116   : > { %v751_v20 = vpop.f32.mrf.mxu0  ;;  %4194 = vmatprep.subr.bf16.mxu0 %v4651_v6  ;;  %v5229_v25 = vpack.c.bf16 %v1102_v39, %v1101_v45  ;;  %v5264_v39 = vpack.c.bf16 %v889_v54, %v888_v41  ;;  %v1072_v54 = vld [vmem:[#allocation2 + $0x9a] sm:$0xff] }
 0x117   : > { %982 = vst [vmem:[#allocation2 + $0xf9] sm:$0xff] %v5152_v48  ;;  %v893_v26 = vmax.f32 %v5155_v14, 0.0  ;;  %v5167_v27 = vadd.f32 %v4986_v15, %v827_v16  ;;  %v825_v31 = vmul.f32 %v4981_v13, %v751_v20  ;;  %v5222_v20 = vpack.c.bf16 %v1068_v4, %v1067_v2 }
 0x118   : > { %v4407_v32 = vpop.f32.mrf.mxu0  ;;  %v5319_v62 = vpack.c.bf16 %v5152_v48, %v894_v61 }
 0x119   : > { %980 = vst [vmem:[#allocation2 + $0xe1] sm:$0xff] %v893_v26  ;;  %v898_v37 = vmax.f32 %v5167_v27, 0.0  ;;  %v5176_v38 = vadd.f32 %v4986_v15, %v825_v31  ;;  %v828_v43 = vmul.f32 %v4407_v32, %v4981_v13  ;;  %4195 = vmatpush3.bf16.msra.mxu0 %v4652_v17  ;;  %v5308_v42 = vpack.c.bf16 %v893_v26, %v892_v11 }
 0x11a   : > { %v754_v50 = vpop.f32.mrf.mxu0  ;;  %4196 = vmatprep.subr.bf16.mxu0 %v4654_v22  ;;  %v1339_v22 = vpack.c.bf16 %v887_v12, %v886_v63 }
 0x11b   : > { %2069 = vmatmul.mubr.bf16.gmra.mxu1 %v5141_v10  ;;  %985 = vst [vmem:[#allocation2 + $0x121] sm:$0xff] %v898_v37  ;;  %v896_v52 = vmax.f32 %v5176_v38, 0.0  ;;  %v867_v53 = vadd.f32 %v4986_v15, %v828_v43  ;;  %v826_v57 = vmul.f32 %v4981_v13, %v754_v50 }
 0x11c   : > { %2222 = vmatmul.mubr.bf16.gmra.mxu0 %v5182_v47  ;;  %2076 = vmatprep.mubr.bf16.mxu1 %v1330_v49  ;;  %v4410_v0 = vpop.f32.mrf.mxu0  ;;  %v1104_v49 = vld [vmem:[#allocation2 + $0xb0] sm:$0xff] }
 0x11d   : > { %2229 = vmatprep.mubr.bf16.mxu0 %v5170_v35  ;;  %983 = vst [vmem:[#allocation2 + $0x109] sm:$0xff] %v896_v52  ;;  %v5200_v8 = vmax.f32 %v867_v53, 0.0  ;;  %v5203_v58 = vadd.f32 %v4986_v15, %v826_v57  ;;  %v831_v59 = vmul.f32 %v4410_v0, %v4981_v13  ;;  %4197 = vmatpush3.bf16.msra.mxu0 %v4655_v40  ;;  %v1103_v40 = vld [vmem:[#allocation2 + $0xa8] sm:$0xff] }
 0x11e   : > { %v767_v1 = vpop.f32.mrf.mxu0  ;;  %4198 = vmatprep.subr.bf16.mxu0 %v4656_v51  ;;  %v1069_v51 = vld [vmem:[#allocation2 + $0x7a] sm:$0xff]  ;;  %v1070_v53 = vld [vmem:[#allocation2 + $0x82] sm:$0xff] }
 0x11f   : > { %986 = vst [vmem:[#allocation2 + $0x129] sm:$0xff] %v5200_v8  ;;  %v897_v5 = vmax.f32 %v5203_v58, 0.0  ;;  %v5212_v6 = vadd.f32 %v4986_v15, %v831_v59  ;;  %v829_v36 = vmul.f32 %v4981_v13, %v767_v1  ;;  %v5250_v1 = vpack.c.bf16 %v1104_v49, %v1103_v40  ;;  %v3864_v49 = vpop.f32.mrf.mxu1 }
 0x120   : > { %v4411_v16 = vpop.f32.mrf.mxu0  ;;  %v5258_v45 = vpack.c.bf16 %v1070_v53, %v1069_v51  ;;  %v1108_v51 = vld [vmem:[#allocation2 + $0xe0] sm:$0xff]  ;;  %v1073_v53 = vld [vmem:[#allocation2 + $0xaa] sm:$0xff]  ;;  %v5346_v38 = vpack.c.bf16 %v5200_v8, %v898_v37 }
 0x121   : > { %984 = vst [vmem:[#allocation2 + $0x111] sm:$0xff] %v897_v5  ;;  %v902_v17 = vmax.f32 %v5212_v6, 0.0  ;;  %v5219_v18 = vadd.f32 %v4986_v15, %v829_v36  ;;  %v832_v19 = vmul.f32 %v4411_v16, %v4981_v13  ;;  %4199 = vmatpush3.bf16.msra.mxu0 %v4657_v60  ;;  %v5335_v61 = vpack.c.bf16 %v897_v5, %v896_v52 }
 0x122   : > { %v770_v23 = vpop.f32.mrf.mxu0 }
 0x123   : > { %2077 = vmatmul.mubr.bf16.gmra.mxu1 %v5170_v35  ;;  %989 = vst [vmem:[#allocation2 + $0x151] sm:$0xff] %v902_v17  ;;  %v900_v31 = vmax.f32 %v5219_v18, 0.0  ;;  %v871_v32 = vadd.f32 %v4986_v15, %v832_v19  ;;  %v830_v43 = vmul.f32 %v4981_v13, %v770_v23 }
 0x124   : > { %2230 = vmatmul.mubr.bf16.gmra.mxu0 %v5222_v20  ;;  %2084 = vmatprep.mubr.bf16.mxu1 %v1339_v22  ;;  %v4414_v55 = vpop.f32.mrf.mxu0  ;;  %v1111_v14 = vld [vmem:[#allocation2 + $0x108] sm:$0xff] }
 0x125   : > { %2237 = vmatprep.mubr.bf16.mxu0 %v5229_v25  ;;  %987 = vst [vmem:[#allocation2 + $0x139] sm:$0xff] %v900_v31  ;;  %v5240_v63 = vmax.f32 %v871_v32, 0.0  ;;  %v5243_v9 = vadd.f32 %v4986_v15, %v830_v43  ;;  %v835_v12 = vmul.f32 %v4414_v55, %v4981_v13  ;;  %v1105_v43 = vld [vmem:[#allocation2 + $0xc0] sm:$0xff]  ;;  %v1106_v55 = vld [vmem:[#allocation2 + $0xc8] sm:$0xff] }
 0x126   : > { %v783_v50 = vpop.f32.mrf.mxu0  ;;  %v5294_v40 = vpack.c.bf16 %v1106_v55, %v1105_v43  ;;  %v1079_v43 = vld [vmem:[#allocation2 + $0xf2] sm:$0xff]  ;;  %v1080_v55 = vld [vmem:[#allocation2 + $0xfa] sm:$0xff] }
 0x127   : > { %990 = vst [vmem:[#allocation2 + $0x159] sm:$0xff] %v5240_v63  ;;  %v901_v57 = vmax.f32 %v5243_v9, 0.0  ;;  %v874_v0 = vadd.f32 %v4986_v15, %v835_v12  ;;  %v833_v59 = vmul.f32 %v4981_v13, %v783_v50  ;;  %v5287_v12 = vpack.c.bf16 %v1072_v54, %v1071_v46  ;;  %v1107_v50 = vld [vmem:[#allocation2 + $0xd8] sm:$0xff]  ;;  %v1078_v46 = vld [vmem:[#allocation2 + $0xe2] sm:$0xff] }
 0x128   : > { %v4415_v60 = vpop.f32.mrf.mxu0  ;;  %v5300_v24 = vpack.c.bf16 %v1108_v51, %v1107_v50  ;;  %v1112_v26 = vld [vmem:[#allocation2 + $0x110] sm:$0xff]  ;;  %v5341_v50 = vpack.c.bf16 %v1080_v55, %v1079_v43  ;;  %v5373_v18 = vpack.c.bf16 %v5240_v63, %v902_v17 }
 0x129   : > { %988 = vst [vmem:[#allocation2 + $0x141] sm:$0xff] %v901_v57  ;;  %v906_v2 = vmax.f32 %v874_v0, 0.0  ;;  %v5255_v4 = vadd.f32 %v4986_v15, %v833_v59  ;;  %v836_v36 = vmul.f32 %v4415_v60, %v4981_v13  ;;  %v1074_v0 = vld [vmem:[#allocation2 + $0xb2] sm:$0xff]  ;;  %v3865_v59 = vpop.f32.mrf.mxu1  ;;  %v5327_v54 = vpack.c.bf16 %v1112_v26, %v1111_v14  ;;  %v1081_v51 = vld [vmem:[#allocation2 + $0x10a] sm:$0xff] }
 0x12a   : > { %v786_v16 = vpop.f32.mrf.mxu0  ;;  %v5298_v60 = vadd.f32 %v3865_v59, %v3864_v49  ;;  %v1114_v49 = vld [vmem:[#allocation2 + $0x128] sm:$0xff]  ;;  %v5362_v37 = vpack.c.bf16 %v901_v57, %v900_v31 }
 0x12b   : > { %2085 = vmatmul.mubr.bf16.gmra.mxu1 %v5229_v25  ;;  %993 = vst [vmem:[#allocation2 + $0x181] sm:$0xff] %v906_v2  ;;  %v904_v19 = vmax.f32 %v5255_v4, 0.0  ;;  %v875_v22 = vadd.f32 %v4986_v15, %v836_v36  ;;  %v834_v23 = vmul.f32 %v4981_v13, %v786_v16  ;;  %v1109_v36 = vld [vmem:[#allocation2 + $0xf0] sm:$0xff]  ;;  %v1110_v16 = vld [vmem:[#allocation2 + $0xf8] sm:$0xff]  ;;  %v1083_v59 = vld [vmem:[#allocation2 + $0x122] sm:$0xff] }
 0x12c   : > { %2238 = vmatmul.mubr.bf16.gmra.mxu0 %v5258_v45  ;;  %2092 = vmatprep.mubr.bf16.mxu1 %v5264_v39  ;;  %v5322_v11 = vpack.c.bf16 %v1110_v16, %v1109_v36  ;;  %v1115_v58 = vld [vmem:[#allocation2 + $0x138] sm:$0xff] }
 0x12d   : > { %2245 = vmatprep.mubr.bf16.mxu0 %v5250_v1  ;;  %991 = vst [vmem:[#allocation2 + $0x169] sm:$0xff] %v904_v19  ;;  %v5275_v30 = vmax.f32 %v875_v22, 0.0  ;;  %v5278_v41 = vadd.f32 %v4986_v15, %v834_v23  ;;  %v1357_v15 = vpack.c.bf16 %v891_v44, %v890_v29  ;;  %v5302_v29 = vpack.c.bf16 %v1074_v0, %v1073_v53  ;;  %v1075_v44 = vld [vmem:[#allocation2 + $0xc2] sm:$0xff]  ;;  %v1077_v23 = vld [vmem:[#allocation2 + $0xda] sm:$0xff]  ;;  %v1082_v53 = vld [vmem:[#allocation2 + $0x112] sm:$0xff] }
 0x12e   : > { %v5329_v56 = vpack.c.bf16 %v1078_v46, %v1077_v23  ;;  %v5356_v27 = vpack.c.bf16 %v1082_v53, %v1081_v51  ;;  %v1118_v36 = vld [vmem:[#allocation2 + $0x158] sm:$0xff] }
 0x12f   : > { %994 = vst [vmem:[#allocation2 + $0x189] sm:$0xff] %v5275_v30  ;;  %v905_v13 = vmax.f32 %v5278_v41, 0.0  ;;  %v5283_v32 = vpack.c.bf16 %v5275_v30, %v906_v2  ;;  %v1076_v2 = vld [vmem:[#allocation2 + $0xca] sm:$0xff]  ;;  %v1087_v46 = vld [vmem:[#allocation2 + $0x152] sm:$0xff]  ;;  %v1088_v43 = vld [vmem:[#allocation2 + $0x15a] sm:$0xff] }
 0x130   : > { %v5314_v22 = vpack.c.bf16 %v1076_v2, %v1075_v44  ;;  %v1116_v5 = vld [vmem:[#allocation2 + $0x140] sm:$0xff]  ;;  %v1084_v44 = vld [vmem:[#allocation2 + $0x12a] sm:$0xff] }
 0x131   : > { %992 = vst [vmem:[#allocation2 + $0x171] sm:$0xff] %v905_v13  ;;  %v5354_v0 = vpack.c.bf16 %v1116_v5, %v1115_v58  ;;  %v1117_v2 = vld [vmem:[#allocation2 + $0x150] sm:$0xff]  ;;  %v5368_v16 = vpack.c.bf16 %v1084_v44, %v1083_v59  ;;  %v1085_v14 = vld [vmem:[#allocation2 + $0x13a] sm:$0xff]  ;;  %v1086_v26 = vld [vmem:[#allocation2 + $0x142] sm:$0xff]  ;;  %v5389_v17 = vpack.c.bf16 %v905_v13, %v904_v19 }
 0x132   : > { %v5376_v31 = vpack.c.bf16 %v1118_v36, %v1117_v2  ;;  %v5383_v6 = vpack.c.bf16 %v1086_v26, %v1085_v14  ;;  %v1121_v55 = vld [vmem:[#allocation2 + $0x180] sm:$0xff]  ;;  %v1220_v59 = vld [vmem:[#allocation2 + $0x31] sm:$0xff]  ;;  %v1222_v36 = vld [vmem:[#allocation2 + $0x49] sm:$0xff] }
 0x133   : > { %2093 = vmatmul.mubr.bf16.gmra.mxu1 %v5250_v1  ;;  %v1124_v19 = vld [vmem:[#allocation2 + $0x21] sm:$0xff]  ;;  %v1123_v58 = vld [vmem:[#allocation2 + $0x19] sm:$0xff]  ;;  %v4658_v44 = vld [vmem:[%s6220_s4 + $0x230] sm:$0xff]  }
 0x134   : > { %2246 = vmatmul.mubr.bf16.gmra.mxu0 %v5287_v12  ;;  %2100 = vmatprep.mubr.bf16.mxu1 %v1357_v15  ;;  %v1113_v15 = vld [vmem:[#allocation2 + $0x120] sm:$0xff]  ;;  %v1119_v9 = vld [vmem:[#allocation2 + $0x168] sm:$0xff]  ;;  %v1288_v51 = vpack.c.bf16 %v1124_v19, %v1123_v58 }
 0x135   : > { %2253 = vmatprep.mubr.bf16.mxu0 %v5294_v40  ;;  %v5349_v52 = vpack.c.bf16 %v1114_v49, %v1113_v15  ;;  %v5395_v49 = vpack.c.bf16 %v1088_v43, %v1087_v46  ;;  %v1221_v5 = vld [vmem:[#allocation2 + $0x39] sm:$0xff]  ;;  %v1225_v26 = vld [vmem:[#allocation2 + $0x69] sm:$0xff] }
 0x136   : > { %v1122_v15 = vld [vmem:[#allocation2 + $0x188] sm:$0xff]  ;;  %v1291_v2 = vpack.c.bf16 %v1221_v5, %v1220_v59  ;;  %v4662_v46 = vld [vmem:[%s6220_s4 + $0x210] sm:$0xff]   ;;  %v1229_v19 = vld [vmem:[#allocation2 + $0x99] sm:$0xff] }
 0x137   : > { %v5398_v4 = vpack.c.bf16 %v1122_v15, %v1121_v55  ;;  %v4664_v55 = vld [vmem:[%s6220_s4 + $0x200] sm:$0xff]  }
 0x138   : > { %v1120_v57 = vld [vmem:[#allocation2 + $0x170] sm:$0xff] }
 0x139   : > { %v5381_v23 = vpack.c.bf16 %v1120_v57, %v1119_v9  ;;  %v1089_v41 = vld [vmem:[#allocation2 + $0x16a] sm:$0xff]  ;;  %v1090_v13 = vld [vmem:[#allocation2 + $0x172] sm:$0xff]  ;;  %v4660_v57 = vld [vmem:[%s6220_s4 + $0x220] sm:$0xff]  }
 0x13a   : > { %v5403_v53 = vpack.c.bf16 %v1090_v13, %v1089_v41  ;;  %v1223_v9 = vld [vmem:[#allocation2 + $0x51] sm:$0xff] }
 0x13b   : > { %2101 = vmatmul.mubr.bf16.gmra.mxu1 %v5294_v40  ;;  %v1300_v14 = vpack.c.bf16 %v1223_v9, %v1222_v36  ;;  %v1145_v9 = vld [vmem:[#allocation2 + $0x121] sm:$0xff] }
 0x13c   : > { %2254 = vmatmul.mubr.bf16.gmra.mxu0 %v5302_v29  ;;  %2108 = vmatprep.mubr.bf16.mxu1 %v5308_v42 }
 0x13d   : > { %2261 = vmatprep.mubr.bf16.mxu0 %v5300_v24 }
 0x143   : > { %2109 = vmatmul.mubr.bf16.gmra.mxu1 %v5300_v24 }
 0x144   : > { %2262 = vmatmul.mubr.bf16.gmra.mxu0 %v5314_v22  ;;  %2116 = vmatprep.mubr.bf16.mxu1 %v5319_v62 }
 0x145   : > { %2269 = vmatprep.mubr.bf16.mxu0 %v5322_v11 }
 0x14b   : > { %2117 = vmatmul.mubr.bf16.gmra.mxu1 %v5322_v11 }
 0x14c   : > { %2270 = vmatmul.mubr.bf16.gmra.mxu0 %v5329_v56  ;;  %2124 = vmatprep.mubr.bf16.mxu1 %v5335_v61 }
 0x14d   : > { %2277 = vmatprep.mubr.bf16.mxu0 %v5327_v54 }
 0x153   : > { %2125 = vmatmul.mubr.bf16.gmra.mxu1 %v5327_v54 }
 0x154   : > { %2278 = vmatmul.mubr.bf16.gmra.mxu0 %v5341_v50  ;;  %2132 = vmatprep.mubr.bf16.mxu1 %v5346_v38 }
 0x155   : > { %2285 = vmatprep.mubr.bf16.mxu0 %v5349_v52 }
 0x15b   : > { %2133 = vmatmul.mubr.bf16.gmra.mxu1 %v5349_v52 }
 0x15c   : > { %2286 = vmatmul.mubr.bf16.gmra.mxu0 %v5356_v27  ;;  %2140 = vmatprep.mubr.bf16.mxu1 %v5362_v37 }
 0x15d   : > { %2293 = vmatprep.mubr.bf16.mxu0 %v5354_v0 }
 0x163   : > { %2141 = vmatmul.mubr.bf16.gmra.mxu1 %v5354_v0 }
 0x164   : > { %2294 = vmatmul.mubr.bf16.gmra.mxu0 %v5368_v16  ;;  %2148 = vmatprep.mubr.bf16.mxu1 %v5373_v18 }
 0x165   : > { %2301 = vmatprep.mubr.bf16.mxu0 %v5376_v31 }
 0x16b   : > { %2149 = vmatmul.mubr.bf16.gmra.mxu1 %v5376_v31 }
 0x16c   : > { %2302 = vmatmul.mubr.bf16.gmra.mxu0 %v5383_v6  ;;  %2156 = vmatprep.mubr.bf16.mxu1 %v5389_v17 }
 0x16d   : > { %2309 = vmatprep.mubr.bf16.mxu0 %v5381_v23 }
 0x173   : > { %2157 = vmatmul.mubr.bf16.gmra.mxu1 %v5381_v23 }
 0x174   : > { %2310 = vmatmul.mubr.bf16.gmra.mxu0 %v5395_v49  ;;  %2358 = vmatprep.mubr.bf16.mxu1 %v5084_v34  ;;  %v4659_v34 = vld [vmem:[%s6220_s4 + $0x228] sm:$0xff]  }
 0x175   : > { %2317 = vmatprep.mubr.bf16.mxu0 %v5398_v4 }
 0x17b   : > { %2359 = vmatmul.mubr.bf16.vlgmr.msra.gmra.mxu1 %v1288_v51 }
 0x17c   : > { %2318 = vmatmul.mubr.bf16.gmra.mxu0 %v5403_v53  ;;  %4417 = vmatpush3.bf16.msra.mxu1 %v5003_v33  ;;  %v4661_v33 = vld [vmem:[%s6220_s4 + $0x218] sm:$0xff]  }
 0x17d   : > { %2366 = vmatprep.mubr.bf16.mxu1 %v5131_v3  ;;  %2519 = vmatprep.mubr.bf16.mxu0 %v1291_v2  ;;  %v1224_v3 = vld [vmem:[#allocation2 + $0x61] sm:$0xff] }
 0x17e   : > { %4418 = vmatprep.subr.bf16.mxu1 %v4658_v44  ;;  %v1309_v43 = vpack.c.bf16 %v1225_v26, %v1224_v3 }
 0x180   : > { %4419 = vmatpush3.bf16.msra.mxu1 %v4658_v44 }
 0x181   : > { %4420 = vmatprep.subr.bf16.mxu1 %v4659_v34 }
 0x183   : > { %2367 = vmatmul.mubr.bf16.gmra.mxu1 %v1291_v2 }
 0x184   : > { %2520 = vmatmul.mubr.bf16.vlgmr.msra.gmra.mxu0 %v5044_v7  ;;  %2374 = vmatprep.mubr.bf16.mxu1 %v5182_v47  ;;  %v4663_v7 = vld [vmem:[%s6220_s4 + $0x208] sm:$0xff]   ;;  %v1226_v47 = vld [vmem:[#allocation2 + $0x79] sm:$0xff] }
 0x185   : > { %2527 = vmatprep.mubr.bf16.mxu0 %v1300_v14  ;;  %4421 = vmatpush3.bf16.msra.mxu1 %v4659_v34  ;;  %v1318_v15 = vpack.c.bf16 %v5067_v21, %v1226_v47  ;;  %v1232_v21 = vld [vmem:[#allocation2 + $0xc1] sm:$0xff] }
 0x186   : > { %4422 = vmatprep.subr.bf16.mxu1 %v4660_v57 }
 0x189   : > { %4423 = vmatpush3.bf16.msra.mxu1 %v4660_v57 }
 0x18a   : > { %4424 = vmatprep.subr.bf16.mxu1 %v4661_v33 }
 0x18b   : > { %2375 = vmatmul.mubr.bf16.gmra.mxu1 %v1300_v14 }
 0x18c   : > { %2528 = vmatmul.mubr.bf16.gmra.mxu0 %v5074_v28  ;;  %2382 = vmatprep.mubr.bf16.mxu1 %v5222_v20  ;;  %v1132_v28 = vld [vmem:[#allocation2 + $0x81] sm:$0xff]  ;;  %v1228_v20 = vld [vmem:[#allocation2 + $0x91] sm:$0xff] }
 0x18d   : > { %2535 = vmatprep.mubr.bf16.mxu0 %v1309_v43  ;;  %4425 = vmatpush3.bf16.msra.mxu1 %v4661_v33  ;;  %v1324_v41 = vpack.c.bf16 %v1132_v28, %v1226_v47  ;;  %v1327_v13 = vpack.c.bf16 %v1229_v19, %v1228_v20  ;;  %v1387_v33 = vpack.c.bf16 %v5200_v8, %v1145_v9 }
 0x18e   : > { %4426 = vmatprep.subr.bf16.mxu1 %v4662_v46 }
 0x191   : > { %4427 = vmatpush3.bf16.msra.mxu1 %v4662_v46 }
 0x192   : > { %4428 = vmatprep.subr.bf16.mxu1 %v4663_v7 }
 0x193   : > { %2383 = vmatmul.mubr.bf16.gmra.mxu1 %v1309_v43 }
 0x194   : > { %2536 = vmatmul.mubr.bf16.gmra.mxu0 %v5141_v10  ;;  %2390 = vmatprep.mubr.bf16.mxu1 %v5258_v45  ;;  %v1233_v10 = vld [vmem:[#allocation2 + $0xc9] sm:$0xff] }
 0x195   : > { %2543 = vmatprep.mubr.bf16.mxu0 %v1318_v15  ;;  %4429 = vmatpush3.bf16.msra.mxu1 %v4663_v7  ;;  %v1345_v45 = vpack.c.bf16 %v1233_v10, %v1232_v21 }
 0x196   : > { %4430 = vmatprep.subr.bf16.mxu1 %v4664_v55 }
 0x199   : > { %4431 = vmatpush3.bf16.msra.mxu1 %v4664_v55 }
 0x19b   : > { %2391 = vmatmul.mubr.bf16.gmra.mxu1 %v1324_v41 }
 0x19c   : > { %2544 = vmatmul.mubr.bf16.gmra.mxu0 %v5170_v35  ;;  %2398 = vmatprep.mubr.bf16.mxu1 %v5287_v12  ;;  %v3867_v35 = vpop.f32.mrf.mxu1 }
 0x19d   : > { %2551 = vmatprep.mubr.bf16.mxu0 %v1327_v13 }
 0x1a3   : > { %2399 = vmatmul.mubr.bf16.gmra.mxu1 %v1327_v13 }
 0x1a4   : > { %2552 = vmatmul.mubr.bf16.gmra.mxu0 %v5229_v25  ;;  %2406 = vmatprep.mubr.bf16.mxu1 %v5302_v29  ;;  %v1141_v25 = vld [vmem:[#allocation2 + $0xf1] sm:$0xff] }
 0x1a5   : > { %2559 = vmatprep.mubr.bf16.mxu0 %v5264_v39 }
 0x1ab   : > { %2407 = vmatmul.mubr.bf16.gmra.mxu1 %v5264_v39  ;;  %v1369_v39 = vpack.c.bf16 %v5152_v48, %v1141_v25 }
 0x1ac   : > { %2560 = vmatmul.mubr.bf16.gmra.mxu0 %v5250_v1  ;;  %2414 = vmatprep.mubr.bf16.mxu1 %v5314_v22  ;;  %v3868_v1 = vpop.f32.mrf.mxu1 }
 0x1ad   : > { %2567 = vmatprep.mubr.bf16.mxu0 %v1345_v45  ;;  %v3869_v51 = vadd.f32 %v3868_v1, %v3867_v35 }
 0x1b3   : > { %2415 = vmatmul.mubr.bf16.gmra.mxu1 %v1345_v45 }
 0x1b4   : > { %2568 = vmatmul.mubr.bf16.gmra.mxu0 %v5294_v40  ;;  %2422 = vmatprep.mubr.bf16.mxu1 %v5329_v56 }
 0x1b5   : > { %2575 = vmatprep.mubr.bf16.mxu0 %v5308_v42 }
 0x1bb   : > { %2423 = vmatmul.mubr.bf16.gmra.mxu1 %v5308_v42 }
 0x1bc   : > { %2576 = vmatmul.mubr.bf16.gmra.mxu0 %v5300_v24  ;;  %2430 = vmatprep.mubr.bf16.mxu1 %v5341_v50 }
 0x1bd   : > { %2583 = vmatprep.mubr.bf16.mxu0 %v5319_v62 }
 0x1c3   : > { %v3870_v12 = vpop.f32.mrf.mxu1  ;;  %2431 = vmatmul.mubr.bf16.gmra.mxu1 %v1369_v39 }
 0x1c4   : > { %v3976_v40 = vpop.f32.mrf.mxu0  ;;  %2584 = vmatmul.mubr.bf16.gmra.mxu0 %v5322_v11  ;;  %2438 = vmatprep.mubr.bf16.mxu1 %v5356_v27  ;;  %v4665_v27 = vld [vmem:[%s6223_s7 + $0x38] sm:$0xff]  }
 0x1c5   : > { %2591 = vmatprep.mubr.bf16.mxu0 %v5335_v61  ;;  %v3871_v29 = vpop.f32.mrf.mxu1  ;;  %4464 = vmatprep.subr.bf16.mxu0 %v4665_v27 }
 0x1c6   : > { %v3872_v24 = vadd.f32 %v3871_v29, %v3870_v12  ;;  %v3977_v42 = vpop.f32.mrf.mxu0  ;;  %4465 = vmatpush3.bf16.msra.mxu0 %v4665_v27  ;;  %v1149_v12 = vld [vmem:[#allocation2 + $0x151] sm:$0xff] }
 0x1c7   : > { %v3978_v22 = vadd.f32 %v3977_v42, %v3976_v40  ;;  %v3873_v56 = vpop.f32.mrf.mxu1 }
 0x1c8   : > { %v3979_v50 = vpop.f32.mrf.mxu0 }
 0x1c9   : > { %v5456_v62 = vadd.f32 %v3978_v22, %v5298_v60  ;;  %v3874_v58 = vpop.f32.mrf.mxu1 }
 0x1ca   : > { %v3875_v48 = vadd.f32 %v3874_v58, %v3873_v56  ;;  %v3980_v5 = vpop.f32.mrf.mxu0 }
 0x1cb   : > { %v3981_v59 = vadd.f32 %v3980_v5, %v3979_v50  ;;  %v3876_v44 = vpop.f32.mrf.mxu1  ;;  %2439 = vmatmul.mubr.bf16.gmra.mxu1 %v5335_v61 }
 0x1cc   : > { %v3982_v11 = vpop.f32.mrf.mxu0  ;;  %2592 = vmatmul.mubr.bf16.gmra.mxu0 %v5327_v54  ;;  %2446 = vmatprep.mubr.bf16.mxu1 %v5368_v16 }
 0x1cd   : > { %v5464_v2 = vadd.f32 %v3981_v59, %v3869_v51  ;;  %2599 = vmatprep.mubr.bf16.mxu0 %v5346_v38  ;;  %v3877_v60 = vpop.f32.mrf.mxu1 }
 0x1ce   : > { %v3878_v34 = vadd.f32 %v3877_v60, %v3876_v44  ;;  %v3983_v36 = vpop.f32.mrf.mxu0 }
 0x1cf   : > { %v3984_v57 = vadd.f32 %v3983_v36, %v3982_v11  ;;  %v3879_v61 = vpop.f32.mrf.mxu1  ;;  %v1186_v11 = vld [vmem:[#allocation2 + $0x18a] sm:$0xff] }
 0x1d0   : > { %v3985_v14 = vpop.f32.mrf.mxu0 }
 0x1d1   : > { %v5467_v54 = vadd.f32 %v3984_v57, %v3872_v24  ;;  %v3880_v16 = vpop.f32.mrf.mxu1  ;;  %v1405_v24 = vpack.c.bf16 %v5240_v63, %v1149_v12  ;;  %v1185_v63 = vld [vmem:[#allocation2 + $0x182] sm:$0xff]  ;;  %v1254_v12 = vld [vmem:[#allocation2 + $0x4a] sm:$0xff] }
 0x1d2   : > { %v3881_v3 = vadd.f32 %v3880_v16, %v3879_v61  ;;  %v3986_v26 = vpop.f32.mrf.mxu0 }
 0x1d3   : > { %v3987_v46 = vadd.f32 %v3986_v26, %v3985_v14  ;;  %v3882_v43 = vpop.f32.mrf.mxu1  ;;  %2447 = vmatmul.mubr.bf16.gmra.mxu1 %v1387_v33  ;;  %v4667_v14 = vld [vmem:[%s6223_s7 + $0x28] sm:$0xff]  }
 0x1d4   : > { %v3988_v38 = vpop.f32.mrf.mxu0  ;;  %2600 = vmatmul.mubr.bf16.gmra.mxu0 %v5349_v52  ;;  %2454 = vmatprep.mubr.bf16.mxu1 %v5383_v6  ;;  %v4666_v6 = vld [vmem:[%s6223_s7 + $0x30] sm:$0xff]  }
 0x1d5   : > { %v5472_v7 = vadd.f32 %v3987_v46, %v3875_v48  ;;  %2607 = vmatprep.mubr.bf16.mxu0 %v5362_v37  ;;  %v3883_v47 = vpop.f32.mrf.mxu1  ;;  %4466 = vmatprep.subr.bf16.mxu0 %v4666_v6  ;;  %v1153_v46 = vld [vmem:[#allocation2 + $0x181] sm:$0xff] }
 0x1d6   : > { %v3884_v55 = vadd.f32 %v3883_v47, %v3882_v43  ;;  %v3989_v15 = vpop.f32.mrf.mxu0  ;;  %4467 = vmatpush3.bf16.msra.mxu0 %v4666_v6  ;;  %v1250_v43 = vld [vmem:[#allocation2 + $0x199] sm:$0xff] }
 0x1d7   : > { %v3990_v28 = vadd.f32 %v3989_v15, %v3988_v38  ;;  %v3885_v20 = vpop.f32.mrf.mxu1  ;;  %v1251_v38 = vld [vmem:[#allocation2 + $0x1a1] sm:$0xff]  ;;  %4468 = vmatprep.subr.bf16.mxu0 %v4667_v14 }
 0x1d8   : > { %v3991_v8 = vpop.f32.mrf.mxu0 }
 0x1d9   : > { %v5475_v19 = vadd.f32 %v3990_v28, %v3878_v34  ;;  %v3886_v41 = vpop.f32.mrf.mxu1 }
 0x1da   : > { %v3887_v13 = vadd.f32 %v3886_v41, %v3885_v20  ;;  %v3992_v21 = vpop.f32.mrf.mxu0  ;;  %4469 = vmatpush3.bf16.msra.mxu0 %v4667_v14  ;;  %v1426_v41 = vpack.c.bf16 %v1251_v38, %v1250_v43  ;;  %v1260_v14 = vld [vmem:[#allocation2 + $0x92] sm:$0xff] }
 0x1db   : > { %v3993_v10 = vadd.f32 %v3992_v21, %v3991_v8  ;;  %v3888_v45 = vpop.f32.mrf.mxu1  ;;  %2455 = vmatmul.mubr.bf16.gmra.mxu1 %v5362_v37  ;;  %v1423_v8 = vpack.c.bf16 %v5275_v30, %v1153_v46 }
 0x1dc   : > { %v3994_v52 = vpop.f32.mrf.mxu0  ;;  %2608 = vmatmul.mubr.bf16.gmra.mxu0 %v5354_v0  ;;  %2462 = vmatprep.mubr.bf16.mxu1 %v5395_v49 }
 0x1dd   : > { %v5483_v35 = vadd.f32 %v3993_v10, %v3881_v3  ;;  %2615 = vmatprep.mubr.bf16.mxu0 %v5373_v18  ;;  %v3889_v25 = vpop.f32.mrf.mxu1 }
 0x1de   : > { %v3890_v1 = vadd.f32 %v3889_v25, %v3888_v45  ;;  %v3995_v39 = vpop.f32.mrf.mxu0 }
 0x1df   : > { %v3996_v40 = vadd.f32 %v3995_v39, %v3994_v52  ;;  %v3891_v37 = vpop.f32.mrf.mxu1 }
 0x1e0   : > { %v3997_v29 = vpop.f32.mrf.mxu0 }
 0x1e1   : > { %v5486_v0 = vadd.f32 %v3996_v40, %v3884_v55  ;;  %v3892_v49 = vpop.f32.mrf.mxu1  ;;  %v1253_v55 = vld [vmem:[#allocation2 + $0x3a] sm:$0xff]  ;;  %v1255_v40 = vld [vmem:[#allocation2 + $0x52] sm:$0xff] }
 0x1e2   : > { %v3893_v42 = vadd.f32 %v3892_v49, %v3891_v37  ;;  %v3998_v22 = vpop.f32.mrf.mxu0  ;;  %v1257_v49 = vld [vmem:[#allocation2 + $0x6a] sm:$0xff] }
 0x1e3   : > { %v3999_v56 = vadd.f32 %v3998_v22, %v3997_v29  ;;  %v3894_v50 = vpop.f32.mrf.mxu1  ;;  %2463 = vmatmul.mubr.bf16.gmra.mxu1 %v1405_v24  ;;  %v1256_v29 = vld [vmem:[#allocation2 + $0x62] sm:$0xff] }
 0x1e4   : > { %v4000_v18 = vpop.f32.mrf.mxu0  ;;  %2616 = vmatmul.mubr.bf16.gmra.mxu0 %v5376_v31  ;;  %2470 = vmatprep.mubr.bf16.mxu1 %v5403_v53  ;;  %v5496_v31 = vpack.c.bf16 %v1186_v11, %v1185_v63  ;;  %v4668_v63 = vld [vmem:[%s6223_s7 + $0x20] sm:$0xff]  }
 0x1e5   : > { %v5491_v58 = vadd.f32 %v3999_v56, %v3887_v13  ;;  %2623 = vmatprep.mubr.bf16.mxu0 %v5389_v17  ;;  %v3895_v48 = vpop.f32.mrf.mxu1  ;;  %4470 = vmatprep.subr.bf16.mxu0 %v4668_v63 }
 0x1e6   : > { %v3896_v5 = vadd.f32 %v3895_v48, %v3894_v50  ;;  %v4001_v51 = vpop.f32.mrf.mxu0  ;;  %4471 = vmatpush3.bf16.msra.mxu0 %v4668_v63 }
 0x1e7   : > { %v4002_v59 = vadd.f32 %v4001_v51, %v4000_v18  ;;  %v3897_v44 = vpop.f32.mrf.mxu1 }
 0x1e8   : > { %v4003_v27 = vpop.f32.mrf.mxu0 }
 0x1e9   : > { %v5494_v60 = vadd.f32 %v4002_v59, %v3890_v1  ;;  %v3898_v34 = vpop.f32.mrf.mxu1 }
 0x1ea   : > { %v3899_v36 = vadd.f32 %v3898_v34, %v3897_v44  ;;  %v4004_v9 = vpop.f32.mrf.mxu0 }
 0x1eb   : > { %v4005_v53 = vadd.f32 %v4004_v9, %v4003_v27  ;;  %v3900_v57 = vpop.f32.mrf.mxu1  ;;  %2471 = vmatmul.mubr.bf16.gmra.mxu1 %v5389_v17  ;;  %v1258_v9 = vld [vmem:[#allocation2 + $0x7a] sm:$0xff] }
 0x1ec   : > { %v4006_v61 = vpop.f32.mrf.mxu0  ;;  %2624 = vmatmul.mubr.bf16.gmra.mxu0 %v5381_v23  ;;  %2478 = vmatprep.mubr.bf16.mxu1 %v5496_v31  ;;  %v1252_v23 = vld [vmem:[#allocation2 + $0x32] sm:$0xff] }
 0x1ed   : > { %v5504_v16 = vadd.f32 %v4005_v53, %v3893_v42  ;;  %2631 = vmatprep.mubr.bf16.mxu0 %v5283_v32  ;;  %v3901_v33 = vpop.f32.mrf.mxu1  ;;  %v1292_v21 = vpack.c.bf16 %v1253_v55, %v1252_v23  ;;  %v4681_v42 = vld [vmem:[#allocation2] sm:$0xff] }
 0x1ee   : > { %v3902_v3 = vadd.f32 %v3901_v33, %v3900_v57  ;;  %v4007_v26 = vpop.f32.mrf.mxu0  ;;  %v1425_v22 = vpack.c.bf16 %v4681_v42, %v4681_v42  ;;  %v1259_v53 = vld [vmem:[#allocation2 + $0x82] sm:$0xff]  ;;  %v1261_v33 = vld [vmem:[#allocation2 + $0x9a] sm:$0xff] }
 0x1ef   : > { %v4008_v17 = vadd.f32 %v4007_v26, %v4006_v61  ;;  %v3903_v47 = vpop.f32.mrf.mxu1  ;;  %v1319_v43 = vpack.c.bf16 %v1259_v53, %v1258_v9 }
 0x1f0   : > { %v4009_v15 = vpop.f32.mrf.mxu0 }
 0x1f1   : > { %v5507_v28 = vadd.f32 %v4008_v17, %v3896_v5  ;;  %v3904_v20 = vpop.f32.mrf.mxu1  ;;  %v1310_v5 = vpack.c.bf16 %v1257_v49, %v1256_v29 }
 0x1f2   : > { %v3905_v32 = vadd.f32 %v3904_v20, %v3903_v47  ;;  %v4010_v13 = vpop.f32.mrf.mxu0  ;;  %v1328_v47 = vpack.c.bf16 %v1261_v33, %v1260_v14 }
 0x1f3   : > { %v4011_v10 = vadd.f32 %v4010_v13, %v4009_v15  ;;  %v3906_v45 = vpop.f32.mrf.mxu1  ;;  %2479 = vmatmul.mubr.bf16.gmra.mxu1 %v1423_v8  ;;  %v1262_v13 = vld [vmem:[#allocation2 + $0xaa] sm:$0xff] }
 0x1f4   : > { %v4012_v52 = vpop.f32.mrf.mxu0  ;;  %2632 = vmatmul.mubr.bf16.gmra.mxu0 %v5398_v4  ;;  %4432 = vmatprep.mubr.bf16.mxu1 %v1292_v21  ;;  %v1301_v4 = vpack.c.bf16 %v1255_v40, %v1254_v12  ;;  %v1263_v21 = vld [vmem:[#allocation2 + $0xb2] sm:$0xff] }
 0x1f5   : > { %v5511_v6 = vadd.f32 %v4011_v10, %v3899_v36  ;;  %v3907_v25 = vpop.f32.mrf.mxu1  ;;  %2639 = vmatprep.mubr.bf16.mxu0 %v1426_v41  ;;  %v1337_v40 = vpack.c.bf16 %v1263_v21, %v1262_v13  ;;  %v1272_v13 = vld [vmem:[#allocation2 + $0x122] sm:$0xff]  ;;  %v1273_v21 = vld [vmem:[#allocation2 + $0x12a] sm:$0xff] }
 0x1f6   : > { %v3908_v1 = vadd.f32 %v3907_v25, %v3906_v45  ;;  %v4013_v39 = vpop.f32.mrf.mxu0  ;;  %v1265_v25 = vld [vmem:[#allocation2 + $0xca] sm:$0xff] }
 0x1f7   : > { %v4014_v30 = vadd.f32 %v4013_v39, %v4012_v52  ;;  %v3909_v37 = vpop.f32.mrf.mxu1  ;;  %v1264_v52 = vld [vmem:[#allocation2 + $0xc2] sm:$0xff] }
 0x1f8   : > { %v4015_v24 = vpop.f32.mrf.mxu0  ;;  %v1346_v29 = vpack.c.bf16 %v1265_v25, %v1264_v52 }
 0x1f9   : > { %v5513_v56 = vadd.f32 %v4014_v30, %v3902_v3  ;;  %v3910_v50 = vpop.f32.mrf.mxu1 }
 0x1fa   : > { %v3911_v18 = vadd.f32 %v3910_v50, %v3909_v37  ;;  %v4016_v48 = vpop.f32.mrf.mxu0  ;;  %v4670_v50 = vld [vmem:[%s6226_s10 + $0x38] sm:$0xff]  }
 0x1fb   : > { %v4017_v51 = vadd.f32 %v4016_v48, %v4015_v24  ;;  %v3912_v59 = vpop.f32.mrf.mxu1  ;;  %4433 = vmatmul.mubr.bf16.vlgmr.msra.gmra.mxu1 %v1301_v4  ;;  %4512 = vmatprep.subr.bf16.mxu1 %v4670_v50 }
 0x1fc   : > { %v4018_v44 = vpop.f32.mrf.mxu0  ;;  %2640 = vmatmul.mubr.bf16.gmra.mxu0 %v1425_v22  ;;  %4436 = vmatprep.mubr.bf16.mxu1 %v1310_v5  ;;  %v4669_v22 = vld [vmem:[%s6223_s7 + $0x18] sm:$0xff]  }
 0x1fd   : > { %v5518_v11 = vadd.f32 %v4017_v51, %v3905_v32  ;;  %v3913_v27 = vpop.f32.mrf.mxu1  ;;  %v1266_v51 = vld [vmem:[#allocation2 + $0xda] sm:$0xff]  ;;  %4472 = vmatprep.subr.bf16.mxu0 %v4669_v22  ;;  %4513 = vmatpush3.bf16.msra.mxu1 %v4670_v50 }
 0x1fe   : > { %v3914_v34 = vadd.f32 %v3913_v27, %v3912_v59  ;;  %v4019_v36 = vpop.f32.mrf.mxu0  ;;  %v1267_v59 = vld [vmem:[#allocation2 + $0xe2] sm:$0xff]  ;;  %v1268_v27 = vld [vmem:[#allocation2 + $0xf2] sm:$0xff]  ;;  %4473 = vmatpush3.bf16.msra.mxu0 %v4669_v22 }
 0x1ff   : > { %v4020_v57 = vadd.f32 %v4019_v36, %v4018_v44  ;;  %v3915_v61 = vpop.f32.mrf.mxu1 }
 0x200   : > { %v4021_v3 = vpop.f32.mrf.mxu0 }
 0x201   : > { %v5520_v26 = vadd.f32 %v4020_v57, %v3908_v1  ;;  %v3916_v46 = vpop.f32.mrf.mxu1  ;;  %v1355_v57 = vpack.c.bf16 %v1267_v59, %v1266_v51 }
 0x202   : > { %v3917_v38 = vadd.f32 %v3916_v46, %v3915_v61  ;;  %v4022_v17 = vpop.f32.mrf.mxu0 }
 0x203   : > { %v4023_v23 = vadd.f32 %v4022_v17, %v4021_v3  ;;  %v3918_v55 = vpop.f32.mrf.mxu1  ;;  %4437 = vmatmul.mubr.bf16.gmra.mxu1 %v1319_v43 }
 0x204   : > { %v4024_v15 = vpop.f32.mrf.mxu0  ;;  %4440 = vmatprep.mubr.bf16.mxu1 %v1328_v47 }
 0x205   : > { %v5522_v20 = vadd.f32 %v4023_v23, %v3911_v18  ;;  %v3919_v8 = vpop.f32.mrf.mxu1 }
 0x206   : > { %v3920_v41 = vadd.f32 %v3919_v8, %v3918_v55  ;;  %v4025_v32 = vpop.f32.mrf.mxu0  ;;  %v1271_v8 = vld [vmem:[#allocation2 + $0x112] sm:$0xff] }
 0x207   : > { %v4026_v10 = vadd.f32 %v4025_v32, %v4024_v15  ;;  %v3921_v45 = vpop.f32.mrf.mxu1  ;;  %v1270_v15 = vld [vmem:[#allocation2 + $0x10a] sm:$0xff] }
 0x208   : > { %v4027_v1 = vpop.f32.mrf.mxu0  ;;  %v1373_v25 = vpack.c.bf16 %v1271_v8, %v1270_v15  ;;  %v1278_v15 = vld [vmem:[#allocation2 + $0x16a] sm:$0xff]  ;;  %v1279_v8 = vld [vmem:[#allocation2 + $0x172] sm:$0xff] }
 0x209   : > { %v5524_v39 = vadd.f32 %v4026_v10, %v3914_v34  ;;  %v3922_v12 = vpop.f32.mrf.mxu1  ;;  %v1269_v34 = vld [vmem:[#allocation2 + $0xfa] sm:$0xff] }
 0x20a   : > { %v3923_v30 = vadd.f32 %v3922_v12, %v3921_v45  ;;  %v4028_v37 = vpop.f32.mrf.mxu0  ;;  %v1364_v33 = vpack.c.bf16 %v1269_v34, %v1268_v27 }
 0x20b   : > { %v4029_v49 = vadd.f32 %v4028_v37, %v4027_v1  ;;  %v3924_v24 = vpop.f32.mrf.mxu1  ;;  %4441 = vmatmul.mubr.bf16.gmra.mxu1 %v1337_v40  ;;  %v1382_v40 = vpack.c.bf16 %v1273_v21, %v1272_v13 }
 0x20c   : > { %v4030_v42 = vpop.f32.mrf.mxu0  ;;  %4444 = vmatprep.mubr.bf16.mxu1 %v1346_v29 }
 0x20d   : > { %v5532_v4 = vadd.f32 %v4029_v49, %v3917_v38  ;;  %v3925_v18 = vpop.f32.mrf.mxu1  ;;  %v4671_v38 = vld [vmem:[%s6226_s10 + $0x30] sm:$0xff]  }
 0x20e   : > { %v3926_v48 = vadd.f32 %v3925_v18, %v3924_v24  ;;  %v4031_v5 = vpop.f32.mrf.mxu0  ;;  %4514 = vmatprep.subr.bf16.mxu1 %v4671_v38  ;;  %v4672_v49 = vld [vmem:[%s6223_s7 + $0x10] sm:$0xff]   ;;  %v4673_v24 = vld [vmem:[%s6226_s10 + $0x28] sm:$0xff]  }
 0x20f   : > { %v4032_v44 = vadd.f32 %v4031_v5, %v4030_v42  ;;  %v3927_v63 = vpop.f32.mrf.mxu1  ;;  %4515 = vmatpush3.bf16.msra.mxu1 %v4671_v38  ;;  %v1275_v5 = vld [vmem:[#allocation2 + $0x142] sm:$0xff]  ;;  %4474 = vmatprep.subr.bf16.mxu0 %v4672_v49 }
 0x210   : > { %v4033_v36 = vpop.f32.mrf.mxu0  ;;  %4516 = vmatprep.subr.bf16.mxu1 %v4673_v24  ;;  %4475 = vmatpush3.bf16.msra.mxu0 %v4672_v49  ;;  %v4675_v49 = vld [vmem:[%s6223_s7 + $0x8] sm:$0xff]  }
 0x211   : > { %v5534_v9 = vadd.f32 %v4032_v44, %v3920_v41  ;;  %v3928_v53 = vpop.f32.mrf.mxu1  ;;  %v1276_v44 = vld [vmem:[#allocation2 + $0x152] sm:$0xff]  ;;  %4476 = vmatprep.subr.bf16.mxu0 %v4675_v49 }
 0x212   : > { %v3929_v61 = vadd.f32 %v3928_v53, %v3927_v63  ;;  %v4034_v14 = vpop.f32.mrf.mxu0  ;;  %v1277_v63 = vld [vmem:[#allocation2 + $0x15a] sm:$0xff] }
 0x213   : > { %v4035_v3 = vadd.f32 %v4034_v14, %v4033_v36  ;;  %v3930_v46 = vpop.f32.mrf.mxu1  ;;  %4445 = vmatmul.mubr.bf16.gmra.mxu1 %v1355_v57  ;;  %v1400_v14 = vpack.c.bf16 %v1277_v63, %v1276_v44 }
 0x214   : > { %v4036_v43 = vpop.f32.mrf.mxu0  ;;  %4448 = vmatprep.mubr.bf16.mxu1 %v1364_v33  ;;  %4517 = vmatpush3.bf16.msra.mxu1 %v4673_v24  ;;  %v4676_v24 = vld [vmem:[%s6226_s10 + $0x18] sm:$0xff]  }
 0x215   : > { %v5539_v17 = vadd.f32 %v4035_v3, %v3923_v30  ;;  %v3931_v47 = vpop.f32.mrf.mxu1  ;;  %4477 = vmatpush3.bf16.msra.mxu0 %v4675_v49 }
 0x216   : > { %v3932_v23 = vadd.f32 %v3931_v47, %v3930_v46  ;;  %v4037_v55 = vpop.f32.mrf.mxu0 }
 0x217   : > { %v4038_v41 = vadd.f32 %v4037_v55, %v4036_v43  ;;  %v3933_v32 = vpop.f32.mrf.mxu1  ;;  %v4674_v43 = vld [vmem:[%s6226_s10 + $0x20] sm:$0xff]  }
 0x218   : > { %v4039_v10 = vpop.f32.mrf.mxu0  ;;  %4518 = vmatprep.subr.bf16.mxu1 %v4674_v43 }
 0x219   : > { %v5541_v45 = vadd.f32 %v4038_v41, %v3926_v48  ;;  %v3934_v52 = vpop.f32.mrf.mxu1  ;;  %v1274_v48 = vld [vmem:[#allocation2 + $0x13a] sm:$0xff]  ;;  %4519 = vmatpush3.bf16.msra.mxu1 %v4674_v43 }
 0x21a   : > { %v3935_v1 = vadd.f32 %v3934_v52, %v3933_v32  ;;  %v4040_v12 = vpop.f32.mrf.mxu0  ;;  %v1391_v53 = vpack.c.bf16 %v1275_v5, %v1274_v48  ;;  %v1409_v52 = vpack.c.bf16 %v1279_v8, %v1278_v15  ;;  %4520 = vmatprep.subr.bf16.mxu1 %v4676_v24 }
 0x21b   : > { %v4041_v30 = vadd.f32 %v4040_v12, %v4039_v10  ;;  %v3936_v37 = vpop.f32.mrf.mxu1  ;;  %4449 = vmatmul.mubr.bf16.gmra.mxu1 %v1373_v25 }
 0x21c   : > { %v4042_v29 = vpop.f32.mrf.mxu0  ;;  %4452 = vmatprep.mubr.bf16.mxu1 %v1382_v40 }
 0x21d   : > { %v5549_v42 = vadd.f32 %v4041_v30, %v3929_v61  ;;  %v3937_v22 = vpop.f32.mrf.mxu1  ;;  %4521 = vmatpush3.bf16.msra.mxu1 %v4676_v24 }
 0x21e   : > { %v3938_v50 = vadd.f32 %v3937_v22, %v3936_v37  ;;  %v4043_v18 = vpop.f32.mrf.mxu0 }
 0x21f   : > { %v4044_v51 = vadd.f32 %v4043_v18, %v4042_v29  ;;  %v3939_v59 = vpop.f32.mrf.mxu1  ;;  %v1283_v29 = vld [vmem:[#allocation2 + $0x1a2] sm:$0xff] }
 0x220   : > { %v4045_v27 = vpop.f32.mrf.mxu0 }
 0x221   : > { %v5551_v34 = vadd.f32 %v4044_v51, %v3932_v23  ;;  %v3940_v36 = vpop.f32.mrf.mxu1 }
 0x222   : > { %v3941_v57 = vadd.f32 %v3940_v36, %v3939_v59  ;;  %v4046_v61 = vpop.f32.mrf.mxu0 }
 0x223   : > { %v4047_v33 = vadd.f32 %v4046_v61, %v4045_v27  ;;  %v3942_v3 = vpop.f32.mrf.mxu1  ;;  %4453 = vmatmul.mubr.bf16.gmra.mxu1 %v1391_v53 }
 0x224   : > { %v4048_v46 = vpop.f32.mrf.mxu0  ;;  %4456 = vmatprep.mubr.bf16.mxu1 %v1400_v14  ;;  %v4677_v14 = vld [vmem:[%s6226_s10 + $0x10] sm:$0xff]  }
 0x225   : > { %v5556_v38 = vadd.f32 %v4047_v33, %v3935_v1  ;;  %v3943_v47 = vpop.f32.mrf.mxu1  ;;  %v1282_v1 = vld [vmem:[#allocation2 + $0x19a] sm:$0xff]  ;;  %4522 = vmatprep.subr.bf16.mxu1 %v4677_v14 }
 0x226   : > { %v3944_v55 = vadd.f32 %v3943_v47, %v3942_v3  ;;  %v4049_v23 = vpop.f32.mrf.mxu0  ;;  %v4682_v33 = vld [vmem:[%s4801_s20] sm:$0xff]   ;;  %4523 = vmatpush3.bf16.msra.mxu1 %v4677_v14 }
 0x227   : > { %v4050_v41 = vadd.f32 %v4049_v23, %v4048_v46  ;;  %v3945_v32 = vpop.f32.mrf.mxu1 }
 0x228   : > { %v4051_v13 = vpop.f32.mrf.mxu0 }
 0x229   : > { %v5558_v21 = vadd.f32 %v4050_v41, %v3938_v50  ;;  %v3946_v10 = vpop.f32.mrf.mxu1 }
 0x22a   : > { %v3947_v25 = vadd.f32 %v3946_v10, %v3945_v32  ;;  %v4052_v12 = vpop.f32.mrf.mxu0 }
 0x22b   : > { %v4053_v40 = vadd.f32 %v4052_v12, %v4051_v13  ;;  %v3948_v30 = vpop.f32.mrf.mxu1  ;;  %4457 = vmatmul.mubr.bf16.gmra.mxu1 %v1409_v52 }
 0x22c   : > { %v4054_v37 = vpop.f32.mrf.mxu0  ;;  %4460 = vmatprep.mubr.bf16.mxu1 %v5496_v31  ;;  %v1427_v31 = vpack.c.bf16 %v1283_v29, %v1282_v1 }
 0x22d   : > { %v5567_v22 = vadd.f32 %v4053_v40, %v3941_v57  ;;  %v3949_v50 = vpop.f32.mrf.mxu1 }
 0x22e   : > { %v3950_v18 = vadd.f32 %v3949_v50, %v3948_v30  ;;  %v4055_v48 = vpop.f32.mrf.mxu0 }
 0x22f   : > { %v4056_v5 = vadd.f32 %v4055_v48, %v4054_v37  ;;  %v3951_v51 = vpop.f32.mrf.mxu1  ;;  %v4679_v37 = vld [vmem:[%s6226_s10 + $0x8] sm:$0xff]  }
 0x230   : > { %v4057_v59 = vpop.f32.mrf.mxu0  ;;  %4524 = vmatprep.subr.bf16.mxu1 %v4679_v37 }
 0x231   : > { %v5569_v44 = vadd.f32 %v4056_v5, %v3944_v55  ;;  %v3952_v63 = vpop.f32.mrf.mxu1  ;;  %4525 = vmatpush3.bf16.msra.mxu1 %v4679_v37 }
 0x232   : > { %v3953_v27 = vadd.f32 %v3952_v63, %v3951_v51  ;;  %v4058_v36 = vpop.f32.mrf.mxu0 }
 0x233   : > { %v4059_v53 = vadd.f32 %v4058_v36, %v4057_v59  ;;  %v3954_v57 = vpop.f32.mrf.mxu1  ;;  %4461 = vmatmul.mubr.bf16.gmra.mxu1 %v1427_v31  ;;  %v4678_v31 = vld [vmem:[%s6223_s7] sm:$0xff]  }
 0x234   : > { %v4060_v61 = vpop.f32.mrf.mxu0  ;;  %4528 = vmatprep.mubr.bf16.mxu1 %v4682_v33  ;;  %v4680_v59 = vld [vmem:[%s6226_s10] sm:$0xff]   ;;  %4478 = vmatprep.subr.bf16.mxu0 %v4678_v31 }
 0x235   : > { %v5575_v3 = vadd.f32 %v4059_v53, %v3947_v25  ;;  %v3955_v46 = vpop.f32.mrf.mxu1  ;;  %4526 = vmatprep.subr.bf16.mxu1 %v4680_v59  ;;  %4479 = vmatpush3.bf16.msra.mxu0 %v4678_v31 }
 0x236   : > { %v3956_v43 = vadd.f32 %v3955_v46, %v3954_v57  ;;  %v4061_v47 = vpop.f32.mrf.mxu0  ;;  %4527 = vmatpush3.bf16.msra.mxu1 %v4680_v59 }
 0x237   : > { %v4062_v55 = vadd.f32 %v4061_v47, %v4060_v61  ;;  %v3957_v23 = vpop.f32.mrf.mxu1 }
 0x238   : > { %v4063_v15 = vpop.f32.mrf.mxu0 }
 0x239   : > { %v5577_v8 = vadd.f32 %v4062_v55, %v3950_v18  ;;  %v3958_v41 = vpop.f32.mrf.mxu1  ;;  %v4683_v55 = vld [vmem:[%s4801_s20 + $0x8] sm:$0xff]  }
 0x23a   : > { %v3959_v32 = vadd.f32 %v3958_v41, %v3957_v23  ;;  %v4064_v13 = vpop.f32.mrf.mxu0 }
 0x23b   : > { %v4065_v10 = vadd.f32 %v4064_v13, %v4063_v15  ;;  %v4088_v52 = vpop.f32.mrf.mxu1  ;;  %4529 = vmatmul.mubr.bf16.vlgmr.msra.gmra.mxu1 %v4683_v55  ;;  %v4684_v15 = vld [vmem:[%s4801_s20 + $0x10] sm:$0xff]  }
 0x23c   : > { %v4066_v12 = vpop.f32.mrf.mxu0  ;;  %4532 = vmatprep.mubr.bf16.mxu1 %v4684_v15 }
 0x23d   : > { %v5579_v40 = vadd.f32 %v4065_v10, %v3953_v27  ;;  %v4089_v25 = vpop.f32.mrf.mxu1 }
 0x23e   : > { %v4067_v30 = vpop.f32.mrf.mxu0  ;;  %v4090_v1 = vadd.f32 %v4089_v25, %v4088_v52 }
 0x23f   : > { %v4068_v29 = vadd.f32 %v4067_v30, %v4066_v12  ;;  %v4091_v49 = vpop.f32.mrf.mxu1 }
 0x240   : > { %v2361_v24 = vadd.f32 %v4090_v1, %v5456_v62  ;;  %v4069_v50 = vpop.f32.mrf.mxu0 }
 0x241   : > { %v5585_v18 = vadd.f32 %v4068_v29, %v3956_v43  ;;  %v4092_v48 = vpop.f32.mrf.mxu1 }
 0x242   : > { %v4070_v5 = vpop.f32.mrf.mxu0  ;;  %v4093_v51 = vadd.f32 %v4092_v48, %v4091_v49 }
 0x243   : > { %v4071_v63 = vadd.f32 %v4070_v5, %v4069_v50  ;;  %v4094_v27 = vpop.f32.mrf.mxu1 }
 0x244   : > { %v2364_v62 = vadd.f32 %v4093_v51, %v5464_v2  ;;  %v4200_v36 = vpop.f32.mrf.mxu0 }
 0x245   : > { %v5594_v53 = vadd.f32 %v4071_v63, %v3959_v32  ;;  %v4095_v57 = vpop.f32.mrf.mxu1 }
 0x246   : > { %v4096_v61 = vadd.f32 %v4095_v57, %v4094_v27  ;;  %v4201_v14 = vpop.f32.mrf.mxu0 }
 0x247   : > { %6230 = vst [vmem:[#allocation3_spill] sm:$0xff] %v5594_v53  ;;  %v4202_v33 = vadd.f32 %v4201_v14, %v4200_v36  ;;  %v4097_v46 = vpop.f32.mrf.mxu1 }
 0x248   : > { %v5597_v43 = vadd.f32 %v4096_v61, %v5467_v54  ;;  %v4203_v47 = vpop.f32.mrf.mxu0  ;;  %v4687_v61 = vld [vmem:[%s4801_s20 + $0x28] sm:$0xff]  }
 0x249   : > { %v4098_v2 = vpop.f32.mrf.mxu1  ;;  %v5600_v23 = vadd.f32 %v4202_v33, %v2361_v24  ;;  %v4685_v24 = vld [vmem:[%s4801_s20 + $0x18] sm:$0xff]   ;;  %v4688_v33 = vld [vmem:[%s4801_s20 + $0x30] sm:$0xff]  }
 0x24a   : > { %v4099_v41 = vadd.f32 %v4098_v2, %v4097_v46  ;;  %v4204_v32 = vpop.f32.mrf.mxu0  ;;  %4533 = vmatmul.mubr.bf16.gmra.mxu1 %v4685_v24 }
 0x24b   : > { %v4205_v13 = vadd.f32 %v4204_v32, %v4203_v47  ;;  %v4100_v10 = vpop.f32.mrf.mxu1 }
 0x24c   : > { %v5604_v52 = vadd.f32 %v4099_v41, %v5472_v7  ;;  %v5606_v12 = vpop.f32.mrf.mxu0  ;;  %v4686_v7 = vld [vmem:[%s4801_s20 + $0x20] sm:$0xff]  }
 0x24d   : > { %v4101_v54 = vpop.f32.mrf.mxu1  ;;  %v5608_v25 = vadd.f32 %v4205_v13, %v2364_v62  ;;  %4536 = vmatprep.mubr.bf16.mxu1 %v4686_v7 }
 0x24e   : > { %v4102_v30 = vadd.f32 %v4101_v54, %v4100_v10  ;;  %v5610_v1 = vpop.f32.mrf.mxu0  ;;  %v4689_v54 = vld [vmem:[%s4801_s20 + $0x38] sm:$0xff]  }
 0x24f   : > { %v4103_v37 = vpop.f32.mrf.mxu1 }
 0x250   : > { %v5613_v29 = vadd.f32 %v4102_v30, %v5475_v19  ;;  %v5615_v49 = vpop.f32.mrf.mxu0 }
 0x251   : > { %v4104_v50 = vpop.f32.mrf.mxu1 }
 0x252   : > { %v4105_v48 = vadd.f32 %v4104_v50, %v4103_v37  ;;  %v5619_v5 = vpop.f32.mrf.mxu0  ;;  %4537 = vmatmul.mubr.bf16.gmra.mxu1 %v4687_v61  ;;  %v4690_v37 = vld [vmem:[%s4801_s20 + $0x40] sm:$0xff]  }
 0x253   : > { %v4106_v51 = vpop.f32.mrf.mxu1  ;;  %4540 = vmatprep.mubr.bf16.mxu1 %v4688_v33 }
 0x254   : > { %v5622_v31 = vadd.f32 %v4105_v48, %v5483_v35  ;;  %v5624_v59 = vpop.f32.mrf.mxu0 }
 0x255   : > { %v4107_v19 = vpop.f32.mrf.mxu1 }
 0x256   : > { %v4108_v63 = vadd.f32 %v4107_v19, %v4106_v51  ;;  %v5626_v27 = vpop.f32.mrf.mxu0 }
 0x257   : > { %v4109_v62 = vpop.f32.mrf.mxu1 }
 0x258   : > { %v5629_v36 = vadd.f32 %v4108_v63, %v5486_v0  ;;  %v5631_v57 = vpop.f32.mrf.mxu0 }
 0x259   : > { %v4110_v14 = vpop.f32.mrf.mxu1 }
 0x25a   : > { %v4111_v35 = vadd.f32 %v4110_v14, %v4109_v62  ;;  %v5635_v46 = vpop.f32.mrf.mxu0  ;;  %4541 = vmatmul.mubr.bf16.gmra.mxu1 %v4689_v54  ;;  %v4691_v14 = vld [vmem:[%s4801_s20 + $0x48] sm:$0xff]  }
 0x25b   : > { %v4112_v47 = vpop.f32.mrf.mxu1  ;;  %4544 = vmatprep.mubr.bf16.mxu1 %v4690_v37 }
 0x25c   : > { %v5638_v55 = vadd.f32 %v4111_v35, %v5491_v58  ;;  %v5640_v2 = vpop.f32.mrf.mxu0  ;;  %v4692_v35 = vld [vmem:[%s4801_s20 + $0x50] sm:$0xff]  }
 0x25d   : > { %v4113_v0 = vpop.f32.mrf.mxu1 }
 0x25e   : > { %v4114_v15 = vadd.f32 %v4113_v0, %v4112_v47  ;;  %v5642_v41 = vpop.f32.mrf.mxu0 }
 0x25f   : > { %v4115_v32 = vpop.f32.mrf.mxu1 }
 0x260   : > { %v5645_v13 = vadd.f32 %v4114_v15, %v5494_v60  ;;  %v5647_v10 = vpop.f32.mrf.mxu0 }
 0x261   : > { %v4116_v30 = vpop.f32.mrf.mxu1 }
 0x262   : > { %v4117_v58 = vadd.f32 %v4116_v30, %v4115_v32  ;;  %v5651_v24 = vpop.f32.mrf.mxu0  ;;  %4545 = vmatmul.mubr.bf16.gmra.mxu1 %v4691_v14 }
 0x263   : > { %v4118_v50 = vpop.f32.mrf.mxu1  ;;  %4548 = vmatprep.mubr.bf16.mxu1 %v4692_v35 }
 0x264   : > { %v5654_v7 = vadd.f32 %v4117_v58, %v5504_v16  ;;  %v5656_v48 = vpop.f32.mrf.mxu0 }
 0x265   : > { %v4119_v60 = vpop.f32.mrf.mxu1 }
 0x266   : > { %6231 = vst [vmem:[#allocation4_spill] sm:$0xff] %v5654_v7  ;;  %v4120_v51 = vadd.f32 %v4119_v60, %v4118_v50  ;;  %v5658_v19 = vpop.f32.mrf.mxu0  ;;  %v4693_v60 = vld [vmem:[%s4801_s20 + $0x58] sm:$0xff]  }
 0x267   : > { %v4121_v63 = vpop.f32.mrf.mxu1 }
 0x268   : > { %v5661_v62 = vadd.f32 %v4120_v51, %v5507_v28  ;;  %v5663_v61 = vpop.f32.mrf.mxu0 }
 0x269   : > { %v4122_v33 = vpop.f32.mrf.mxu1 }
 0x26a   : > { %v4123_v16 = vadd.f32 %v4122_v33, %v4121_v63  ;;  %v5667_v47 = vpop.f32.mrf.mxu0  ;;  %4549 = vmatmul.mubr.bf16.gmra.mxu1 %v4693_v60  ;;  %v4694_v63 = vld [vmem:[%s4801_s20 + $0x60] sm:$0xff]  }
 0x26b   : > { %v4124_v0 = vpop.f32.mrf.mxu1  ;;  %4552 = vmatprep.mubr.bf16.mxu1 %v4694_v63  ;;  %v4695_v63 = vld [vmem:[%s4801_s20 + $0x68] sm:$0xff]  }
 0x26c   : > { %v5670_v15 = vadd.f32 %v4123_v16, %v5511_v6  ;;  %v5672_v32 = vpop.f32.mrf.mxu0 }
 0x26d   : > { %v4125_v28 = vpop.f32.mrf.mxu1 }
 0x26e   : > { %v4126_v54 = vadd.f32 %v4125_v28, %v4124_v0  ;;  %v5674_v30 = vpop.f32.mrf.mxu0 }
 0x26f   : > { %v4127_v37 = vpop.f32.mrf.mxu1 }
 0x270   : > { %v5677_v58 = vadd.f32 %v4126_v54, %v5513_v56  ;;  %v5679_v50 = vpop.f32.mrf.mxu0 }
 0x271   : > { %v4128_v51 = vpop.f32.mrf.mxu1 }
 0x272   : > { %6232 = vst [vmem:[#allocation5_spill] sm:$0xff] %v5677_v58  ;;  %v4129_v6 = vadd.f32 %v4128_v51, %v4127_v37  ;;  %v5683_v14 = vpop.f32.mrf.mxu0  ;;  %4553 = vmatmul.mubr.bf16.gmra.mxu1 %v4695_v63  ;;  %v4696_v51 = vld [vmem:[%s4801_s20 + $0x70] sm:$0xff]  }
 0x273   : > { %v4130_v33 = vpop.f32.mrf.mxu1  ;;  %4556 = vmatprep.mubr.bf16.mxu1 %v4696_v51  ;;  %v4697_v51 = vld [vmem:[%s4801_s20 + $0x78] sm:$0xff]  }
 0x274   : > { %v5686_v35 = vadd.f32 %v4129_v6, %v5518_v11  ;;  %v5688_v16 = vpop.f32.mrf.mxu0 }
 0x275   : > { %v4131_v56 = vpop.f32.mrf.mxu1 }
 0x276   : > { %6233 = vst [vmem:[#allocation6_spill] sm:$0xff] %v5686_v35  ;;  %v4132_v0 = vadd.f32 %v4131_v56, %v4130_v33  ;;  %v5690_v28 = vpop.f32.mrf.mxu0 }
 0x277   : > { %v4133_v54 = vpop.f32.mrf.mxu1 }
 0x278   : > { %v5693_v60 = vadd.f32 %v4132_v0, %v5520_v26  ;;  %v5695_v53 = vpop.f32.mrf.mxu0 }
 0x279   : > { %6235 = vst [vmem:[#allocation8_spill] sm:$0xff] %v5695_v53  ;;  %v4134_v37 = vpop.f32.mrf.mxu1 }
 0x27a   : > { %6234 = vst [vmem:[#allocation7_spill] sm:$0xff] %v5693_v60  ;;  %v4135_v11 = vadd.f32 %v4134_v37, %v4133_v54  ;;  %v5699_v6 = vpop.f32.mrf.mxu0  ;;  %4557 = vmatmul.mubr.bf16.gmra.mxu1 %v4697_v51 }
 0x27b   : > { %6236 = vst [vmem:[#allocation9_spill] sm:$0xff] %v5699_v6  ;;  %v4136_v35 = vpop.f32.mrf.mxu1 }
 0x27c   : > { %v5702_v33 = vadd.f32 %v4135_v11, %v5522_v20  ;;  %v5704_v56 = vpop.f32.mrf.mxu0 }
 0x27d   : > { %v4137_v58 = vpop.f32.mrf.mxu1 }
 0x27e   : > { %6237 = vst [vmem:[#allocation10_spill] sm:$0xff] %v5702_v33  ;;  %v4138_v26 = vadd.f32 %v4137_v58, %v4136_v35  ;;  %v5706_v0 = vpop.f32.mrf.mxu0 }
 0x27f   : > { %v4139_v53 = vpop.f32.mrf.mxu1 }
 0x280   : > { %v5709_v60 = vadd.f32 %v4138_v26, %v5524_v39  ;;  %v5711_v63 = vpop.f32.mrf.mxu0 }
 0x281   : > { %v4140_v54 = vpop.f32.mrf.mxu1 }
 0x282   : > { %6238 = vst [vmem:[#allocation11_spill] sm:$0xff] %v5709_v60  ;;  %v4141_v37 = vadd.f32 %v4140_v54, %v4139_v53  ;;  %v5714_v6 = vpop.f32.mrf.mxu0 }
 0x283   : > { %6239 = vst [vmem:[#allocation12_spill] sm:$0xff] %v5714_v6  ;;  %v4142_v20 = vpop.f32.mrf.mxu1 }
 0x284   : > { %v5717_v11 = vadd.f32 %v4141_v37, %v5532_v4  ;;  %v5719_v33 = vpop.f32.mrf.mxu0 }
 0x285   : > { %v4143_v58 = vpop.f32.mrf.mxu1 }
 0x286   : > { %6240 = vst [vmem:[#allocation13_spill] sm:$0xff] %v5717_v11  ;;  %v4144_v35 = vadd.f32 %v4143_v58, %v4142_v20  ;;  %v5721_v7 = vpop.f32.mrf.mxu0 }
 0x287   : > { %6241 = vst [vmem:[#allocation14_spill] sm:$0xff] %v5721_v7  ;;  %v4145_v39 = vpop.f32.mrf.mxu1 }
 0x288   : > { %v5724_v26 = vadd.f32 %v4144_v35, %v5534_v9  ;;  %v5726_v60 = vpop.f32.mrf.mxu0 }
 0x289   : > { %6243 = vst [vmem:[#allocation16_spill] sm:$0xff] %v5726_v60  ;;  %v4146_v51 = vpop.f32.mrf.mxu1 }
 0x28a   : > { %6242 = vst [vmem:[#allocation15_spill] sm:$0xff] %v5724_v26  ;;  %v4147_v53 = vadd.f32 %v4146_v51, %v4145_v39  ;;  %v5728_v54 = vpop.f32.mrf.mxu0 }
 0x28b   : > { %6244 = vst [vmem:[#allocation17_spill] sm:$0xff] %v5728_v54  ;;  %v4148_v6 = vpop.f32.mrf.mxu1 }
 0x28c   : > { %v5731_v4 = vadd.f32 %v4147_v53, %v5539_v17  ;;  %v5733_v37 = vpop.f32.mrf.mxu0 }
 0x28d   : > { %v4149_v11 = vpop.f32.mrf.mxu1 }
 0x28e   : > { %6245 = vst [vmem:[#allocation18_spill] sm:$0xff] %v5731_v4  ;;  %v4150_v20 = vadd.f32 %v4149_v11, %v4148_v6  ;;  %v5735_v58 = vpop.f32.mrf.mxu0 }
 0x28f   : > { %v4151_v7 = vpop.f32.mrf.mxu1 }
 0x290   : > { %v5738_v9 = vadd.f32 %v4150_v20, %v5541_v45  ;;  %v5740_v35 = vpop.f32.mrf.mxu0 }
 0x291   : > { %6247 = vst [vmem:[#allocation20_spill] sm:$0xff] %v5740_v35  ;;  %v4152_v60 = vpop.f32.mrf.mxu1 }
 0x292   : > { %6246 = vst [vmem:[#allocation19_spill] sm:$0xff] %v5738_v9  ;;  %v4153_v39 = vadd.f32 %v4152_v60, %v4151_v7  ;;  %v5742_v51 = vpop.f32.mrf.mxu0 }
 0x293   : > { %v4154_v54 = vpop.f32.mrf.mxu1 }
 0x294   : > { %v5745_v17 = vadd.f32 %v4153_v39, %v5549_v42  ;;  %v5747_v53 = vpop.f32.mrf.mxu0 }
 0x295   : > { %6249 = vst [vmem:[#allocation22_spill] sm:$0xff] %v5747_v53  ;;  %v4155_v4 = vpop.f32.mrf.mxu1 }
 0x296   : > { %6248 = vst [vmem:[#allocation21_spill] sm:$0xff] %v5745_v17  ;;  %v4156_v6 = vadd.f32 %v4155_v4, %v4154_v54  ;;  %v5752_v45 = vpop.f32.mrf.mxu0 }
 0x297   : > { %v4157_v11 = vpop.f32.mrf.mxu1 }
 0x298   : > { %v5750_v26 = vadd.f32 %v4156_v6, %v5551_v34  ;;  %v5754_v7 = vpop.f32.mrf.mxu0 }
 0x299   : > { %v4158_v20 = vpop.f32.mrf.mxu1  ;;  %6251 = vst [vmem:[#allocation24_spill] sm:$0xff] %v5754_v7 }
 0x29a   : > { %6250 = vst [vmem:[#allocation23_spill] sm:$0xff] %v5750_v26  ;;  %v4159_v9 = vadd.f32 %v4158_v20, %v4157_v11  ;;  %v5759_v53 = vpop.f32.mrf.mxu0 }
 0x29b   : > { %v4160_v35 = vpop.f32.mrf.mxu1 }
 0x29c   : > { %v5757_v60 = vadd.f32 %v4159_v9, %v5556_v38  ;;  %v5764_v26 = vpop.f32.mrf.mxu0 }
 0x29d   : > { %v4161_v42 = vpop.f32.mrf.mxu1 }
 0x29e   : > { %6252 = vst [vmem:[#allocation25_spill] sm:$0xff] %v5757_v60  ;;  %v4162_v39 = vadd.f32 %v4161_v42, %v4160_v35  ;;  %v5769_v9 = vpop.f32.mrf.mxu0 }
 0x29f   : > { %v4163_v17 = vpop.f32.mrf.mxu1 }
 0x2a0   : > { %v5762_v54 = vadd.f32 %v4162_v39, %v5558_v21  ;;  %v5774_v39 = vpop.f32.mrf.mxu0 }
 0x2a1   : > { %v4164_v34 = vpop.f32.mrf.mxu1 }
 0x2a2   : > { %6253 = vst [vmem:[#allocation26_spill] sm:$0xff] %v5762_v54  ;;  %v4165_v4 = vadd.f32 %v4164_v34, %v4163_v17 }
 0x2a3   : > { %v4166_v6 = vpop.f32.mrf.mxu1 }
 0x2a4   : > { %v5767_v11 = vadd.f32 %v4165_v4, %v5567_v22  ;;  %v5779_v4 = vpop.f32.mrf.mxu0 }
 0x2a5   : > { %v4167_v20 = vpop.f32.mrf.mxu1 }
 0x2a6   : > { %6254 = vst [vmem:[#allocation27_spill] sm:$0xff] %v5767_v11  ;;  %v4168_v7 = vadd.f32 %v4167_v20, %v4166_v6 }
 0x2a7   : > { %v4169_v38 = vpop.f32.mrf.mxu1 }
 0x2a8   : > { %v5772_v35 = vadd.f32 %v4168_v7, %v5569_v44  ;;  %v5784_v7 = vpop.f32.mrf.mxu0 }
 0x2a9   : > { %v4170_v42 = vpop.f32.mrf.mxu1 }
 0x2aa   : > { %v4171_v60 = vadd.f32 %v4170_v42, %v4169_v38 }
 0x2ab   : > { %v4172_v21 = vpop.f32.mrf.mxu1 }
 0x2ac   : > { %v5777_v17 = vadd.f32 %v4171_v60, %v5575_v3  ;;  %v4208_v3 = vadd.f32 %v5610_v1, %v5606_v12  ;;  %v5806_v12 = vld [vmem:[%s6221_s5] ss:$0 sm:$0xff] }
 0x2ad   : > { %v4173_v34 = vpop.f32.mrf.mxu1 }
 0x2ae   : > { %v4174_v54 = vadd.f32 %v4173_v34, %v4172_v21  ;;  %v5793_v34 = vpop.f32.mrf.mxu0 }
 0x2af   : > { %v4175_v22 = vpop.f32.mrf.mxu1 }
 0x2b0   : > { %v5782_v6 = vadd.f32 %v4174_v54, %v5577_v8  ;;  %v5808_v1 = vpop.f32.mrf.mxu0 }
 0x2b1   : > { %v4176_v20 = vpop.f32.mrf.mxu1 }
 0x2b2   : > { %v4177_v11 = vadd.f32 %v4176_v20, %v4175_v22  ;;  %v4211_v22 = vadd.f32 %v5619_v5, %v5615_v49  ;;  %v5820_v5 = vld [vmem:[%s6222_s6] ss:$0 sm:$0xff] }
 0x2b3   : > { %v4178_v44 = vpop.f32.mrf.mxu1 }
 0x2b4   : > { %v5787_v38 = vadd.f32 %v4177_v11, %v5579_v40  ;;  %v2530_v40 = vadd.f32 %v4208_v3, %v5597_v43  ;;  %v2533_v49 = vadd.f32 %v4211_v22, %v5604_v52  ;;  %v4214_v43 = vadd.f32 %v5626_v27, %v5624_v59 }
 0x2b5   : > { %v4179_v42 = vpop.f32.mrf.mxu1  ;;  %v4217_v27 = vadd.f32 %v5635_v46, %v5631_v57  ;;  %v4223_v22 = vadd.f32 %v5651_v24, %v5647_v10 }
 0x2b6   : > { %6255 = vst [vmem:[#allocation28_spill] sm:$0xff] %v5787_v38  ;;  %v4180_v60 = vadd.f32 %v4179_v42, %v4178_v44  ;;  %v2538_v38 = vadd.f32 %v4214_v43, %v5613_v29 }
 0x2b7   : > { %v5791_v21 = vpop.f32.mrf.mxu1  ;;  %v2549_v43 = vadd.f32 %v4223_v22, %v5638_v55 }
 0x2b8   : > { %v5796_v8 = vadd.f32 %v4180_v60, %v5585_v18  ;;  %v4220_v18 = vadd.f32 %v5642_v41, %v5640_v2 }
 0x2b9   : > { %v5798_v54 = vpop.f32.mrf.mxu1 }
 0x2ba   : > { %v2546_v59 = vadd.f32 %v4220_v18, %v5629_v36  ;;  %v4232_v36 = vadd.f32 %v5674_v30, %v5672_v32 }
 0x2bb   : > { %v4434_v11 = vpop.f32.mrf.mxu1 }
 0x2bc   : > { %v2691_v20 = vadd.f32 %v4434_v11, %v2530_v40  ;;  %v5822_v40 = vpop.f32.mrf.mxu0  ;;  %v2562_v55 = vadd.f32 %v4232_v36, %v5661_v62 }
 0x2bd   : > { %v2682_v44 = vpop.f32.mrf.mxu1 }
 0x2be   : > { %v2818_v42 = vmul.f32 %v5806_v12, %v2691_v20  ;;  %v2683_v60 = vadd.f32 %v2682_v44, %v5600_v23 }
 0x2bf   : > { %v4435_v3 = vpop.f32.mrf.mxu1 }
 0x2c0   : > { %v2816_v11 = vmul.f32 %v5806_v12, %v2683_v60  ;;  %v2694_v2 = vadd.f32 %v4435_v3, %v2533_v49  ;;  %v2857_v20 = vadd.f32 %v5820_v5, %v2818_v42  ;;  %v5834_v60 = vpop.f32.mrf.mxu0 }
 0x2c1   : > { %v2685_v41 = vpop.f32.mrf.mxu1 }
 0x2c2   : > { %v2819_v23 = vmul.f32 %v5806_v12, %v2694_v2  ;;  %v2686_v52 = vadd.f32 %v2685_v41, %v5608_v25  ;;  %v2855_v49 = vadd.f32 %v5820_v5, %v2816_v11  ;;  %v2889_v57 = vmax.f32 %v2857_v20, 0.0 }
 0x2c3   : > { %v4438_v44 = vpop.f32.mrf.mxu1  ;;  %v2541_v11 = vadd.f32 %v4217_v27, %v5622_v31  ;;  %v4226_v41 = vadd.f32 %v5658_v19, %v5656_v48  ;;  %v4235_v20 = vadd.f32 %v5683_v14, %v5679_v50  ;;  %v4229_v27 = vadd.f32 %v5667_v47, %v5663_v61 }
 0x2c4   : > { %v2858_v42 = vadd.f32 %v5820_v5, %v2819_v23  ;;  %v2817_v3 = vmul.f32 %v5806_v12, %v2686_v52  ;;  %v2707_v25 = vadd.f32 %v4438_v44, %v2546_v59  ;;  %v5847_v23 = vpop.f32.mrf.mxu0  ;;  %v2887_v52 = vmax.f32 %v2855_v49, 0.0 }
 0x2c5   : > { %v2698_v18 = vpop.f32.mrf.mxu1 }
 0x2c6   : > { %v2890_v46 = vmax.f32 %v2858_v42, 0.0  ;;  %v2856_v10 = vadd.f32 %v5820_v5, %v2817_v3  ;;  %v2699_v24 = vadd.f32 %v2698_v18, %v2538_v38  ;;  %v2822_v29 = vmul.f32 %v5806_v12, %v2707_v25  ;;  %v5857_v49 = vpop.f32.mrf.mxu0 }
 0x2c7   : > { %v4439_v2 = vpop.f32.mrf.mxu1  ;;  %v2554_v3 = vadd.f32 %v4226_v41, %v5645_v13  ;;  %v2565_v18 = vadd.f32 %v4235_v20, %v5670_v15  ;;  %v6256_v41 = vld [vmem:[#allocation4_spill] sm:$0xff] }
 0x2c8   : > { %v2920_v32 = vpack.c.bf16 %v2890_v46, %v2889_v57  ;;  %v2888_v30 = vmax.f32 %v2856_v10, 0.0  ;;  %v2820_v38 = vmul.f32 %v5806_v12, %v2699_v24  ;;  %v2710_v59 = vadd.f32 %v4439_v2, %v2549_v43  ;;  %v5870_v43 = vpop.f32.mrf.mxu0 }
 0x2c9   : > { %v2701_v44 = vpop.f32.mrf.mxu1  ;;  %v2861_v31 = vadd.f32 %v5820_v5, %v2822_v29  ;;  %v4244_v57 = vadd.f32 %v5706_v0, %v5704_v56  ;;  %v4238_v10 = vadd.f32 %v5690_v28, %v5688_v16  ;;  %v6257_v16 = vld [vmem:[#allocation7_spill] sm:$0xff] }
 0x2ca   : > { %v2702_v42 = vadd.f32 %v2701_v44, %v2541_v11  ;;  %v2919_v22 = vpack.c.bf16 %v2888_v30, %v2887_v52  ;;  %v2823_v48 = vmul.f32 %v5806_v12, %v2710_v59  ;;  %v2859_v25 = vadd.f32 %v5820_v5, %v2820_v38  ;;  %v6258_v59 = vld [vmem:[#allocation8_spill] sm:$0xff]  ;;  %v6259_v44 = vld [vmem:[#allocation9_spill] sm:$0xff] }
 0x2cb   : > { %v4442_v19 = vpop.f32.mrf.mxu1  ;;  %v2893_v13 = vmax.f32 %v2861_v31, 0.0  ;;  %v2557_v52 = vadd.f32 %v4229_v27, %v6256_v41  ;;  %v2578_v28 = vadd.f32 %v4244_v57, %v6257_v16  ;;  %v6266_v16 = vld [vmem:[#allocation15_spill] sm:$0xff] }
 0x2cc   : > { %v2821_v50 = vmul.f32 %v5806_v12, %v2702_v42  ;;  %v2723_v14 = vadd.f32 %v4442_v19, %v2562_v55  ;;  %4480 = vmatprep.mubr.bf16.mxu0 %v2919_v22  ;;  %v2862_v62 = vadd.f32 %v5820_v5, %v2823_v48  ;;  %v2891_v56 = vmax.f32 %v2859_v25, 0.0  ;;  %v6260_v55 = vld [vmem:[#allocation12_spill] sm:$0xff]  ;;  %v6261_v19 = vld [vmem:[#allocation5_spill] sm:$0xff] }
 0x2cd   : > { %v2714_v36 = vpop.f32.mrf.mxu1  ;;  %4481 = vmatmul.mubr.bf16.vlgmr.msra.gmra.mxu0 %v2920_v32  ;;  %v4241_v42 = vadd.f32 %v6259_v44, %v6258_v59  ;;  %v4247_v22 = vadd.f32 %v6260_v55, %v5711_v63  ;;  %v2570_v27 = vadd.f32 %v4238_v10, %v6261_v19  ;;  %v6262_v10 = vld [vmem:[#allocation10_spill] sm:$0xff]  ;;  %v6267_v55 = vld [vmem:[#allocation16_spill] sm:$0xff] }
 0x2ce   : > { %v2860_v61 = vadd.f32 %v5820_v5, %v2821_v50  ;;  %v2826_v47 = vmul.f32 %v5806_v12, %v2723_v14  ;;  %v2715_v46 = vadd.f32 %v2714_v36, %v2554_v3  ;;  %v2894_v24 = vmax.f32 %v2862_v62, 0.0  ;;  %v5882_v50 = vpop.f32.mrf.mxu0 }
 0x2cf   : > { %v4443_v29 = vpop.f32.mrf.mxu1  ;;  %v4256_v36 = vadd.f32 %v5735_v58, %v5733_v37 }
 0x2d0   : > { %v2892_v2 = vmax.f32 %v2860_v61, 0.0  ;;  %v2824_v11 = vmul.f32 %v5806_v12, %v2715_v46  ;;  %v2726_v15 = vadd.f32 %v4443_v29, %v2565_v18  ;;  %v2922_v0 = vpack.c.bf16 %v2894_v24, %v2893_v13  ;;  %v6263_v29 = vld [vmem:[#allocation6_spill] sm:$0xff]  ;;  %v5895_v41 = vpop.f32.mrf.mxu0 }
 0x2d1   : > { %v2717_v32 = vpop.f32.mrf.mxu1  ;;  %v2865_v30 = vadd.f32 %v5820_v5, %v2826_v47  ;;  %v2581_v13 = vadd.f32 %v4247_v22, %v6262_v10  ;;  %v6268_v22 = vld [vmem:[#allocation17_spill] sm:$0xff] }
 0x2d2   : > { %v2827_v20 = vmul.f32 %v5806_v12, %v2726_v15  ;;  %v2718_v38 = vadd.f32 %v2717_v32, %v2557_v52  ;;  %v2921_v48 = vpack.c.bf16 %v2892_v2, %v2891_v56  ;;  %v2863_v14 = vadd.f32 %v5820_v5, %v2824_v11  ;;  %v6264_v11 = vld [vmem:[#allocation14_spill] sm:$0xff]  ;;  %v6265_v56 = vld [vmem:[#allocation20_spill] sm:$0xff] }
 0x2d3   : > { %v4446_v31 = vpop.f32.mrf.mxu1  ;;  %v2897_v57 = vmax.f32 %v2865_v30, 0.0  ;;  %v2573_v2 = vadd.f32 %v4241_v42, %v6263_v29  ;;  %v4250_v15 = vadd.f32 %v6264_v11, %v5719_v33  ;;  %v4259_v32 = vadd.f32 %v5742_v51, %v6265_v56 }
 0x2d4   : > { %v2866_v3 = vadd.f32 %v5820_v5, %v2827_v20  ;;  %v2825_v25 = vmul.f32 %v5806_v12, %v2718_v38  ;;  %v2739_v62 = vadd.f32 %v4446_v31, %v2578_v28  ;;  %4484 = vmatprep.mubr.bf16.mxu0 %v2921_v48  ;;  %v2895_v37 = vmax.f32 %v2863_v14, 0.0  ;;  %v5905_v48 = vpop.f32.mrf.mxu0 }
 0x2d5   : > { %v2730_v18 = vpop.f32.mrf.mxu1  ;;  %4485 = vmatmul.mubr.bf16.gmra.mxu0 %v2922_v0  ;;  %v2594_v28 = vadd.f32 %v4256_v36, %v6266_v16  ;;  %v4253_v31 = vadd.f32 %v6268_v22, %v6267_v55  ;;  %v6270_v36 = vld [vmem:[#allocation18_spill] sm:$0xff] }
 0x2d6   : > { %v2898_v63 = vmax.f32 %v2866_v3, 0.0  ;;  %v2864_v61 = vadd.f32 %v5820_v5, %v2825_v25  ;;  %v2731_v47 = vadd.f32 %v2730_v18, %v2570_v27  ;;  %v2830_v46 = vmul.f32 %v5806_v12, %v2739_v62  ;;  %v6269_v27 = vld [vmem:[#allocation11_spill] sm:$0xff] }
 0x2d7   : > { %v4447_v24 = vpop.f32.mrf.mxu1  ;;  %v2586_v14 = vadd.f32 %v4250_v15, %v6269_v27  ;;  %v2597_v18 = vadd.f32 %v4259_v32, %v6270_v36  ;;  %v4280_v27 = vadd.f32 %v5847_v23, %v5834_v60 }
 0x2d8   : > { %v2924_v58 = vpack.c.bf16 %v2898_v63, %v2897_v57  ;;  %v2896_v52 = vmax.f32 %v2864_v61, 0.0  ;;  %v2828_v0 = vmul.f32 %v5806_v12, %v2731_v47  ;;  %v2742_v30 = vadd.f32 %v4447_v24, %v2581_v13 }
 0x2d9   : > { %v2733_v20 = vpop.f32.mrf.mxu1  ;;  %v2869_v44 = vadd.f32 %v5820_v5, %v2830_v46  ;;  %v4268_v57 = vadd.f32 %v5769_v9, %v5764_v26  ;;  %v6271_v46 = vld [vmem:[#allocation22_spill] sm:$0xff] }
 0x2da   : > { %v2734_v38 = vadd.f32 %v2733_v20, %v2573_v2  ;;  %v2923_v59 = vpack.c.bf16 %v2896_v52, %v2895_v37  ;;  %v2831_v33 = vmul.f32 %v5806_v12, %v2742_v30  ;;  %v2867_v3 = vadd.f32 %v5820_v5, %v2828_v0  ;;  %v5918_v2 = vpop.f32.mrf.mxu0  ;;  %v6272_v52 = vld [vmem:[#allocation13_spill] sm:$0xff] }
 0x2db   : > { %v4450_v42 = vpop.f32.mrf.mxu1  ;;  %v4262_v10 = vadd.f32 %v5752_v45, %v6271_v46  ;;  %v2901_v13 = vmax.f32 %v2869_v44, 0.0  ;;  %v2589_v26 = vadd.f32 %v4253_v31, %v6272_v52  ;;  %v6273_v45 = vld [vmem:[#allocation23_spill] sm:$0xff] }
 0x2dc   : > { %v2829_v51 = vmul.f32 %v5806_v12, %v2734_v38  ;;  %v2755_v19 = vadd.f32 %v4450_v42, %v2594_v28  ;;  %4488 = vmatprep.mubr.bf16.mxu0 %v2923_v59  ;;  %v2870_v25 = vadd.f32 %v5820_v5, %v2831_v33  ;;  %v2899_v9 = vmax.f32 %v2867_v3, 0.0  ;;  %v6274_v38 = vld [vmem:[#allocation24_spill] sm:$0xff]  ;;  %v6275_v33 = vld [vmem:[#allocation19_spill] sm:$0xff]  ;;  %v4290_v55 = vpop.f32.mrf.mxu0 }
 0x2dd   : > { %v2746_v62 = vpop.f32.mrf.mxu1  ;;  %4489 = vmatmul.mubr.bf16.gmra.mxu0 %v2924_v58  ;;  %v2610_v20 = vadd.f32 %v4268_v57, %v6273_v45  ;;  %v4265_v16 = vadd.f32 %v5759_v53, %v6274_v38  ;;  %v4271_v28 = vadd.f32 %v5779_v4, %v5774_v39  ;;  %v2602_v42 = vadd.f32 %v4262_v10, %v6275_v33  ;;  %v6277_v57 = vld [vmem:[#allocation21_spill] sm:$0xff] }
 0x2de   : > { %v2868_v63 = vadd.f32 %v5820_v5, %v2829_v51  ;;  %v2834_v61 = vmul.f32 %v5806_v12, %v2755_v19  ;;  %v2747_v47 = vadd.f32 %v2746_v62, %v2586_v14  ;;  %v2902_v24 = vmax.f32 %v2870_v25, 0.0  ;;  %v6276_v62 = vld [vmem:[#allocation25_spill] sm:$0xff] }
 0x2df   : > { %v4451_v29 = vpop.f32.mrf.mxu1  ;;  %v2613_v36 = vadd.f32 %v4271_v28, %v6276_v62  ;;  %v4283_v10 = vadd.f32 %v5870_v43, %v5857_v49  ;;  %v6278_v43 = vld [vmem:[#allocation26_spill] sm:$0xff] }
 0x2e0   : > { %v2900_v11 = vmax.f32 %v2868_v63, 0.0  ;;  %v2832_v15 = vmul.f32 %v5806_v12, %v2747_v47  ;;  %v2758_v37 = vadd.f32 %v4451_v29, %v2597_v18  ;;  %v2926_v56 = vpack.c.bf16 %v2902_v24, %v2901_v13  ;;  %v4291_v47 = vpop.f32.mrf.mxu0 }
 0x2e1   : > { %v2749_v32 = vpop.f32.mrf.mxu1  ;;  %v2873_v0 = vadd.f32 %v5820_v5, %v2834_v61  ;;  %v2605_v63 = vadd.f32 %v4265_v16, %v6277_v57  ;;  %v4274_v61 = vadd.f32 %v5793_v34, %v5784_v7  ;;  %v4277_v34 = vadd.f32 %v5822_v40, %v5808_v1  ;;  %v6280_v57 = vld [vmem:[#allocation3_spill] sm:$0xff] }
 0x2e2   : > { %v2835_v58 = vmul.f32 %v5806_v12, %v2758_v37  ;;  %v2750_v30 = vadd.f32 %v2749_v32, %v2589_v26  ;;  %v2925_v44 = vpack.c.bf16 %v2900_v11, %v2899_v9  ;;  %v2871_v22 = vadd.f32 %v5820_v5, %v2832_v15  ;;  %v4293_v9 = vpop.f32.mrf.mxu0 }
 0x2e3   : > { %v4454_v59 = vpop.f32.mrf.mxu1  ;;  %v2905_v14 = vmax.f32 %v2873_v0, 0.0  ;;  %v2626_v15 = vadd.f32 %v4280_v27, %v5772_v35  ;;  %v2618_v32 = vadd.f32 %v4274_v61, %v6278_v43  ;;  %v4292_v45 = vadd.f32 %v4291_v47, %v4290_v55 }
 0x2e4   : > { %v2874_v31 = vadd.f32 %v5820_v5, %v2835_v58  ;;  %v2833_v51 = vmul.f32 %v5806_v12, %v2750_v30  ;;  %v2771_v19 = vadd.f32 %v4454_v59, %v2610_v20  ;;  %4492 = vmatprep.mubr.bf16.mxu0 %v2925_v44  ;;  %v2903_v60 = vmax.f32 %v2871_v22, 0.0  ;;  %v4294_v44 = vpop.f32.mrf.mxu0 }
 0x2e5   : > { %v2762_v53 = vpop.f32.mrf.mxu1  ;;  %4493 = vmatmul.mubr.bf16.gmra.mxu0 %v2926_v56  ;;  %v2629_v30 = vadd.f32 %v4283_v10, %v5777_v17  ;;  %v4286_v40 = vadd.f32 %v5895_v41, %v5882_v50  ;;  %v4183_v55 = vadd.f32 %v5798_v54, %v5791_v21 }
 0x2e6   : > { %v2906_v3 = vmax.f32 %v2874_v31, 0.0  ;;  %v2872_v39 = vadd.f32 %v5820_v5, %v2833_v51  ;;  %v2763_v4 = vadd.f32 %v2762_v53, %v2602_v42  ;;  %v2838_v25 = vmul.f32 %v5806_v12, %v2771_v19  ;;  %v6279_v31 = vld [vmem:[#allocation27_spill] sm:$0xff] }
 0x2e7   : > { %v4455_v18 = vpop.f32.mrf.mxu1  ;;  %v2621_v17 = vadd.f32 %v4277_v34, %v6279_v31  ;;  %v2634_v62 = vadd.f32 %v4286_v40, %v5782_v6 }
 0x2e8   : > { %v2928_v23 = vpack.c.bf16 %v2906_v3, %v2905_v14  ;;  %v2904_v46 = vmax.f32 %v2872_v39, 0.0  ;;  %v2836_v13 = vmul.f32 %v5806_v12, %v2763_v4  ;;  %v2774_v24 = vadd.f32 %v4455_v18, %v2613_v36 }
 0x2e9   : > { %v2765_v29 = vpop.f32.mrf.mxu1  ;;  %v2877_v52 = vadd.f32 %v5820_v5, %v2838_v25  ;;  %v2642_v14 = vadd.f32 %v4292_v45, %v5796_v8  ;;  %v4289_v3 = vadd.f32 %v5918_v2, %v5905_v48  ;;  %v4295_v39 = vadd.f32 %v4294_v44, %v4293_v9 }
 0x2ea   : > { %v2766_v11 = vadd.f32 %v2765_v29, %v2605_v63  ;;  %v2927_v37 = vpack.c.bf16 %v2904_v46, %v2903_v60  ;;  %v2839_v26 = vmul.f32 %v5806_v12, %v2774_v24  ;;  %v2875_v0 = vadd.f32 %v5820_v5, %v2836_v13  ;;  %v6281_v46 = vld [vmem:[#allocation28_spill] sm:$0xff] }
 0x2eb   : > { %v4458_v7 = vpop.f32.mrf.mxu1  ;;  %v2909_v16 = vmax.f32 %v2877_v52, 0.0  ;;  %v2484_v63 = vadd.f32 %v4183_v55, %v6280_v57  ;;  %v2637_v10 = vadd.f32 %v4289_v3, %v6281_v46  ;;  %v5997_v55 = vld [vmem:[%s6227_s11] ss:$0 sm:$0xff] }
 0x2ec   : > { %v2837_v56 = vmul.f32 %v5806_v12, %v2766_v11  ;;  %v2787_v49 = vadd.f32 %v4458_v7, %v2626_v15  ;;  %4496 = vmatprep.mubr.bf16.mxu0 %v2927_v37  ;;  %v2878_v35 = vadd.f32 %v5820_v5, %v2839_v26  ;;  %v2907_v51 = vmax.f32 %v2875_v0, 0.0  ;;  %v6018_v3 = vld [vmem:[%s6225_s9] ss:$0 sm:$0xff] }
 0x2ed   : > { %v2778_v58 = vpop.f32.mrf.mxu1  ;;  %4497 = vmatmul.mubr.bf16.gmra.mxu0 %v2928_v23  ;;  %v2645_v6 = vadd.f32 %v4295_v39, %v2484_v63 }
 0x2ee   : > { %v2876_v20 = vadd.f32 %v5820_v5, %v2837_v56  ;;  %v2842_v38 = vmul.f32 %v5806_v12, %v2787_v49  ;;  %v2779_v1 = vadd.f32 %v2778_v58, %v2618_v32  ;;  %v2910_v28 = vmax.f32 %v2878_v35, 0.0 }
 0x2ef   : > { %v4459_v59 = vpop.f32.mrf.mxu1 }
 0x2f0   : > { %v2908_v33 = vmax.f32 %v2876_v20, 0.0  ;;  %v2840_v42 = vmul.f32 %v5806_v12, %v2779_v1  ;;  %v2790_v22 = vadd.f32 %v4459_v59, %v2629_v30  ;;  %v2930_v19 = vpack.c.bf16 %v2910_v28, %v2909_v16 }
 0x2f1   : > { %v2781_v27 = vpop.f32.mrf.mxu1  ;;  %v2881_v53 = vadd.f32 %v5820_v5, %v2842_v38 }
 0x2f2   : > { %v2843_v50 = vmul.f32 %v5806_v12, %v2790_v22  ;;  %v2782_v41 = vadd.f32 %v2781_v27, %v2621_v17  ;;  %v2929_v25 = vpack.c.bf16 %v2908_v33, %v2907_v51  ;;  %v2879_v21 = vadd.f32 %v5820_v5, %v2840_v42  ;;  %v6005_v27 = vld [vmem:[%s6228_s12] ss:$0 sm:$0xff] }
 0x2f3   : > { %v4462_v4 = vpop.f32.mrf.mxu1  ;;  %v2913_v8 = vmax.f32 %v2881_v53, 0.0  ;;  %v6010_v53 = vld [vmem:[%s6224_s8] ss:$0 sm:$0xff] }
 0x2f4   : > { %v2882_v54 = vadd.f32 %v5820_v5, %v2843_v50  ;;  %v2841_v36 = vmul.f32 %v5806_v12, %v2782_v41  ;;  %v2803_v18 = vadd.f32 %v4462_v4, %v2642_v14  ;;  %4500 = vmatprep.mubr.bf16.mxu0 %v2929_v25  ;;  %v2911_v13 = vmax.f32 %v2879_v21, 0.0 }
 0x2f5   : > { %v2794_v61 = vpop.f32.mrf.mxu1  ;;  %4501 = vmatmul.mubr.bf16.gmra.mxu0 %v2930_v19 }
 0x2f6   : > { %v2914_v47 = vmax.f32 %v2882_v54, 0.0  ;;  %v2880_v48 = vadd.f32 %v5820_v5, %v2841_v36  ;;  %v2795_v2 = vadd.f32 %v2794_v61, %v2634_v62  ;;  %v2846_v60 = vmul.f32 %v5806_v12, %v2803_v18 }
 0x2f7   : > { %v4463_v23 = vpop.f32.mrf.mxu1 }
 0x2f8   : > { %v2932_v24 = vpack.c.bf16 %v2914_v47, %v2913_v8  ;;  %v2912_v29 = vmax.f32 %v2880_v48, 0.0  ;;  %v2844_v11 = vmul.f32 %v5806_v12, %v2795_v2  ;;  %v2806_v15 = vadd.f32 %v4463_v23, %v2645_v6 }
 0x2f9   : > { %v2797_v37 = vpop.f32.mrf.mxu1  ;;  %v2885_v7 = vadd.f32 %v5820_v5, %v2846_v60 }
 0x2fa   : > { %v2798_v52 = vadd.f32 %v2797_v37, %v2637_v10  ;;  %v2931_v26 = vpack.c.bf16 %v2912_v29, %v2911_v13  ;;  %v2847_v34 = vmul.f32 %v5806_v12, %v2806_v15  ;;  %v2883_v9 = vadd.f32 %v5820_v5, %v2844_v11 }
 0x2fb   : > { %v2917_v32 = vmax.f32 %v2885_v7, 0.0  ;;  %v4530_v20 = vpop.f32.mrf.mxu1 }
 0x2fc   : > { %v2845_v56 = vmul.f32 %v5806_v12, %v2798_v52  ;;  %4504 = vmatprep.mubr.bf16.mxu0 %v2931_v26  ;;  %v2886_v49 = vadd.f32 %v5820_v5, %v2847_v34  ;;  %v2915_v35 = vmax.f32 %v2883_v9, 0.0  ;;  %v3472_v19 = vmul.f32 %v4530_v20, %v5997_v55 }
 0x2fd   : > { %4505 = vmatmul.mubr.bf16.gmra.mxu0 %v2932_v24  ;;  %v3336_v38 = vpop.f32.mrf.mxu1 }
 0x2fe   : > { %v2884_v43 = vadd.f32 %v5820_v5, %v2845_v56  ;;  %v2918_v0 = vmax.f32 %v2886_v49, 0.0  ;;  %v3470_v41 = vmul.f32 %v5997_v55, %v3336_v38  ;;  %v3511_v39 = vadd.f32 %v6005_v27, %v3472_v19 }
 0x2ff   : > { %v4531_v1 = vpop.f32.mrf.mxu1 }
 0x300   : > { %v2916_v58 = vmax.f32 %v2884_v43, 0.0  ;;  %v2934_v30 = vpack.c.bf16 %v2918_v0, %v2917_v32  ;;  %v3473_v25 = vmul.f32 %v4531_v1, %v5997_v55  ;;  %v3509_v18 = vadd.f32 %v6005_v27, %v3470_v41 }
 0x301   : > { %v3339_v40 = vpop.f32.mrf.mxu1 }
 0x302   : > { %v2933_v45 = vpack.c.bf16 %v2916_v58, %v2915_v35  ;;  %v3471_v61 = vmul.f32 %v5997_v55, %v3339_v40  ;;  %v3512_v48 = vadd.f32 %v6005_v27, %v3473_v25 }
 0x304   : > { %4508 = vmatprep.mubr.bf16.mxu0 %v2933_v45  ;;  %v3510_v24 = vadd.f32 %v6005_v27, %v3471_v61 }
 0x305   : > { %4509 = vmatmul.mubr.bf16.gmra.mxu0 %v2934_v30 }
 0x30a   : > { %v4534_v16 = vpop.f32.mrf.mxu1 }
 0x30b   : > { %v3476_v2 = vmul.f32 %v4534_v16, %v5997_v55 }
 0x30c   : > { %v3352_v12 = vpop.f32.mrf.mxu1 }
 0x30d   : > { %v3515_v52 = vadd.f32 %v6005_v27, %v3476_v2  ;;  %v3474_v26 = vmul.f32 %v5997_v55, %v3352_v12 }
 0x30e   : > { %v4535_v28 = vpop.f32.mrf.mxu1 }
 0x30f   : > { %v3477_v49 = vmul.f32 %v4535_v28, %v5997_v55  ;;  %v3513_v20 = vadd.f32 %v6005_v27, %v3474_v26 }
 0x310   : > { %v3355_v59 = vpop.f32.mrf.mxu1 }
 0x311   : > { %v3475_v58 = vmul.f32 %v5997_v55, %v3355_v59  ;;  %v3516_v12 = vadd.f32 %v6005_v27, %v3477_v49 }
 0x312   : > { %v4538_v44 = vpop.f32.mrf.mxu1 }
 0x313   : > { %v3480_v30 = vmul.f32 %v4538_v44, %v5997_v55 }
 0x314   : > { %v5982_v33 = vpop.f32.mrf.mxu1 }
 0x316   : > { %v5984_v5 = vpop.f32.mrf.mxu1 }
 0x318   : > { %v5986_v42 = vpop.f32.mrf.mxu1 }
 0x31a   : > { %v5988_v22 = vpop.f32.mrf.mxu1 }
 0x31c   : > { %v5990_v31 = vpop.f32.mrf.mxu1 }
 0x31e   : > { %v5992_v17 = vpop.f32.mrf.mxu1 }
 0x320   : > { %v5999_v51 = vpop.f32.mrf.mxu1 }
 0x322   : > { %v6012_v50 = vpop.f32.mrf.mxu1 }
 0x324   : > { %v6023_v21 = vpop.f32.mrf.mxu1 }
 0x326   : > { %v6039_v6 = vpop.f32.mrf.mxu1 }
 0x328   : > { %v6049_v34 = vpop.f32.mrf.mxu1 }
 0x32a   : > { %v6061_v16 = vpop.f32.mrf.mxu1 }
 0x38d   : > { %v4482_v14 = vpop.f32.mrf.mxu0 }
 0x38e   : > { %v3169_v4 = vmul.f32 %v4482_v14, %v6010_v53  ;;  %v3514_v14 = vadd.f32 %v6005_v27, %v3475_v58  ;;  %v3485_v58 = vmul.f32 %v5992_v17, %v5997_v55 }
 0x38f   : > { %v3033_v62 = vpop.f32.mrf.mxu0 }
 0x390   : > { %v3208_v54 = vadd.f32 %v6018_v3, %v3169_v4  ;;  %v3167_v36 = vmul.f32 %v6010_v53, %v3033_v62  ;;  %v3478_v4 = vmul.f32 %v5997_v55, %v5982_v33 }
 0x391   : > { %v4483_v57 = vpop.f32.mrf.mxu0 }
 0x392   : > { %v3543_v63 = vadd.f32 %v3511_v39, %v3208_v54  ;;  %v3206_v8 = vadd.f32 %v6018_v3, %v3167_v36  ;;  %v3170_v47 = vmul.f32 %v4483_v57, %v6010_v53  ;;  %v3519_v39 = vadd.f32 %v6005_v27, %v3480_v30  ;;  %v6074_v57 = vpop.f32.mrf.mxu1 }
 0x393   : > { %v3036_v60 = vpop.f32.mrf.mxu0  ;;  %v3517_v2 = vadd.f32 %v6005_v27, %v3478_v4 }
 0x394   : > { %v3575_v23 = vmax.f32 %v3543_v63, 0.0  ;;  %v3541_v46 = vadd.f32 %v3509_v18, %v3206_v8  ;;  %v3209_v10 = vadd.f32 %v6018_v3, %v3170_v47  ;;  %v3168_v13 = vmul.f32 %v6010_v53, %v3036_v60 }
 0x395   : > { %v4486_v37 = vpop.f32.mrf.mxu0  ;;  %v3481_v63 = vmul.f32 %v5984_v5, %v5997_v55  ;;  %v3479_v60 = vmul.f32 %v5997_v55, %v5986_v42 }
 0x396   : > { %3607 = vst [vmem:[%s6036_s29 + $0x10] sm:$0xff] %v3575_v23  ;;  %v3573_v29 = vmax.f32 %v3541_v46, 0.0  ;;  %v3544_v11 = vadd.f32 %v3512_v48, %v3209_v10  ;;  %v3207_v15 = vadd.f32 %v6018_v3, %v3168_v13  ;;  %v3173_v7 = vmul.f32 %v4486_v37, %v6010_v53 }
 0x397   : > { %v3049_v43 = vpop.f32.mrf.mxu0  ;;  %v3484_v23 = vmul.f32 %v5988_v22, %v5997_v55  ;;  %v3518_v26 = vadd.f32 %v6005_v27, %v3479_v60 }
 0x398   : > { %3605 = vst [vmem:[%s6036_s29] sm:$0xff] %v3573_v29  ;;  %v3576_v9 = vmax.f32 %v3544_v11, 0.0  ;;  %v3542_v56 = vadd.f32 %v3510_v24, %v3207_v15  ;;  %v3212_v32 = vadd.f32 %v6018_v3, %v3173_v7  ;;  %v3171_v0 = vmul.f32 %v6010_v53, %v3049_v43  ;;  %v6089_v29 = vpop.f32.mrf.mxu1 }
 0x399   : > { %v4487_v45 = vpop.f32.mrf.mxu0  ;;  %v3520_v11 = vadd.f32 %v6005_v27, %v3481_v63  ;;  %v3523_v7 = vadd.f32 %v6005_v27, %v3484_v23 }
 0x39a   : > { %3608 = vst [vmem:[%s6036_s29 + $0x18] sm:$0xff] %v3576_v9  ;;  %v3574_v35 = vmax.f32 %v3542_v56, 0.0  ;;  %v3547_v38 = vadd.f32 %v3515_v52, %v3212_v32  ;;  %v3210_v1 = vadd.f32 %v6018_v3, %v3171_v0  ;;  %v3174_v40 = vmul.f32 %v4487_v45, %v6010_v53 }
 0x39b   : > { %v3052_v28 = vpop.f32.mrf.mxu0  ;;  %v3482_v9 = vmul.f32 %v5997_v55, %v5990_v31 }
 0x39c   : > { %3606 = vst [vmem:[%s6036_s29 + $0x8] sm:$0xff] %v3574_v35  ;;  %v3579_v19 = vmax.f32 %v3547_v38, 0.0  ;;  %v3545_v59 = vadd.f32 %v3513_v20, %v3210_v1  ;;  %v3213_v44 = vadd.f32 %v6018_v3, %v3174_v40  ;;  %v3172_v41 = vmul.f32 %v6010_v53, %v3052_v28  ;;  %v6102_v35 = vpop.f32.mrf.mxu1 }
 0x39d   : > { %v4490_v25 = vpop.f32.mrf.mxu0  ;;  %v3521_v1 = vadd.f32 %v6005_v27, %v3482_v9  ;;  %v3483_v40 = vmul.f32 %v5997_v55, %v5999_v51 }
 0x39e   : > { %3611 = vst [vmem:[%s6036_s29 + $0x30] sm:$0xff] %v3579_v19  ;;  %v3577_v62 = vmax.f32 %v3545_v59, 0.0  ;;  %v3548_v54 = vadd.f32 %v3516_v12, %v3213_v44  ;;  %v3211_v36 = vadd.f32 %v6018_v3, %v3172_v41  ;;  %v3177_v18 = vmul.f32 %v4490_v25, %v6010_v53  ;;  %v4554_v41 = vpop.f32.mrf.mxu1 }
 0x39f   : > { %v3065_v61 = vpop.f32.mrf.mxu0  ;;  %v3488_v12 = vmul.f32 %v6012_v50, %v5997_v55 }
 0x3a0   : > { %3609 = vst [vmem:[%s6036_s29 + $0x20] sm:$0xff] %v3577_v62  ;;  %v3580_v8 = vmax.f32 %v3548_v54, 0.0  ;;  %v3546_v47 = vadd.f32 %v3514_v14, %v3211_v36  ;;  %v3216_v33 = vadd.f32 %v6018_v3, %v3177_v18  ;;  %v3175_v48 = vmul.f32 %v6010_v53, %v3065_v61 }
 0x3a1   : > { %v4491_v46 = vpop.f32.mrf.mxu0  ;;  %v3524_v14 = vadd.f32 %v6005_v27, %v3485_v58  ;;  %v3522_v62 = vadd.f32 %v6005_v27, %v3483_v40  ;;  %v3527_v54 = vadd.f32 %v6005_v27, %v3488_v12  ;;  %v3486_v36 = vmul.f32 %v5997_v55, %v6023_v21 }
 0x3a2   : > { %3612 = vst [vmem:[%s6036_s29 + $0x38] sm:$0xff] %v3580_v8  ;;  %v3578_v5 = vmax.f32 %v3546_v47, 0.0  ;;  %v3551_v10 = vadd.f32 %v3519_v39, %v3216_v33  ;;  %v3214_v13 = vadd.f32 %v6018_v3, %v3175_v48  ;;  %v3178_v24 = vmul.f32 %v4491_v46, %v6010_v53  ;;  %v3432_v33 = vpop.f32.mrf.mxu1 }
 0x3a3   : > { %v3068_v15 = vpop.f32.mrf.mxu0  ;;  %v3489_v48 = vmul.f32 %v6039_v6, %v5997_v55 }
 0x3a4   : > { %3610 = vst [vmem:[%s6036_s29 + $0x28] sm:$0xff] %v3578_v5  ;;  %v3583_v37 = vmax.f32 %v3551_v10, 0.0  ;;  %v3549_v42 = vadd.f32 %v3517_v2, %v3214_v13  ;;  %v3217_v22 = vadd.f32 %v6018_v3, %v3178_v24  ;;  %v3176_v52 = vmul.f32 %v6010_v53, %v3068_v15 }
 0x3a5   : > { %v4494_v56 = vpop.f32.mrf.mxu0  ;;  %v3525_v5 = vadd.f32 %v6005_v27, %v3486_v36  ;;  %v3487_v10 = vmul.f32 %v5997_v55, %v6049_v34  ;;  %v3492_v13 = vmul.f32 %v6061_v16, %v5997_v55  ;;  %v3494_v36 = vmul.f32 %v5997_v55, %v3432_v33 }
 0x3a6   : > { %3615 = vst [vmem:[%s6036_s29 + $0x50] sm:$0xff] %v3583_v37  ;;  %v3581_v49 = vmax.f32 %v3549_v42, 0.0  ;;  %v3552_v43 = vadd.f32 %v3520_v11, %v3217_v22  ;;  %v3215_v32 = vadd.f32 %v6018_v3, %v3176_v52  ;;  %v3181_v0 = vmul.f32 %v4494_v56, %v6010_v53  ;;  %v4555_v42 = vpop.f32.mrf.mxu1 }
 0x3a7   : > { %v3081_v30 = vpop.f32.mrf.mxu0  ;;  %v3528_v22 = vadd.f32 %v6005_v27, %v3489_v48  ;;  %v3526_v9 = vadd.f32 %v6005_v27, %v3487_v10  ;;  %v3531_v56 = vadd.f32 %v6005_v27, %v3492_v13 }
 0x3a8   : > { %3613 = vst [vmem:[%s6036_s29 + $0x40] sm:$0xff] %v3581_v49  ;;  %v3584_v45 = vmax.f32 %v3552_v43, 0.0  ;;  %v3550_v20 = vadd.f32 %v3518_v26, %v3215_v32  ;;  %v3220_v31 = vadd.f32 %v6018_v3, %v3181_v0  ;;  %v3179_v38 = vmul.f32 %v6010_v53, %v3081_v30 }
 0x3a9   : > { %v4495_v28 = vpop.f32.mrf.mxu0  ;;  %v3490_v49 = vmul.f32 %v5997_v55, %v6074_v57 }
 0x3aa   : > { %3616 = vst [vmem:[%s6036_s29 + $0x58] sm:$0xff] %v3584_v45  ;;  %v3582_v17 = vmax.f32 %v3550_v20, 0.0  ;;  %v3555_v19 = vadd.f32 %v3523_v7, %v3220_v31  ;;  %v3218_v59 = vadd.f32 %v6018_v3, %v3179_v38  ;;  %v3182_v44 = vmul.f32 %v4495_v28, %v6010_v53  ;;  %v3435_v45 = vpop.f32.mrf.mxu1 }
 0x3ab   : > { %v3084_v39 = vpop.f32.mrf.mxu0  ;;  %v3493_v20 = vmul.f32 %v6089_v29, %v5997_v55  ;;  %v3529_v12 = vadd.f32 %v6005_v27, %v3490_v49  ;;  %v3491_v28 = vmul.f32 %v5997_v55, %v6102_v35  ;;  %v3495_v10 = vmul.f32 %v5997_v55, %v3435_v45 }
 0x3ac   : > { %3614 = vst [vmem:[%s6036_s29 + $0x48] sm:$0xff] %v3582_v17  ;;  %v3587_v4 = vmax.f32 %v3555_v19, 0.0  ;;  %v3553_v51 = vadd.f32 %v3521_v1, %v3218_v59  ;;  %v3221_v25 = vadd.f32 %v6018_v3, %v3182_v44  ;;  %v3180_v50 = vmul.f32 %v6010_v53, %v3084_v39  ;;  %v4558_v39 = vpop.f32.mrf.mxu1 }
 0x3ad   : > { %v4498_v18 = vpop.f32.mrf.mxu0  ;;  %v3496_v17 = vmul.f32 %v4554_v41, %v5997_v55  ;;  %v3500_v13 = vmul.f32 %v4558_v39, %v5997_v55 }
 0x3ae   : > { %3619 = vst [vmem:[%s6036_s29 + $0x70] sm:$0xff] %v3587_v4  ;;  %v3585_v63 = vmax.f32 %v3553_v51, 0.0  ;;  %v3556_v61 = vadd.f32 %v3524_v14, %v3221_v25  ;;  %v3219_v8 = vadd.f32 %v6018_v3, %v3180_v50  ;;  %v3185_v47 = vmul.f32 %v4498_v18, %v6010_v53  ;;  %v3448_v48 = vpop.f32.mrf.mxu1 }
 0x3af   : > { %v3097_v2 = vpop.f32.mrf.mxu0  ;;  %v3532_v4 = vadd.f32 %v6005_v27, %v3493_v20  ;;  %v3498_v49 = vmul.f32 %v5997_v55, %v3448_v48 }
 0x3b0   : > { %3617 = vst [vmem:[%s6036_s29 + $0x60] sm:$0xff] %v3585_v63  ;;  %v3588_v60 = vmax.f32 %v3556_v61, 0.0  ;;  %v3554_v23 = vadd.f32 %v3522_v62, %v3219_v8  ;;  %v3224_v21 = vadd.f32 %v6018_v3, %v3185_v47  ;;  %v3183_v46 = vmul.f32 %v6010_v53, %v3097_v2 }
 0x3b1   : > { %v4499_v24 = vpop.f32.mrf.mxu0  ;;  %v3530_v62 = vadd.f32 %v6005_v27, %v3491_v28  ;;  %v3497_v2 = vmul.f32 %v4555_v42, %v5997_v55  ;;  %v4559_v42 = vpop.f32.mrf.mxu1 }
 0x3b2   : > { %3620 = vst [vmem:[%s6036_s29 + $0x78] sm:$0xff] %v3588_v60  ;;  %v3586_v6 = vmax.f32 %v3554_v23, 0.0  ;;  %v3559_v11 = vadd.f32 %v3527_v54, %v3224_v21  ;;  %v3222_v15 = vadd.f32 %v6018_v3, %v3183_v46  ;;  %v3186_v37 = vmul.f32 %v4499_v24, %v6010_v53 }
 0x3b3   : > { %v3100_v52 = vpop.f32.mrf.mxu0  ;;  %v3535_v54 = vadd.f32 %v6005_v27, %v3496_v17  ;;  %v3451_v45 = vpop.f32.mrf.mxu1  ;;  %v3501_v20 = vmul.f32 %v4559_v42, %v5997_v55 }
 0x3b4   : > { %3618 = vst [vmem:[%s6036_s29 + $0x68] sm:$0xff] %v3586_v6  ;;  %v3591_v26 = vmax.f32 %v3559_v11, 0.0  ;;  %v3557_v34 = vadd.f32 %v3525_v5, %v3222_v15  ;;  %v3225_v7 = vadd.f32 %v6018_v3, %v3186_v37  ;;  %v3184_v16 = vmul.f32 %v6010_v53, %v3100_v52 }
 0x3b5   : > { %v4502_v43 = vpop.f32.mrf.mxu0  ;;  %v3533_v5 = vadd.f32 %v6005_v27, %v3494_v36  ;;  %v3499_v28 = vmul.f32 %v5997_v55, %v3451_v45 }
 0x3b6   : > { %3623 = vst [vmem:[%s6036_s29 + $0x90] sm:$0xff] %v3591_v26  ;;  %v3589_v32 = vmax.f32 %v3557_v34, 0.0  ;;  %v3560_v0 = vadd.f32 %v3528_v22, %v3225_v7  ;;  %v3223_v58 = vadd.f32 %v6018_v3, %v3184_v16  ;;  %v3189_v30 = vmul.f32 %v4502_v43, %v6010_v53 }
 0x3b7   : > { %v3113_v31 = vpop.f32.mrf.mxu0  ;;  %v3536_v22 = vadd.f32 %v6005_v27, %v3497_v2 }
 0x3b8   : > { %3621 = vst [vmem:[%s6036_s29 + $0x80] sm:$0xff] %v3589_v32  ;;  %v3592_v38 = vmax.f32 %v3560_v0, 0.0  ;;  %v3558_v1 = vadd.f32 %v3526_v9, %v3223_v58  ;;  %v3228_v57 = vadd.f32 %v6018_v3, %v3189_v30  ;;  %v3187_v40 = vmul.f32 %v6010_v53, %v3113_v31 }
 0x3b9   : > { %v4503_v19 = vpop.f32.mrf.mxu0  ;;  %v3534_v9 = vadd.f32 %v6005_v27, %v3495_v10 }
 0x3ba   : > { %3624 = vst [vmem:[%s6036_s29 + $0x98] sm:$0xff] %v3592_v38  ;;  %v3590_v59 = vmax.f32 %v3558_v1, 0.0  ;;  %v3563_v29 = vadd.f32 %v3531_v56, %v3228_v57  ;;  %v3226_v44 = vadd.f32 %v6018_v3, %v3187_v40  ;;  %v3190_v14 = vmul.f32 %v4503_v19, %v6010_v53 }
 0x3bb   : > { %v3116_v51 = vpop.f32.mrf.mxu0  ;;  %v3539_v56 = vadd.f32 %v6005_v27, %v3500_v13 }
 0x3bc   : > { %3622 = vst [vmem:[%s6036_s29 + $0x88] sm:$0xff] %v3590_v59  ;;  %v3595_v25 = vmax.f32 %v3563_v29, 0.0  ;;  %v3561_v50 = vadd.f32 %v3529_v12, %v3226_v44  ;;  %v3229_v35 = vadd.f32 %v6018_v3, %v3190_v14  ;;  %v3188_v41 = vmul.f32 %v6010_v53, %v3116_v51 }
 0x3bd   : > { %v4506_v18 = vpop.f32.mrf.mxu0  ;;  %v3537_v12 = vadd.f32 %v6005_v27, %v3498_v49  ;;  %v3540_v14 = vadd.f32 %v6005_v27, %v3501_v20 }
 0x3be   : > { %3627 = vst [vmem:[%s6036_s29 + $0xb0] sm:$0xff] %v3595_v25  ;;  %v3593_v63 = vmax.f32 %v3561_v50, 0.0  ;;  %v3564_v61 = vadd.f32 %v3532_v4, %v3229_v35  ;;  %v3227_v8 = vadd.f32 %v6018_v3, %v3188_v41  ;;  %v3193_v47 = vmul.f32 %v4506_v18, %v6010_v53 }
 0x3bf   : > { %v3129_v60 = vpop.f32.mrf.mxu0  ;;  %v3538_v50 = vadd.f32 %v6005_v27, %v3499_v28 }
 0x3c0   : > { %3625 = vst [vmem:[%s6036_s29 + $0xa0] sm:$0xff] %v3593_v63  ;;  %v3596_v23 = vmax.f32 %v3564_v61, 0.0  ;;  %v3562_v21 = vadd.f32 %v3530_v62, %v3227_v8  ;;  %v3232_v46 = vadd.f32 %v6018_v3, %v3193_v47  ;;  %v3191_v33 = vmul.f32 %v6010_v53, %v3129_v60 }
 0x3c1   : > { %v4507_v24 = vpop.f32.mrf.mxu0 }
 0x3c2   : > { %3628 = vst [vmem:[%s6036_s29 + $0xb8] sm:$0xff] %v3596_v23  ;;  %v3594_v6 = vmax.f32 %v3562_v21, 0.0  ;;  %v3567_v11 = vadd.f32 %v3535_v54, %v3232_v46  ;;  %v3230_v15 = vadd.f32 %v6018_v3, %v3191_v33  ;;  %v3194_v37 = vmul.f32 %v4507_v24, %v6010_v53 }
 0x3c3   : > { %v3132_v52 = vpop.f32.mrf.mxu0 }
 0x3c4   : > { %3626 = vst [vmem:[%s6036_s29 + $0xa8] sm:$0xff] %v3594_v6  ;;  %v3599_v26 = vmax.f32 %v3567_v11, 0.0  ;;  %v3565_v34 = vadd.f32 %v3533_v5, %v3230_v15  ;;  %v3233_v7 = vadd.f32 %v6018_v3, %v3194_v37  ;;  %v3192_v16 = vmul.f32 %v6010_v53, %v3132_v52 }
 0x3c5   : > { %v4510_v43 = vpop.f32.mrf.mxu0 }
 0x3c6   : > { %3631 = vst [vmem:[%s6036_s29 + $0xd0] sm:$0xff] %v3599_v26  ;;  %v3597_v32 = vmax.f32 %v3565_v34, 0.0  ;;  %v3568_v0 = vadd.f32 %v3536_v22, %v3233_v7  ;;  %v3231_v58 = vadd.f32 %v6018_v3, %v3192_v16  ;;  %v3197_v30 = vmul.f32 %v4510_v43, %v6010_v53 }
 0x3c7   : > { %v3145_v31 = vpop.f32.mrf.mxu0 }
 0x3c8   : > { %3629 = vst [vmem:[%s6036_s29 + $0xc0] sm:$0xff] %v3597_v32  ;;  %v3600_v38 = vmax.f32 %v3568_v0, 0.0  ;;  %v3566_v1 = vadd.f32 %v3534_v9, %v3231_v58  ;;  %v3236_v57 = vadd.f32 %v6018_v3, %v3197_v30  ;;  %v3195_v40 = vmul.f32 %v6010_v53, %v3145_v31 }
 0x3c9   : > { %v4511_v17 = vpop.f32.mrf.mxu0 }
 0x3ca   : > { %3632 = vst [vmem:[%s6036_s29 + $0xd8] sm:$0xff] %v3600_v38  ;;  %v3598_v19 = vmax.f32 %v3566_v1, 0.0  ;;  %v3571_v59 = vadd.f32 %v3539_v56, %v3236_v57  ;;  %v3234_v29 = vadd.f32 %v6018_v3, %v3195_v40  ;;  %v3198_v44 = vmul.f32 %v4511_v17, %v6010_v53 }
 0x3cb   : > { %v3148_v39 = vpop.f32.mrf.mxu0 }
 0x3cc   : > { %3630 = vst [vmem:[%s6036_s29 + $0xc8] sm:$0xff] %v3598_v19  ;;  %v3603_v4 = vmax.f32 %v3571_v59, 0.0  ;;  %v3569_v51 = vadd.f32 %v3537_v12, %v3234_v29  ;;  %v3237_v25 = vadd.f32 %v6018_v3, %v3198_v44  ;;  %v3196_v55 = vmul.f32 %v6010_v53, %v3148_v39 }
 0x3ce   : > { %3635 = vst [vmem:[%s6036_s29 + $0xf0] sm:$0xff] %v3603_v4  ;;  %v3601_v35 = vmax.f32 %v3569_v51, 0.0  ;;  %v3572_v41 = vadd.f32 %v3540_v14, %v3237_v25  ;;  %v3235_v62 = vadd.f32 %v6018_v3, %v3196_v55 }
 0x3d0   : > { %3633 = vst [vmem:[%s6036_s29 + $0xe0] sm:$0xff] %v3601_v35  ;;  %v3604_v54 = vmax.f32 %v3572_v41, 0.0  ;;  %v3570_v36 = vadd.f32 %v3538_v50, %v3235_v62 }
 0x3d2   : > { %3636 = vst [vmem:[%s6036_s29 + $0xf8] sm:$0xff] %v3604_v54  ;;  %v3602_v18 = vmax.f32 %v3570_v36, 0.0 }
 0x3d4   : > { %3634 = vst [vmem:[%s6036_s29 + $0xe8] sm:$0xff] %v3602_v18 }
 0x3d5 PF: > { %s23_s25 = sadd.s32 1, %s4704_s25  }
 0x3d6   : > { %p20_p4 = scmp.ge.s32.totalorder %s23_s25, 4  }
 0x3d8   :  { %22 = sbr.rel (!%p20_p4) target bundleno = 1 (0x1), region = 104 }

</bundles_post_ra>
